<compile_context>
chip_gen: v6e
topology: v6e:2x2x1
jax: 0.10.0
libtpu: 0.0.40
codegen_flags: <defaults>
</compile_context>

<pallas_src>
import functools

import jax
import jax.numpy as jnp
from jax import lax
from jax.experimental import pallas as pl
from jax.experimental.pallas import tpu as pltpu


def _round_up(x, m):
    return ((x + m - 1) // m) * m


# ----------------------------------------------------------------------------
# Pallas kernel: fused  out = act(x @ w + b), tiled over M (rows).
# Weights/bias use a constant index_map so they stay resident across M tiles.
# ----------------------------------------------------------------------------
def _gemm_bias_act_kernel(x_ref, w_ref, b_ref, o_ref, *, apply_relu):
    acc = jnp.dot(x_ref[...], w_ref[...], preferred_element_type=jnp.float32)
    acc = acc + b_ref[...]          # (1, N) broadcasts over rows; f32 epilogue
    if apply_relu:
        acc = jnp.maximum(acc, 0.0)
    o_ref[...] = acc.astype(o_ref.dtype)


def gemm_bias_act(x, w, b, *, apply_relu, out_dtype=jnp.float32, tile_m=256):
    """x: (M, K) bf16, w: (K, N) bf16, b: (N,) f32 -> (M, N) out_dtype."""
    M, K = x.shape
    K2, N = w.shape
    assert K == K2
    tm = min(tile_m, _round_up(M, 8))
    grid_m = pl.cdiv(M, tm)
    kernel = functools.partial(_gemm_bias_act_kernel, apply_relu=apply_relu)
    return pl.pallas_call(
        kernel,
        out_shape=jax.ShapeDtypeStruct((M, N), out_dtype),
        grid=(grid_m,),
        in_specs=[
            pl.BlockSpec((tm, K), lambda i: (i, 0)),   # activation tile (pipelined)
            pl.BlockSpec((K, N), lambda i: (0, 0)),    # weights stay resident
            pl.BlockSpec((1, N), lambda i: (0, 0)),    # bias stays resident
        ],
        out_specs=pl.BlockSpec((tm, N), lambda i: (i, 0)),
        compiler_params=pltpu.CompilerParams(
            dimension_semantics=("parallel",),          # 2-TC sharding on v7x
            vmem_limit_bytes=32 * 1024 * 1024,
        ),
    )(x, w, b.reshape(1, N))


# ----------------------------------------------------------------------------
# Pallas kernel: fused fc1 (ReLU) + fc2. Single invocation (batch is tiny);
# the (M, 512) intermediate stays in vregs; output is a lane-dense padded slab.
# ----------------------------------------------------------------------------
def _fused_fc_kernel(x_ref, w1_ref, b1_ref, w2_ref, b2_ref, o_ref):
    h = jnp.dot(x_ref[...], w1_ref[...], preferred_element_type=jnp.float32)
    h = jnp.maximum(h + b1_ref[...], 0.0).astype(w2_ref.dtype)
    out = jnp.dot(h, w2_ref[...], preferred_element_type=jnp.float32)
    o_ref[...] = (out + b2_ref[...]).astype(o_ref.dtype)


def fused_fc(x, w1, b1, w2, b2):
    """x: (M, K) bf16, w1: (K, H) bf16, w2: (H, Np) bf16 -> (M, Np) f32."""
    M, K = x.shape
    H = w1.shape[1]
    Np = w2.shape[1]
    return pl.pallas_call(
        _fused_fc_kernel,
        out_shape=jax.ShapeDtypeStruct((M, Np), jnp.float32),
        in_specs=[
            pl.BlockSpec((M, K)),
            pl.BlockSpec((K, H)),
            pl.BlockSpec((1, H)),
            pl.BlockSpec((H, Np)),
            pl.BlockSpec((1, Np)),
        ],
        out_specs=pl.BlockSpec((M, Np)),
        compiler_params=pltpu.CompilerParams(
            vmem_limit_bytes=32 * 1024 * 1024,
        ),
    )(x, w1, b1.reshape(1, H), w2, b2.reshape(1, Np))


# ----------------------------------------------------------------------------
# im2col glue (plain JAX, NHWC): feature order (kh, kw, C_in), which matches
# the one-time conv-weight permutation below. No transposes between layers.
# ----------------------------------------------------------------------------
def im2col_nhwc(x, k, s):
    """x: (N, H, W, C) -> patches (N*Ho*Wo, k*k*C), plus (Ho, Wo)."""
    n, h, w, c = x.shape
    ho = (h - k) // s + 1
    wo = (w - k) // s + 1
    cols = []
    for i in range(k):
        for j in range(k):
            cols.append(x[:, i:i + s * ho:s, j:j + s * wo:s, :])  # (N,Ho,Wo,C)
    p = jnp.stack(cols, axis=3)                 # (N, Ho, Wo, k*k, C)
    return p.reshape(n * ho * wo, k * k * c), ho, wo


# TODO(synk): fuse patch extraction into the GEMM kernel (strided DMA from an
# HBM-resident activation via memory_space=pl.ANY) once batch size makes the
# HBM-materialized patch matrix the bandwidth bottleneck.
def conv2d_relu_nhwc(x, w2d, b, *, k, stride):
    """NHWC Conv2d (VALID) + ReLU via im2col + fused GEMM kernel (bf16 in/out)."""
    n = x.shape[0]
    c_out = w2d.shape[1]
    patches, ho, wo = im2col_nhwc(x, k, stride)
    out = gemm_bias_act(patches, w2d, b, apply_relu=True, out_dtype=jnp.bfloat16)
    return out.reshape(n, ho, wo, c_out)        # already NHWC; no transpose back


# ----------------------------------------------------------------------------
# Parameter init (PyTorch layout / f32) + one-time conversion to kernel layout
# ----------------------------------------------------------------------------
def _uniform(key, shape, bound):
    return jax.random.uniform(key, shape, jnp.float32, -bound, bound)


def init_params(key, in_channels, n_actions, conv_out_size):
    ks = jax.random.split(key, 10)
    params = {}
    fan = in_channels * 8 * 8
    params["w1"] = _uniform(ks[0], (128, in_channels, 8, 8), 1.0 / fan ** 0.5)
    params["b1"] = _uniform(ks[1], (128,), 1.0 / fan ** 0.5)
    fan = 128 * 4 * 4
    params["w2"] = _uniform(ks[2], (256, 128, 4, 4), 1.0 / fan ** 0.5)
    params["b2"] = _uniform(ks[3], (256,), 1.0 / fan ** 0.5)
    fan = 256 * 3 * 3
    params["w3"] = _uniform(ks[4], (128, 256, 3, 3), 1.0 / fan ** 0.5)
    params["b3"] = _uniform(ks[5], (128,), 1.0 / fan ** 0.5)
    fan = conv_out_size
    params["wf1"] = _uniform(ks[6], (conv_out_size, 512), 1.0 / fan ** 0.5)
    params["bf1"] = _uniform(ks[7], (512,), 1.0 / fan ** 0.5)
    fan = 512
    params["wf2"] = _uniform(ks[8], (512, n_actions), 1.0 / fan ** 0.5)
    params["bf2"] = _uniform(ks[9], (n_actions,), 1.0 / fan ** 0.5)
    return params


def prepare_params(params, conv3_hw):
    """PyTorch-layout f32 params -> kernel-ready params (bf16, NHWC-major, padded)."""
    h3, w3 = conv3_hw

    def conv_w(w):  # (Cout, Cin, kh, kw) -> (kh*kw*Cin, Cout) bf16
        c_out = w.shape[0]
        return jnp.transpose(w, (0, 2, 3, 1)).reshape(c_out, -1).T.astype(jnp.bfloat16)

    kp = {
        "w1": conv_w(params["w1"]), "b1": params["b1"],
        "w2": conv_w(params["w2"]), "b2": params["b2"],
        "w3": conv_w(params["w3"]), "b3": params["b3"],
    }
    # fc1: permute rows so the NHWC flatten matches torch's NCHW .view(N, -1).
    c3 = params["w3"].shape[0]
    perm = jnp.arange(c3 * h3 * w3).reshape(c3, h3, w3).transpose(1, 2, 0).reshape(-1)
    kp["wf1"] = params["wf1"][perm].astype(jnp.bfloat16)
    kp["bf1"] = params["bf1"]
    # fc2: pad the output dim to a lane-dense multiple of 128 (unmasked stores).
    n_act = params["wf2"].shape[1]
    n_pad = _round_up(max(n_act, 1), 128)
    wf2 = jnp.zeros((params["wf2"].shape[0], n_pad), jnp.bfloat16)
    kp["wf2"] = wf2.at[:, :n_act].set(params["wf2"].astype(jnp.bfloat16))
    kp["bf2"] = jnp.zeros((n_pad,), jnp.float32).at[:n_act].set(params["bf2"])
    return kp


# ----------------------------------------------------------------------------
# Full forward pass (matches CNN_Model.forward)
# ----------------------------------------------------------------------------
@functools.partial(jax.jit, static_argnames=("n_actions",))
def cnn_model_forward(kparams, x, *, n_actions):
    # One-time layout change: NCHW f32 -> NHWC bf16 (C on the lane axis).
    h = jnp.transpose(x, (0, 2, 3, 1)).astype(jnp.bfloat16)
    h = conv2d_relu_nhwc(h, kparams["w1"], kparams["b1"], k=8, stride=4)
    h = conv2d_relu_nhwc(h, kparams["w2"], kparams["b2"], k=4, stride=2)
    h = conv2d_relu_nhwc(h, kparams["w3"], kparams["b3"], k=3, stride=1)
    flat = h.reshape(x.shape[0], -1)   # NHWC flatten; wf1 rows already permuted
    out = fused_fc(flat, kparams["wf1"], kparams["bf1"],
                   kparams["wf2"], kparams["bf2"])
    return out[:, :n_actions]


# Pure-JAX reference (lax conv, f32, original PyTorch layout) for correctness.
def reference_forward(params, x):
    def conv(x, w, b, s):
        y = lax.conv_general_dilated(
            x, w, window_strides=(s, s), padding="VALID",
            dimension_numbers=("NCHW", "OIHW", "NCHW"))
        return jax.nn.relu(y + b[None, :, None, None])

    h = conv(x, params["w1"], params["b1"], 4)
    h = conv(h, params["w2"], params["b2"], 2)
    h = conv(h, params["w3"], params["b3"], 1)
    flat = h.reshape(x.shape[0], -1)
    h = jax.nn.relu(flat @ params["wf1"] + params["bf1"])
    return h @ params["wf2"] + params["bf2"]


if __name__ == "__main__":
    # Small DQN-style input: batch=2, channels=4, 64x64 frames.
    batch, in_channels, hw = 2, 4, 64
    n_actions = 6

    # Static conv geometry (mirrors _get_conv_out):
    # 64 -(k8,s4)-> 15 -(k4,s2)-> 6 -(k3,s1)-> 4  => conv_out_size = 128*4*4
    h1 = (hw - 8) // 4 + 1
    h2 = (h1 - 4) // 2 + 1
    h3 = (h2 - 3) // 1 + 1
    conv_out_size = 128 * h3 * h3

    key = jax.random.PRNGKey(0)
    pkey, xkey = jax.random.split(key)
    params = init_params(pkey, in_channels, n_actions, conv_out_size)
    kparams = prepare_params(params, (h3, h3))   # one-time layout/bf16 conversion
    x = jax.random.normal(xkey, (batch, in_channels, hw, hw), jnp.float32)

    out = cnn_model_forward(kparams, x, n_actions=n_actions)
    out = jax.block_until_ready(out)
    assert out.shape == (batch, n_actions)

    ref = jax.block_until_ready(reference_forward(params, x))
    assert jnp.allclose(out, ref, rtol=5e-2, atol=5e-2), "mismatch vs reference"

    print("KERNEL_OK")
</pallas_src>

<mosaic_0001>
module attributes {stable_mosaic.version = 11 : i64} {
  func.func @_gemm_bias_act_kernel(%arg0: i32, %arg1: memref<256x256xbf16, #tpu.memory_space<vmem>>, %arg2: memref<256x128xbf16, #tpu.memory_space<vmem>>, %arg3: memref<1x128xf32, #tpu.memory_space<vmem>>, %arg4: memref<256x128xbf16, #tpu.memory_space<vmem>>) attributes {dimension_semantics = [#tpu.dimension_semantics<parallel>], iteration_bounds = array<i64: 2>, scalar_prefetch = 0 : i64, scratch_operands = 0 : i64, tpu.core_type = #tpu.core_type<tc>, window_params = [{transform_indices = @transform_0, window_bounds = array<i64: 256, 256>}, {pipeline_mode = #tpu.pipeline_mode<synchronous>, transform_indices = @transform_1, window_bounds = array<i64: 256, 128>}, {pipeline_mode = #tpu.pipeline_mode<synchronous>, transform_indices = @transform_2, window_bounds = array<i64: 1, 128>}, {transform_indices = @transform_3, window_bounds = array<i64: 256, 128>}]} {
    %c0 = arith.constant 0 : index
    %c0_0 = arith.constant 0 : index
    %0 = vector.load %arg1[%c0, %c0_0] : memref<256x256xbf16, #tpu.memory_space<vmem>>, vector<256x256xbf16>
    %c0_1 = arith.constant 0 : index
    %c0_2 = arith.constant 0 : index
    %1 = vector.load %arg2[%c0_1, %c0_2] : memref<256x128xbf16, #tpu.memory_space<vmem>>, vector<256x128xbf16>
    %cst = arith.constant dense<0.000000e+00> : vector<256x128xf32>
    %2 = tpu.matmul %0, %1, %cst {dimension_numbers = #tpu.dot_dimension_numbers<[1], [0], [0], [1], [0, 0, 1, 1], [], []>} : vector<256x256xbf16>, vector<256x128xbf16>, vector<256x128xf32> -> vector<256x128xf32>
    %c0_3 = arith.constant 0 : index
    %c0_4 = arith.constant 0 : index
    %3 = vector.load %arg3[%c0_3, %c0_4] : memref<1x128xf32, #tpu.memory_space<vmem>>, vector<1x128xf32>
    %4 = vector.broadcast %3 : vector<1x128xf32> to vector<256x128xf32>
    %5 = arith.addf %2, %4 : vector<256x128xf32>
    %cst_5 = arith.constant 0.000000e+00 : f32
    %6 = vector.broadcast %cst_5 : f32 to vector<256x128xf32>
    %7 = arith.maximumf %5, %6 : vector<256x128xf32>
    %8 = arith.truncf %7 : vector<256x128xf32> to vector<256x128xbf16>
    %c0_6 = arith.constant 0 : index
    %c0_7 = arith.constant 0 : index
    %9 = vector.load %arg4[%c0_6, %c0_7] : memref<256x128xbf16, #tpu.memory_space<vmem>>, vector<256x128xbf16>
    tpu.vector_store %arg4[%c0_6, %c0_7], %8 {strides = array<i32>} : memref<256x128xbf16, #tpu.memory_space<vmem>>, vector<256x128xbf16>,
    return
  }
  func.func @transform_0(%arg0: i32) -> (i32, i32) {
    %c0_i32 = arith.constant 0 : i32
    %c0_i32_0 = arith.constant 0 : i32
    return %arg0, %c0_i32 : i32, i32
  }
  func.func @transform_1(%arg0: i32) -> (i32, i32) {
    %c0_i32 = arith.constant 0 : i32
    %c0_i32_0 = arith.constant 0 : i32
    %c0_i32_1 = arith.constant 0 : i32
    return %c0_i32, %c0_i32_0 : i32, i32
  }
  func.func @transform_2(%arg0: i32) -> (i32, i32) {
    %c0_i32 = arith.constant 0 : i32
    %c0_i32_0 = arith.constant 0 : i32
    %c0_i32_1 = arith.constant 0 : i32
    return %c0_i32, %c0_i32_0 : i32, i32
  }
  func.func @transform_3(%arg0: i32) -> (i32, i32) {
    %c0_i32 = arith.constant 0 : i32
    %c0_i32_0 = arith.constant 0 : i32
    return %arg0, %c0_i32 : i32, i32
  }
}

module attributes {stable_mosaic.version = 11 : i64} {
  func.func @_gemm_bias_act_kernel(%arg0: i32, %arg1: memref<72x2048xbf16, #tpu.memory_space<vmem>>, %arg2: memref<2048x256xbf16, #tpu.memory_space<vmem>>, %arg3: memref<1x256xf32, #tpu.memory_space<vmem>>, %arg4: memref<72x256xbf16, #tpu.memory_space<vmem>>) attributes {dimension_semantics = [#tpu.dimension_semantics<parallel>], iteration_bounds = array<i64: 1>, scalar_prefetch = 0 : i64, scratch_operands = 0 : i64, tpu.core_type = #tpu.core_type<tc>, window_params = [{transform_indices = @transform_0, window_bounds = array<i64: 72, 2048>}, {pipeline_mode = #tpu.pipeline_mode<synchronous>, transform_indices = @transform_1, window_bounds = array<i64: 2048, 256>}, {pipeline_mode = #tpu.pipeline_mode<synchronous>, transform_indices = @transform_2, window_bounds = array<i64: 1, 256>}, {transform_indices = @transform_3, window_bounds = array<i64: 72, 256>}]} {
    %c0 = arith.constant 0 : index
    %c0_0 = arith.constant 0 : index
    %0 = vector.load %arg1[%c0, %c0_0] : memref<72x2048xbf16, #tpu.memory_space<vmem>>, vector<72x2048xbf16>
    %c0_1 = arith.constant 0 : index
    %c0_2 = arith.constant 0 : index
    %1 = vector.load %arg2[%c0_1, %c0_2] : memref<2048x256xbf16, #tpu.memory_space<vmem>>, vector<2048x256xbf16>
    %cst = arith.constant dense<0.000000e+00> : vector<72x256xf32>
    %2 = tpu.matmul %0, %1, %cst {dimension_numbers = #tpu.dot_dimension_numbers<[1], [0], [0], [1], [0, 0, 1, 1], [], []>} : vector<72x2048xbf16>, vector<2048x256xbf16>, vector<72x256xf32> -> vector<72x256xf32>
    %c0_3 = arith.constant 0 : index
    %c0_4 = arith.constant 0 : index
    %3 = vector.load %arg3[%c0_3, %c0_4] : memref<1x256xf32, #tpu.memory_space<vmem>>, vector<1x256xf32>
    %4 = vector.broadcast %3 : vector<1x256xf32> to vector<72x256xf32>
    %5 = arith.addf %2, %4 : vector<72x256xf32>
    %cst_5 = arith.constant 0.000000e+00 : f32
    %6 = vector.broadcast %cst_5 : f32 to vector<72x256xf32>
    %7 = arith.maximumf %5, %6 : vector<72x256xf32>
    %8 = arith.truncf %7 : vector<72x256xf32> to vector<72x256xbf16>
    %c0_6 = arith.constant 0 : index
    %c0_7 = arith.constant 0 : index
    %9 = vector.load %arg4[%c0_6, %c0_7] : memref<72x256xbf16, #tpu.memory_space<vmem>>, vector<72x256xbf16>
    tpu.vector_store %arg4[%c0_6, %c0_7], %8 {strides = array<i32>} : memref<72x256xbf16, #tpu.memory_space<vmem>>, vector<72x256xbf16>,
    return
  }
  func.func @transform_0(%arg0: i32) -> (i32, i32) {
    %c0_i32 = arith.constant 0 : i32
    %c0_i32_0 = arith.constant 0 : i32
    return %arg0, %c0_i32 : i32, i32
  }
  func.func @transform_1(%arg0: i32) -> (i32, i32) {
    %c0_i32 = arith.constant 0 : i32
    %c0_i32_0 = arith.constant 0 : i32
    %c0_i32_1 = arith.constant 0 : i32
    return %c0_i32, %c0_i32_0 : i32, i32
  }
  func.func @transform_2(%arg0: i32) -> (i32, i32) {
    %c0_i32 = arith.constant 0 : i32
    %c0_i32_0 = arith.constant 0 : i32
    %c0_i32_1 = arith.constant 0 : i32
    return %c0_i32, %c0_i32_0 : i32, i32
  }
  func.func @transform_3(%arg0: i32) -> (i32, i32) {
    %c0_i32 = arith.constant 0 : i32
    %c0_i32_0 = arith.constant 0 : i32
    return %arg0, %c0_i32 : i32, i32
  }
}

module attributes {stable_mosaic.version = 11 : i64} {
  func.func @_gemm_bias_act_kernel(%arg0: i32, %arg1: memref<32x2304xbf16, #tpu.memory_space<vmem>>, %arg2: memref<2304x128xbf16, #tpu.memory_space<vmem>>, %arg3: memref<1x128xf32, #tpu.memory_space<vmem>>, %arg4: memref<32x128xbf16, #tpu.memory_space<vmem>>) attributes {dimension_semantics = [#tpu.dimension_semantics<parallel>], iteration_bounds = array<i64: 1>, scalar_prefetch = 0 : i64, scratch_operands = 0 : i64, tpu.core_type = #tpu.core_type<tc>, window_params = [{transform_indices = @transform_0, window_bounds = array<i64: 32, 2304>}, {pipeline_mode = #tpu.pipeline_mode<synchronous>, transform_indices = @transform_1, window_bounds = array<i64: 2304, 128>}, {pipeline_mode = #tpu.pipeline_mode<synchronous>, transform_indices = @transform_2, window_bounds = array<i64: 1, 128>}, {transform_indices = @transform_3, window_bounds = array<i64: 32, 128>}]} {
    %c0 = arith.constant 0 : index
    %c0_0 = arith.constant 0 : index
    %0 = vector.load %arg1[%c0, %c0_0] : memref<32x2304xbf16, #tpu.memory_space<vmem>>, vector<32x2304xbf16>
    %c0_1 = arith.constant 0 : index
    %c0_2 = arith.constant 0 : index
    %1 = vector.load %arg2[%c0_1, %c0_2] : memref<2304x128xbf16, #tpu.memory_space<vmem>>, vector<2304x128xbf16>
    %cst = arith.constant dense<0.000000e+00> : vector<32x128xf32>
    %2 = tpu.matmul %0, %1, %cst {dimension_numbers = #tpu.dot_dimension_numbers<[1], [0], [0], [1], [0, 0, 1, 1], [], []>} : vector<32x2304xbf16>, vector<2304x128xbf16>, vector<32x128xf32> -> vector<32x128xf32>
    %c0_3 = arith.constant 0 : index
    %c0_4 = arith.constant 0 : index
    %3 = vector.load %arg3[%c0_3, %c0_4] : memref<1x128xf32, #tpu.memory_space<vmem>>, vector<1x128xf32>
    %4 = vector.broadcast %3 : vector<1x128xf32> to vector<32x128xf32>
    %5 = arith.addf %2, %4 : vector<32x128xf32>
    %cst_5 = arith.constant 0.000000e+00 : f32
    %6 = vector.broadcast %cst_5 : f32 to vector<32x128xf32>
    %7 = arith.maximumf %5, %6 : vector<32x128xf32>
    %8 = arith.truncf %7 : vector<32x128xf32> to vector<32x128xbf16>
    %c0_6 = arith.constant 0 : index
    %c0_7 = arith.constant 0 : index
    %9 = vector.load %arg4[%c0_6, %c0_7] : memref<32x128xbf16, #tpu.memory_space<vmem>>, vector<32x128xbf16>
    tpu.vector_store %arg4[%c0_6, %c0_7], %8 {strides = array<i32>} : memref<32x128xbf16, #tpu.memory_space<vmem>>, vector<32x128xbf16>,
    return
  }
  func.func @transform_0(%arg0: i32) -> (i32, i32) {
    %c0_i32 = arith.constant 0 : i32
    %c0_i32_0 = arith.constant 0 : i32
    return %arg0, %c0_i32 : i32, i32
  }
  func.func @transform_1(%arg0: i32) -> (i32, i32) {
    %c0_i32 = arith.constant 0 : i32
    %c0_i32_0 = arith.constant 0 : i32
    %c0_i32_1 = arith.constant 0 : i32
    return %c0_i32, %c0_i32_0 : i32, i32
  }
  func.func @transform_2(%arg0: i32) -> (i32, i32) {
    %c0_i32 = arith.constant 0 : i32
    %c0_i32_0 = arith.constant 0 : i32
    %c0_i32_1 = arith.constant 0 : i32
    return %c0_i32, %c0_i32_0 : i32, i32
  }
  func.func @transform_3(%arg0: i32) -> (i32, i32) {
    %c0_i32 = arith.constant 0 : i32
    %c0_i32_0 = arith.constant 0 : i32
    return %arg0, %c0_i32 : i32, i32
  }
}

module attributes {stable_mosaic.version = 11 : i64} {
  func.func @_fused_fc_kernel(%arg0: memref<2x2048xbf16, #tpu.memory_space<vmem>>, %arg1: memref<2048x512xbf16, #tpu.memory_space<vmem>>, %arg2: memref<1x512xf32, #tpu.memory_space<vmem>>, %arg3: memref<512x128xbf16, #tpu.memory_space<vmem>>, %arg4: memref<1x128xf32, #tpu.memory_space<vmem>>, %arg5: memref<2x128xf32, #tpu.memory_space<vmem>>) attributes {dimension_semantics = [], scalar_prefetch = 0 : i64, scratch_operands = 0 : i64, tpu.core_type = #tpu.core_type<tc>} {
    %c0 = arith.constant 0 : index
    %c0_0 = arith.constant 0 : index
    %0 = vector.load %arg0[%c0, %c0_0] : memref<2x2048xbf16, #tpu.memory_space<vmem>>, vector<2x2048xbf16>
    %c0_1 = arith.constant 0 : index
    %c0_2 = arith.constant 0 : index
    %1 = vector.load %arg1[%c0_1, %c0_2] : memref<2048x512xbf16, #tpu.memory_space<vmem>>, vector<2048x512xbf16>
    %cst = arith.constant dense<0.000000e+00> : vector<2x512xf32>
    %2 = tpu.matmul %0, %1, %cst {dimension_numbers = #tpu.dot_dimension_numbers<[1], [0], [0], [1], [0, 0, 1, 1], [], []>} : vector<2x2048xbf16>, vector<2048x512xbf16>, vector<2x512xf32> -> vector<2x512xf32>
    %c0_3 = arith.constant 0 : index
    %c0_4 = arith.constant 0 : index
    %3 = vector.load %arg2[%c0_3, %c0_4] : memref<1x512xf32, #tpu.memory_space<vmem>>, vector<1x512xf32>
    %4 = vector.broadcast %3 : vector<1x512xf32> to vector<2x512xf32>
    %5 = arith.addf %2, %4 : vector<2x512xf32>
    %cst_5 = arith.constant 0.000000e+00 : f32
    %6 = vector.broadcast %cst_5 : f32 to vector<2x512xf32>
    %7 = arith.maximumf %5, %6 : vector<2x512xf32>
    %8 = arith.truncf %7 : vector<2x512xf32> to vector<2x512xbf16>
    %c0_6 = arith.constant 0 : index
    %c0_7 = arith.constant 0 : index
    %9 = vector.load %arg3[%c0_6, %c0_7] : memref<512x128xbf16, #tpu.memory_space<vmem>>, vector<512x128xbf16>
    %cst_8 = arith.constant dense<0.000000e+00> : vector<2x128xf32>
    %10 = tpu.matmul %8, %9, %cst_8 {dimension_numbers = #tpu.dot_dimension_numbers<[1], [0], [0], [1], [0, 0, 1, 1], [], []>} : vector<2x512xbf16>, vector<512x128xbf16>, vector<2x128xf32> -> vector<2x128xf32>
    %c0_9 = arith.constant 0 : index
    %c0_10 = arith.constant 0 : index
    %11 = vector.load %arg4[%c0_9, %c0_10] : memref<1x128xf32, #tpu.memory_space<vmem>>, vector<1x128xf32>
    %12 = vector.broadcast %11 : vector<1x128xf32> to vector<2x128xf32>
    %13 = arith.addf %10, %12 : vector<2x128xf32>
    %c0_11 = arith.constant 0 : index
    %c0_12 = arith.constant 0 : index
    %14 = vector.load %arg5[%c0_11, %c0_12] : memref<2x128xf32, #tpu.memory_space<vmem>>, vector<2x128xf32>
    tpu.vector_store %arg5[%c0_11, %c0_12], %13 {strides = array<i32>} : memref<2x128xf32, #tpu.memory_space<vmem>>, vector<2x128xf32>,
    return
  }
}

</mosaic_0001>

<bundles_post_ra>
// kernel: cnn_model_forward.4
= control target key start
LH: loop header
LB: loop body
LE: loop exit
PB: predicated region body
PF: predicated region fallthrough
CT: control target
= control target key end

     0   :  { %s1846_s12 = smov 0   ;;  %s1848_s13 = smov 0   ;;  %s2156_s0 = inlined_call_operand.vmem [shape: bf16[450,256], index: 0, kind: input, shape index: {}]   ;;  %s2157_s1 = inlined_call_operand.vmem [shape: bf16[256,128], index: 1, kind: input, shape index: {}]   ;;  %s2158_s2 = inlined_call_operand.vmem [shape: f32[1,128], index: 2, kind: input, shape index: {}]   ;;  %s2159_s3 = inlined_call_operand.vmem [shape: bf16[450,128], index: 3, kind: output, shape index: {}]  }
   0x1   :  { %s1850_s14 = smov 0  }
   0x2 LB: > { %s1859_s15 = sadd.s32 4294967295, %s1792_s14   ;;  %s1861_s16 = sadd.s32 1, %s1792_s14   ;;  %s1792_s14 = sphi %s1850_s14, %s2166_s14   ;;  %s1788_s13 = sphi %s1848_s13, %s2165_s13   ;;  %s1784_s12 = sphi %s1846_s12, %s2164_s12  }
   0x3   : > { %s85_s17 = ssub.s32 %s1792_s14, %s1861_s16  ;;  %s88_s18 = sadd.s32 1, %s1788_s13 }
   0x4   : > { %p86_p0 = scmp.eq.s32.totalorder %s85_s17, 0  ;;  %p98_p1 = scmp.ne.s32.totalorder %s1788_s13, %s1784_s12 }
   0x5   : > { %p99_p2 = scmp.eq.s32.totalorder %s1859_s15, 1  ;;  %p1224_p3 = scmp.ge.s32.totalorder %s1792_s14, 1 }
   0x6   : > { %s1869_s19 = scalar_select %p86_p0, %s1788_s13, %s88_s18  }
   0x7   : > { %p1871_p4 = por %p99_p2, %p98_p1  ;;  %p149_p5 = scmp.lt.s32.totalorder %s1792_s14, 3 }
   0x9   : > { %p150_p6 = pnand %p1224_p3, %p149_p5 }
   0xa   : > { %s1879_s23 = sshll.u32 (!%p150_p6), %s1859_s15, 5  ;;  %s175_s18 = sand.u32 (!%p150_p6), 1, %s1784_s12  }
   0xb   : > { %153 = sbr.rel (%p150_p6) target bundleno = 373 (0x175), region = 32  ;;  %p184_p7 = scmp.lt.s32.totalorder (!%p150_p6), %s1879_s23, 56 }
   0xc   : > { %s1225_s21 = sshll.u32 (!%p150_p6), %s175_s18, 7 }
   0xd   : > { %s1977_s12 = scalar_lea.vmem (!%p150_p6), [#allocation2], %s1225_s21  }
  0x10   : > { %v1674_v0 = vld [vmem:[%s2157_s1 + $0x78] sm:$0xff]   ;;  %v1676_v2 = vld [vmem:[%s2157_s1 + $0x70] sm:$0xff]   ;;  %v1678_v4 = vld [vmem:[%s2157_s1 + $0x68] sm:$0xff]   ;;  %s185_s7 = scalar_select %p184_p7, %s1879_s23, 56 }
  0x11   : > { %v1675_v1 = vld [vmem:[%s2157_s1 + $0x38] sm:$0xff]   ;;  %1458 = vmatprep.subr.bf16.mxu0 %v1674_v0  ;;  %1570 = vmatprep.subr.bf16.mxu1 %v1674_v0  ;;  %v1677_v3 = vld [vmem:[%s2157_s1 + $0x30] sm:$0xff]   ;;  %v1679_v5 = vld [vmem:[%s2157_s1 + $0x28] sm:$0xff]   ;;  %s889_s22 = ssub.s32 (%p1871_p4), 57, %s1879_s23 }
  0x12   : > { %1459 = vmatpush3.bf16.msra.mxu0 %v1675_v1  ;;  %1578 = vmatpush3.bf16.msra.mxu1 %v1675_v1  ;;  %v1680_v6 = vld [vmem:[%s2157_s1 + $0x60] sm:$0xff]   ;;  %s1327_s14 = sshll.u32 %s185_s7, 3  ;;  %v1682_v8 = vld [vmem:[%s2157_s1 + $0x58] sm:$0xff]   ;;  %v1684_v10 = vld [vmem:[%s2157_s1 + $0x50] sm:$0xff]   ;;  %p890_p8 = scmp.lt.s32.totalorder (%p1871_p4), %s889_s22, 32 }
  0x13   : > { %1460 = vmatprep.subr.bf16.mxu0 %v1676_v2  ;;  %1571 = vmatprep.subr.bf16.mxu1 %v1676_v2  ;;  %v1681_v7 = vld [vmem:[%s2157_s1 + $0x20] sm:$0xff]   ;;  %s1910_s24 = scalar_lea.vmem %s2156_s0, %s1327_s14  ;;  %v1683_v9 = vld [vmem:[%s2157_s1 + $0x18] sm:$0xff]   ;;  %v1685_v13 = vld [vmem:[%s2157_s1 + $0x10] sm:$0xff]  }
  0x14   : > { %v1692_v11 = vld [vmem:[%s1910_s24 + $0x4] ss:$8 sps:$4 sm:$0xff]   ;;  %v1690_v18 = vld [vmem:[%s1910_s24] ss:$8 sps:$4 sm:$0xff]   ;;  %v1696_v20 = vld [vmem:[%s1910_s24 + $0x14] ss:$8 sps:$4 sm:$0xff]  }
  0x15   : > { %v1695_v12 = vld [vmem:[%s1910_s24 + $0x84] ss:$8 sps:$4 sm:$0xff]   ;;  %560 = vmatprep.mubr.bf16.mxu0 %v1692_v11  ;;  %v1693_v19 = vld [vmem:[%s1910_s24 + $0x80] ss:$8 sps:$4 sm:$0xff]   ;;  %v1698_v21 = vld [vmem:[%s1910_s24 + $0x94] ss:$8 sps:$4 sm:$0xff]  }
  0x16   : > { %1461 = vmatpush3.bf16.msra.mxu0 %v1677_v3  ;;  %1579 = vmatpush3.bf16.msra.mxu1 %v1677_v3  ;;  %v1686_v14 = vld [vmem:[%s2157_s1 + $0x48] sm:$0xff]   ;;  %v1688_v16 = vld [vmem:[%s2157_s1 + $0x40] sm:$0xff]   ;;  %v1700_v22 = vld [vmem:[%s1910_s24 + $0x10] ss:$8 sps:$4 sm:$0xff]  }
  0x17   : > { %1462 = vmatprep.subr.bf16.mxu0 %v1678_v4  ;;  %1572 = vmatprep.subr.bf16.mxu1 %v1678_v4  ;;  %v1687_v15 = vld [vmem:[%s2157_s1 + $0x8] sm:$0xff]   ;;  %v1689_v17 = vld [vmem:[%s2157_s1] sm:$0xff]   ;;  %v1701_v23 = vld [vmem:[%s1910_s24 + $0x90] ss:$8 sps:$4 sm:$0xff]  }
  0x18   : > { %624 = vmatprep.mubr.bf16.mxu1 %v1695_v12  ;;  %v1702_v24 = vld [vmem:[%s1910_s24 + $0x24] ss:$8 sps:$4 sm:$0xff]   ;;  %v1706_v26 = vld [vmem:[%s1910_s24 + $0x20] ss:$8 sps:$4 sm:$0xff]   ;;  %v1708_v28 = vld [vmem:[%s1910_s24 + $0x34] ss:$8 sps:$4 sm:$0xff]  }
  0x19   : > { %v1704_v25 = vld [vmem:[%s1910_s24 + $0xa4] ss:$8 sps:$4 sm:$0xff]   ;;  %v1707_v27 = vld [vmem:[%s1910_s24 + $0xa0] ss:$8 sps:$4 sm:$0xff]   ;;  %v1710_v29 = vld [vmem:[%s1910_s24 + $0xb4] ss:$8 sps:$4 sm:$0xff]  }
  0x1a   : > { %1463 = vmatpush3.bf16.msra.mxu0 %v1679_v5  ;;  %1580 = vmatpush3.bf16.msra.mxu1 %v1679_v5  ;;  %v1712_v30 = vld [vmem:[%s1910_s24 + $0x30] ss:$8 sps:$4 sm:$0xff]   ;;  %v1714_v32 = vld [vmem:[%s1910_s24 + $0x44] ss:$8 sps:$4 sm:$0xff]   ;;  %v1718_v34 = vld [vmem:[%s1910_s24 + $0x40] ss:$8 sps:$4 sm:$0xff]  }
  0x1b   : > { %1464 = vmatprep.subr.bf16.mxu0 %v1680_v6  ;;  %1573 = vmatprep.subr.bf16.mxu1 %v1680_v6  ;;  %v1713_v31 = vld [vmem:[%s1910_s24 + $0xb0] ss:$8 sps:$4 sm:$0xff]   ;;  %v1716_v33 = vld [vmem:[%s1910_s24 + $0xc4] ss:$8 sps:$4 sm:$0xff]   ;;  %v1719_v35 = vld [vmem:[%s1910_s24 + $0xc0] ss:$8 sps:$4 sm:$0xff]  }
  0x1c   : > { %v1720_v36 = vld [vmem:[%s1910_s24 + $0x54] ss:$8 sps:$4 sm:$0xff]   ;;  %v1724_v38 = vld [vmem:[%s1910_s24 + $0x50] ss:$8 sps:$4 sm:$0xff]   ;;  %v1726_v40 = vld [vmem:[%s1910_s24 + $0x64] ss:$8 sps:$4 sm:$0xff]  }
  0x1d   : > { %v1722_v37 = vld [vmem:[%s1910_s24 + $0xd4] ss:$8 sps:$4 sm:$0xff]   ;;  %v1725_v39 = vld [vmem:[%s1910_s24 + $0xd0] ss:$8 sps:$4 sm:$0xff]   ;;  %v1728_v41 = vld [vmem:[%s1910_s24 + $0xe4] ss:$8 sps:$4 sm:$0xff]  }
  0x1e   : > { %1465 = vmatpush3.bf16.msra.mxu0 %v1681_v7  ;;  %1581 = vmatpush3.bf16.msra.mxu1 %v1681_v7  ;;  %v1730_v42 = vld [vmem:[%s1910_s24 + $0x60] ss:$8 sps:$4 sm:$0xff]   ;;  %v1732_v44 = vld [vmem:[%s1910_s24 + $0x74] ss:$8 sps:$4 sm:$0xff]   ;;  %v1736_v46 = vld [vmem:[%s1910_s24 + $0x70] ss:$8 sps:$4 sm:$0xff]  }
  0x1f   : > { %1466 = vmatprep.subr.bf16.mxu0 %v1682_v8  ;;  %1574 = vmatprep.subr.bf16.mxu1 %v1682_v8  ;;  %v1731_v43 = vld [vmem:[%s1910_s24 + $0xe0] ss:$8 sps:$4 sm:$0xff]   ;;  %v1734_v45 = vld [vmem:[%s1910_s24 + $0xf4] ss:$8 sps:$4 sm:$0xff]   ;;  %v1737_v47 = vld [vmem:[%s1910_s24 + $0xf0] ss:$8 sps:$4 sm:$0xff]  }
  0x20   : > { %v1968_v52 = vld [vmem:[%s2158_s2] ss:$0 sm:$0xff]  ;;  %s1360_s24 = sshll.u32 (%p1871_p4), %s1859_s15, 7 }
  0x21   : > { %s2028_s27 = scalar_lea.vmem (%p1871_p4), %s2159_s3, %s1360_s24  }
  0x22   : > { %1467 = vmatpush3.bf16.msra.mxu0 %v1683_v9  ;;  %1582 = vmatpush3.bf16.msra.mxu1 %v1683_v9 }
  0x23   : > { %1468 = vmatprep.subr.bf16.mxu0 %v1684_v10  ;;  %1575 = vmatprep.subr.bf16.mxu1 %v1684_v10 }
  0x26   : > { %1469 = vmatpush3.bf16.msra.mxu0 %v1685_v13  ;;  %1583 = vmatpush3.bf16.msra.mxu1 %v1685_v13 }
  0x27   : > { %1470 = vmatprep.subr.bf16.mxu0 %v1686_v14  ;;  %1576 = vmatprep.subr.bf16.mxu1 %v1686_v14 }
  0x2a   : > { %1471 = vmatpush3.bf16.msra.mxu0 %v1687_v15  ;;  %1584 = vmatpush3.bf16.msra.mxu1 %v1687_v15 }
  0x2b   : > { %1472 = vmatprep.subr.bf16.mxu0 %v1688_v16  ;;  %1577 = vmatprep.subr.bf16.mxu1 %v1688_v16 }
  0x2e   : > { %1473 = vmatpush3.bf16.msra.mxu0 %v1689_v17  ;;  %1585 = vmatpush3.bf16.msra.mxu1 %v1689_v17 }
  0x31   : > { %561 = vmatmul.mubr.bf16.vlgmr.msra.gmra.mxu0 %v1690_v18  ;;  %625 = vmatmul.mubr.bf16.vlgmr.msra.gmra.mxu1 %v1693_v19 }
  0x32   : > { %568 = vmatprep.mubr.bf16.mxu0 %v1696_v20  ;;  %632 = vmatprep.mubr.bf16.mxu1 %v1698_v21 }
  0x39   : > { %569 = vmatmul.mubr.bf16.gmra.mxu0 %v1700_v22  ;;  %633 = vmatmul.mubr.bf16.gmra.mxu1 %v1701_v23 }
  0x3a   : > { %576 = vmatprep.mubr.bf16.mxu0 %v1702_v24  ;;  %640 = vmatprep.mubr.bf16.mxu1 %v1704_v25 }
  0x41   : > { %577 = vmatmul.mubr.bf16.gmra.mxu0 %v1706_v26  ;;  %641 = vmatmul.mubr.bf16.gmra.mxu1 %v1707_v27 }
  0x42   : > { %584 = vmatprep.mubr.bf16.mxu0 %v1708_v28  ;;  %648 = vmatprep.mubr.bf16.mxu1 %v1710_v29 }
  0x49   : > { %585 = vmatmul.mubr.bf16.gmra.mxu0 %v1712_v30  ;;  %649 = vmatmul.mubr.bf16.gmra.mxu1 %v1713_v31 }
  0x4a   : > { %592 = vmatprep.mubr.bf16.mxu0 %v1714_v32  ;;  %656 = vmatprep.mubr.bf16.mxu1 %v1716_v33 }
  0x51   : > { %593 = vmatmul.mubr.bf16.gmra.mxu0 %v1718_v34  ;;  %657 = vmatmul.mubr.bf16.gmra.mxu1 %v1719_v35 }
  0x52   : > { %600 = vmatprep.mubr.bf16.mxu0 %v1720_v36  ;;  %664 = vmatprep.mubr.bf16.mxu1 %v1722_v37 }
  0x59   : > { %601 = vmatmul.mubr.bf16.gmra.mxu0 %v1724_v38  ;;  %665 = vmatmul.mubr.bf16.gmra.mxu1 %v1725_v39 }
  0x5a   : > { %608 = vmatprep.mubr.bf16.mxu0 %v1726_v40  ;;  %672 = vmatprep.mubr.bf16.mxu1 %v1728_v41 }
  0x61   : > { %609 = vmatmul.mubr.bf16.gmra.mxu0 %v1730_v42  ;;  %673 = vmatmul.mubr.bf16.gmra.mxu1 %v1731_v43 }
  0x62   : > { %616 = vmatprep.mubr.bf16.mxu0 %v1732_v44  ;;  %680 = vmatprep.mubr.bf16.mxu1 %v1734_v45 }
  0x69   : > { %617 = vmatmul.mubr.bf16.gmra.mxu0 %v1736_v46  ;;  %681 = vmatmul.mubr.bf16.gmra.mxu1 %v1737_v47 }
  0xf1   : > { %v1474_v48 = vpop.f32.mrf.mxu0  ;;  %v1522_v49 = vpop.f32.mrf.mxu1 }
  0xf3   : > { %v1475_v50 = vpop.f32.mrf.mxu0  ;;  %v1523_v51 = vpop.f32.mrf.mxu1 }
  0xf4   : > { %v1476_v53 = vadd.f32 %v1475_v50, %v1474_v48  ;;  %v1524_v54 = vadd.f32 %v1523_v51, %v1522_v49 }
  0xf5   : > { %v1477_v55 = vpop.f32.mrf.mxu0  ;;  %v1525_v56 = vpop.f32.mrf.mxu1 }
  0xf6   : > { %v563_v57 = vadd.f32 %v1476_v53, %v1968_v52  ;;  %v627_v58 = vadd.f32 %v1524_v54, %v1968_v52 }
  0xf7   : > { %v1478_v59 = vpop.f32.mrf.mxu0  ;;  %v1526_v60 = vpop.f32.mrf.mxu1 }
  0xf8   : > { %v1479_v61 = vadd.f32 %v1478_v59, %v1477_v55  ;;  %v1527_v62 = vadd.f32 %v1526_v60, %v1525_v56  ;;  %v689_v3 = vmax.f32 %v563_v57, 0.0  ;;  %v705_v4 = vmax.f32 %v627_v58, 0.0 }
  0xf9   : > { %v1480_v63 = vpop.f32.mrf.mxu0  ;;  %v1528_v0 = vpop.f32.mrf.mxu1 }
  0xfa   : > { %v566_v1 = vadd.f32 %v1479_v61, %v1968_v52  ;;  %v630_v2 = vadd.f32 %v1527_v62, %v1968_v52 }
  0xfb   : > { %v1481_v5 = vpop.f32.mrf.mxu0  ;;  %v1529_v6 = vpop.f32.mrf.mxu1 }
  0xfc   : > { %v690_v7 = vmax.f32 %v566_v1, 0.0  ;;  %v706_v8 = vmax.f32 %v630_v2, 0.0  ;;  %v1482_v9 = vadd.f32 %v1481_v5, %v1480_v63  ;;  %v1530_v10 = vadd.f32 %v1529_v6, %v1528_v0 }
  0xfd   : > { %v1483_v11 = vpop.f32.mrf.mxu0  ;;  %v1531_v12 = vpop.f32.mrf.mxu1 }
  0xfe   : > { %v1366_v13 = vpack.c.bf16 %v690_v7, %v689_v3  ;;  %v1406_v14 = vpack.c.bf16 %v706_v8, %v705_v4  ;;  %v571_v15 = vadd.f32 %v1482_v9, %v1968_v52  ;;  %v635_v16 = vadd.f32 %v1530_v10, %v1968_v52 }
  0xff   : > { %v1484_v17 = vpop.f32.mrf.mxu0  ;;  %v1532_v18 = vpop.f32.mrf.mxu1 }
 0x100   : > { %1367 = vst [vmem:[%s1977_s12] sm:$0xff] %v1366_v13   ;;  %1450 = vst [vmem:[%s1977_s12 + $0x40] sm:$0xff] %v1406_v14   ;;  %v1485_v19 = vadd.f32 %v1484_v17, %v1483_v11  ;;  %v1533_v20 = vadd.f32 %v1532_v18, %v1531_v12  ;;  %v691_v25 = vmax.f32 %v571_v15, 0.0  ;;  %v707_v26 = vmax.f32 %v635_v16, 0.0 }
 0x101   : > { %v1486_v21 = vpop.f32.mrf.mxu0  ;;  %v1534_v22 = vpop.f32.mrf.mxu1 }
 0x102   : > { %v574_v23 = vadd.f32 %v1485_v19, %v1968_v52  ;;  %v638_v24 = vadd.f32 %v1533_v20, %v1968_v52 }
 0x103   : > { %v1487_v27 = vpop.f32.mrf.mxu0  ;;  %v1535_v28 = vpop.f32.mrf.mxu1 }
 0x104   : > { %v692_v29 = vmax.f32 %v574_v23, 0.0  ;;  %v708_v30 = vmax.f32 %v638_v24, 0.0  ;;  %v1488_v31 = vadd.f32 %v1487_v27, %v1486_v21  ;;  %v1536_v32 = vadd.f32 %v1535_v28, %v1534_v22 }
 0x105   : > { %v1489_v33 = vpop.f32.mrf.mxu0  ;;  %v1537_v34 = vpop.f32.mrf.mxu1 }
 0x106   : > { %v1371_v35 = vpack.c.bf16 %v692_v29, %v691_v25  ;;  %v1411_v36 = vpack.c.bf16 %v708_v30, %v707_v26  ;;  %v579_v37 = vadd.f32 %v1488_v31, %v1968_v52  ;;  %v643_v38 = vadd.f32 %v1536_v32, %v1968_v52 }
 0x107   : > { %v1490_v39 = vpop.f32.mrf.mxu0  ;;  %v1538_v40 = vpop.f32.mrf.mxu1 }
 0x108   : > { %1443 = vst [vmem:[%s1977_s12 + $0x8] sm:$0xff] %v1371_v35   ;;  %1451 = vst [vmem:[%s1977_s12 + $0x48] sm:$0xff] %v1411_v36   ;;  %v1491_v41 = vadd.f32 %v1490_v39, %v1489_v33  ;;  %v1539_v42 = vadd.f32 %v1538_v40, %v1537_v34  ;;  %v693_v47 = vmax.f32 %v579_v37, 0.0  ;;  %v709_v48 = vmax.f32 %v643_v38, 0.0 }
 0x109   : > { %v1492_v43 = vpop.f32.mrf.mxu0  ;;  %v1540_v44 = vpop.f32.mrf.mxu1 }
 0x10a   : > { %v582_v45 = vadd.f32 %v1491_v41, %v1968_v52  ;;  %v646_v46 = vadd.f32 %v1539_v42, %v1968_v52 }
 0x10b   : > { %v1493_v49 = vpop.f32.mrf.mxu0  ;;  %v1541_v50 = vpop.f32.mrf.mxu1 }
 0x10c   : > { %v694_v51 = vmax.f32 %v582_v45, 0.0  ;;  %v710_v53 = vmax.f32 %v646_v46, 0.0  ;;  %v1494_v54 = vadd.f32 %v1493_v49, %v1492_v43  ;;  %v1542_v55 = vadd.f32 %v1541_v50, %v1540_v44 }
 0x10d   : > { %v1495_v56 = vpop.f32.mrf.mxu0  ;;  %v1543_v57 = vpop.f32.mrf.mxu1 }
 0x10e   : > { %v1376_v58 = vpack.c.bf16 %v694_v51, %v693_v47  ;;  %v1416_v59 = vpack.c.bf16 %v710_v53, %v709_v48  ;;  %v587_v60 = vadd.f32 %v1494_v54, %v1968_v52  ;;  %v651_v61 = vadd.f32 %v1542_v55, %v1968_v52 }
 0x10f   : > { %v1496_v62 = vpop.f32.mrf.mxu0  ;;  %v1544_v63 = vpop.f32.mrf.mxu1 }
 0x110   : > { %1444 = vst [vmem:[%s1977_s12 + $0x10] sm:$0xff] %v1376_v58   ;;  %1452 = vst [vmem:[%s1977_s12 + $0x50] sm:$0xff] %v1416_v59   ;;  %v1497_v0 = vadd.f32 %v1496_v62, %v1495_v56  ;;  %v1545_v1 = vadd.f32 %v1544_v63, %v1543_v57  ;;  %v695_v6 = vmax.f32 %v587_v60, 0.0  ;;  %v711_v7 = vmax.f32 %v651_v61, 0.0 }
 0x111   : > { %v1498_v2 = vpop.f32.mrf.mxu0  ;;  %v1546_v3 = vpop.f32.mrf.mxu1 }
 0x112   : > { %v590_v4 = vadd.f32 %v1497_v0, %v1968_v52  ;;  %v654_v5 = vadd.f32 %v1545_v1, %v1968_v52 }
 0x113   : > { %v1499_v8 = vpop.f32.mrf.mxu0  ;;  %v1547_v9 = vpop.f32.mrf.mxu1 }
 0x114   : > { %v696_v10 = vmax.f32 %v590_v4, 0.0  ;;  %v712_v11 = vmax.f32 %v654_v5, 0.0  ;;  %v1500_v12 = vadd.f32 %v1499_v8, %v1498_v2  ;;  %v1548_v13 = vadd.f32 %v1547_v9, %v1546_v3 }
 0x115   : > { %v1501_v14 = vpop.f32.mrf.mxu0  ;;  %v1549_v15 = vpop.f32.mrf.mxu1 }
 0x116   : > { %v1381_v16 = vpack.c.bf16 %v696_v10, %v695_v6  ;;  %v1421_v17 = vpack.c.bf16 %v712_v11, %v711_v7  ;;  %v595_v18 = vadd.f32 %v1500_v12, %v1968_v52  ;;  %v659_v19 = vadd.f32 %v1548_v13, %v1968_v52 }
 0x117   : > { %v1502_v20 = vpop.f32.mrf.mxu0  ;;  %v1550_v21 = vpop.f32.mrf.mxu1 }
 0x118   : > { %1445 = vst [vmem:[%s1977_s12 + $0x18] sm:$0xff] %v1381_v16   ;;  %1453 = vst [vmem:[%s1977_s12 + $0x58] sm:$0xff] %v1421_v17   ;;  %v1503_v22 = vadd.f32 %v1502_v20, %v1501_v14  ;;  %v1551_v23 = vadd.f32 %v1550_v21, %v1549_v15  ;;  %v697_v28 = vmax.f32 %v595_v18, 0.0  ;;  %v713_v29 = vmax.f32 %v659_v19, 0.0 }
 0x119   : > { %v1504_v24 = vpop.f32.mrf.mxu0  ;;  %v1552_v25 = vpop.f32.mrf.mxu1 }
 0x11a   : > { %v598_v26 = vadd.f32 %v1503_v22, %v1968_v52  ;;  %v662_v27 = vadd.f32 %v1551_v23, %v1968_v52 }
 0x11b   : > { %v1505_v30 = vpop.f32.mrf.mxu0  ;;  %v1553_v31 = vpop.f32.mrf.mxu1 }
 0x11c   : > { %v698_v32 = vmax.f32 %v598_v26, 0.0  ;;  %v714_v33 = vmax.f32 %v662_v27, 0.0  ;;  %v1506_v34 = vadd.f32 %v1505_v30, %v1504_v24  ;;  %v1554_v35 = vadd.f32 %v1553_v31, %v1552_v25 }
 0x11d   : > { %v1507_v36 = vpop.f32.mrf.mxu0  ;;  %v1555_v37 = vpop.f32.mrf.mxu1 }
 0x11e   : > { %v1386_v38 = vpack.c.bf16 %v698_v32, %v697_v28  ;;  %v1426_v39 = vpack.c.bf16 %v714_v33, %v713_v29  ;;  %v603_v40 = vadd.f32 %v1506_v34, %v1968_v52  ;;  %v667_v41 = vadd.f32 %v1554_v35, %v1968_v52 }
 0x11f   : > { %v1508_v42 = vpop.f32.mrf.mxu0  ;;  %v1556_v43 = vpop.f32.mrf.mxu1 }
 0x120   : > { %1446 = vst [vmem:[%s1977_s12 + $0x20] sm:$0xff] %v1386_v38   ;;  %1454 = vst [vmem:[%s1977_s12 + $0x60] sm:$0xff] %v1426_v39   ;;  %v1509_v44 = vadd.f32 %v1508_v42, %v1507_v36  ;;  %v1557_v45 = vadd.f32 %v1556_v43, %v1555_v37  ;;  %v699_v50 = vmax.f32 %v603_v40, 0.0  ;;  %v715_v51 = vmax.f32 %v667_v41, 0.0 }
 0x121   : > { %v1510_v46 = vpop.f32.mrf.mxu0  ;;  %v1558_v47 = vpop.f32.mrf.mxu1 }
 0x122   : > { %v606_v48 = vadd.f32 %v1509_v44, %v1968_v52  ;;  %v670_v49 = vadd.f32 %v1557_v45, %v1968_v52 }
 0x123   : > { %v1511_v53 = vpop.f32.mrf.mxu0  ;;  %v1559_v54 = vpop.f32.mrf.mxu1 }
 0x124   : > { %v700_v55 = vmax.f32 %v606_v48, 0.0  ;;  %v716_v56 = vmax.f32 %v670_v49, 0.0  ;;  %v1512_v57 = vadd.f32 %v1511_v53, %v1510_v46  ;;  %v1560_v58 = vadd.f32 %v1559_v54, %v1558_v47 }
 0x125   : > { %v1513_v59 = vpop.f32.mrf.mxu0  ;;  %v1561_v60 = vpop.f32.mrf.mxu1 }
 0x126   : > { %v1391_v61 = vpack.c.bf16 %v700_v55, %v699_v50  ;;  %v1431_v62 = vpack.c.bf16 %v716_v56, %v715_v51  ;;  %v611_v63 = vadd.f32 %v1512_v57, %v1968_v52  ;;  %v675_v0 = vadd.f32 %v1560_v58, %v1968_v52 }
 0x127   : > { %v1514_v1 = vpop.f32.mrf.mxu0  ;;  %v1562_v2 = vpop.f32.mrf.mxu1 }
 0x128   : > { %1447 = vst [vmem:[%s1977_s12 + $0x28] sm:$0xff] %v1391_v61   ;;  %1455 = vst [vmem:[%s1977_s12 + $0x68] sm:$0xff] %v1431_v62   ;;  %v1515_v3 = vadd.f32 %v1514_v1, %v1513_v59  ;;  %v1563_v4 = vadd.f32 %v1562_v2, %v1561_v60  ;;  %v701_v9 = vmax.f32 %v611_v63, 0.0  ;;  %v717_v10 = vmax.f32 %v675_v0, 0.0 }
 0x129   : > { %v1516_v5 = vpop.f32.mrf.mxu0  ;;  %v1564_v6 = vpop.f32.mrf.mxu1 }
 0x12a   : > { %v614_v7 = vadd.f32 %v1515_v3, %v1968_v52  ;;  %v678_v8 = vadd.f32 %v1563_v4, %v1968_v52 }
 0x12b   : > { %v1517_v11 = vpop.f32.mrf.mxu0  ;;  %v1565_v12 = vpop.f32.mrf.mxu1 }
 0x12c   : > { %v702_v13 = vmax.f32 %v614_v7, 0.0  ;;  %v718_v14 = vmax.f32 %v678_v8, 0.0  ;;  %v1518_v15 = vadd.f32 %v1517_v11, %v1516_v5  ;;  %v1566_v16 = vadd.f32 %v1565_v12, %v1564_v6 }
 0x12d   : > { %v1519_v17 = vpop.f32.mrf.mxu0  ;;  %v1567_v18 = vpop.f32.mrf.mxu1 }
 0x12e   : > { %v1396_v19 = vpack.c.bf16 %v702_v13, %v701_v9  ;;  %v1436_v20 = vpack.c.bf16 %v718_v14, %v717_v10  ;;  %v619_v23 = vadd.f32 %v1518_v15, %v1968_v52  ;;  %v683_v24 = vadd.f32 %v1566_v16, %v1968_v52 }
 0x12f   : > { %v1520_v21 = vpop.f32.mrf.mxu0  ;;  %v1568_v22 = vpop.f32.mrf.mxu1 }
 0x130   : > { %1448 = vst [vmem:[%s1977_s12 + $0x30] sm:$0xff] %v1396_v19   ;;  %1456 = vst [vmem:[%s1977_s12 + $0x70] sm:$0xff] %v1436_v20   ;;  %v1521_v25 = vadd.f32 %v1520_v21, %v1519_v17  ;;  %v1569_v26 = vadd.f32 %v1568_v22, %v1567_v18  ;;  %v703_v29 = vmax.f32 %v619_v23, 0.0  ;;  %v719_v30 = vmax.f32 %v683_v24, 0.0 }
 0x132   : > { %v622_v27 = vadd.f32 %v1521_v25, %v1968_v52  ;;  %v686_v28 = vadd.f32 %v1569_v26, %v1968_v52 }
 0x134   : > { %v704_v31 = vmax.f32 %v622_v27, 0.0  ;;  %v720_v32 = vmax.f32 %v686_v28, 0.0  ;;  %887 = sbr.rel (!%p1871_p4) target bundleno = 373 (0x175), region = 36 }
 0x136   : > { %v1401_v33 = vpack.c.bf16 %v704_v31, %v703_v29  ;;  %v1441_v34 = vpack.c.bf16 %v720_v32, %v719_v30 }
 0x138   : > { %1449 = vst [vmem:[%s1977_s12 + $0x38] sm:$0xff] %v1401_v33   ;;  %1457 = vst [vmem:[%s1977_s12 + $0x78] sm:$0xff] %v1441_v34  }
 0x139   : > { %s2168_s22 = smov (!%p890_p8, %s889_s22), 32 }
 0x13a   : > { %s1312_s28 = sshll.u32 %s2168_s22, 6 }
 0x13b   : > { %p1315_p9 = scmp.eq.s32.totalorder %s1312_s28, 0 }
 0x13c   : > { %s2034_s29 = sshrl.u32 (!%p1315_p9), %s2168_s22, 5 }
 0x13d   : > { %898 = sbr.rel (%p1315_p9) target bundleno = 373 (0x175), region = 40  ;;  %p1316_p10 = scmp.le.s32.totalorder (!%p1315_p9), %s2034_s29, 0 }
 0x142   : > { %1177 = sbr.rel (%p1316_p10) target bundleno = 356 (0x164), region = 112  ;;  %s2161_s15 = smov (!%p1316_p10), %s2028_s27 }
 0x143   : > { %s2162_s20 = smov (!%p1316_p10), %s1977_s12  ;;  %s2043_s23 = smov (!%p1316_p10), 0  }
 0x144   : > { %s2045_s30 = smov (!%p1316_p10), 0  }
 0x147 LB: >> { %v915_v52 = vld [vmem:[%s1800_s20] sm:$0xf]  ;;  %v917_v35 = vld [vmem:[%s1800_s20 + $0x4] sm:$0xf]  ;;  %v919_v36 = vld [vmem:[%s1800_s20 + $0x8] sm:$0xf]  ;;  %s1808_s30 = sphi %s2045_s30, %s909_s30   ;;  %s1804_s23 = sphi %s2043_s23, %s2163_s23   ;;  %s1800_s20 = sphi %s2162_s20, %s984_s20   ;;  %s1796_s15 = sphi %s2161_s15, %s985_s15  }
 0x148   : >> { %916 = vst [vmem:[%s1796_s15] sm:$0xf] %v915_v52  ;;  %918 = vst [vmem:[%s1796_s15 + $0x4] sm:$0xf] %v917_v35  ;;  %v921_v37 = vld [vmem:[%s1800_s20 + $0xc] sm:$0xf]  ;;  %s979_s4 = sadd.s32 1, %s1804_s23 }
 0x149   : >> { %920 = vst [vmem:[%s1796_s15 + $0x8] sm:$0xf] %v919_v36  ;;  %v923_v38 = vld [vmem:[%s1800_s20 + $0x10] sm:$0xf]  ;;  %v925_v39 = vld [vmem:[%s1800_s20 + $0x14] sm:$0xf]  ;;  %p980_p11 = scmp.ge.s32.totalorder %s979_s4, %s2034_s29 }
 0x14a   : >> { %922 = vst [vmem:[%s1796_s15 + $0xc] sm:$0xf] %v921_v37  ;;  %924 = vst [vmem:[%s1796_s15 + $0x10] sm:$0xf] %v923_v38  ;;  %v927_v40 = vld [vmem:[%s1800_s20 + $0x18] sm:$0xf] }
 0x14b   : >> { %926 = vst [vmem:[%s1796_s15 + $0x14] sm:$0xf] %v925_v39  ;;  %v929_v41 = vld [vmem:[%s1800_s20 + $0x1c] sm:$0xf]  ;;  %v931_v42 = vld [vmem:[%s1800_s20 + $0x20] sm:$0xf] }
 0x14c   : >> { %928 = vst [vmem:[%s1796_s15 + $0x18] sm:$0xf] %v927_v40  ;;  %930 = vst [vmem:[%s1796_s15 + $0x1c] sm:$0xf] %v929_v41  ;;  %v933_v43 = vld [vmem:[%s1800_s20 + $0x24] sm:$0xf] }
 0x14d   : >> { %932 = vst [vmem:[%s1796_s15 + $0x20] sm:$0xf] %v931_v42  ;;  %v935_v44 = vld [vmem:[%s1800_s20 + $0x28] sm:$0xf]  ;;  %v937_v45 = vld [vmem:[%s1800_s20 + $0x2c] sm:$0xf] }
 0x14e   : >> { %934 = vst [vmem:[%s1796_s15 + $0x24] sm:$0xf] %v933_v43  ;;  %936 = vst [vmem:[%s1796_s15 + $0x28] sm:$0xf] %v935_v44  ;;  %v939_v46 = vld [vmem:[%s1800_s20 + $0x30] sm:$0xf] }
 0x14f   : >> { %938 = vst [vmem:[%s1796_s15 + $0x2c] sm:$0xf] %v937_v45  ;;  %v941_v47 = vld [vmem:[%s1800_s20 + $0x34] sm:$0xf]  ;;  %v943_v48 = vld [vmem:[%s1800_s20 + $0x38] sm:$0xf] }
 0x150   : >> { %940 = vst [vmem:[%s1796_s15 + $0x30] sm:$0xf] %v939_v46  ;;  %942 = vst [vmem:[%s1796_s15 + $0x34] sm:$0xf] %v941_v47  ;;  %v945_v49 = vld [vmem:[%s1800_s20 + $0x3c] sm:$0xf] }
 0x151   : >> { %944 = vst [vmem:[%s1796_s15 + $0x38] sm:$0xf] %v943_v48  ;;  %v947_v50 = vld [vmem:[%s1800_s20 + $0x40] sm:$0xf]  ;;  %v949_v51 = vld [vmem:[%s1800_s20 + $0x44] sm:$0xf] }
 0x152   : >> { %946 = vst [vmem:[%s1796_s15 + $0x3c] sm:$0xf] %v945_v49  ;;  %948 = vst [vmem:[%s1796_s15 + $0x40] sm:$0xf] %v947_v50  ;;  %v951_v53 = vld [vmem:[%s1800_s20 + $0x48] sm:$0xf] }
 0x153   : >> { %950 = vst [vmem:[%s1796_s15 + $0x44] sm:$0xf] %v949_v51  ;;  %v953_v54 = vld [vmem:[%s1800_s20 + $0x4c] sm:$0xf]  ;;  %v955_v55 = vld [vmem:[%s1800_s20 + $0x50] sm:$0xf] }
 0x154   : >> { %952 = vst [vmem:[%s1796_s15 + $0x48] sm:$0xf] %v951_v53  ;;  %954 = vst [vmem:[%s1796_s15 + $0x4c] sm:$0xf] %v953_v54  ;;  %v957_v56 = vld [vmem:[%s1800_s20 + $0x54] sm:$0xf] }
 0x155   : >> { %956 = vst [vmem:[%s1796_s15 + $0x50] sm:$0xf] %v955_v55  ;;  %v959_v57 = vld [vmem:[%s1800_s20 + $0x58] sm:$0xf]  ;;  %v961_v58 = vld [vmem:[%s1800_s20 + $0x5c] sm:$0xf] }
 0x156   : >> { %958 = vst [vmem:[%s1796_s15 + $0x54] sm:$0xf] %v957_v56  ;;  %960 = vst [vmem:[%s1796_s15 + $0x58] sm:$0xf] %v959_v57  ;;  %v963_v59 = vld [vmem:[%s1800_s20 + $0x60] sm:$0xf] }
 0x157   : >> { %962 = vst [vmem:[%s1796_s15 + $0x5c] sm:$0xf] %v961_v58  ;;  %v965_v60 = vld [vmem:[%s1800_s20 + $0x64] sm:$0xf]  ;;  %v967_v61 = vld [vmem:[%s1800_s20 + $0x68] sm:$0xf] }
 0x158   : >> { %964 = vst [vmem:[%s1796_s15 + $0x60] sm:$0xf] %v963_v59  ;;  %966 = vst [vmem:[%s1796_s15 + $0x64] sm:$0xf] %v965_v60  ;;  %v969_v62 = vld [vmem:[%s1800_s20 + $0x6c] sm:$0xf] }
 0x159   : >> { %968 = vst [vmem:[%s1796_s15 + $0x68] sm:$0xf] %v967_v61  ;;  %v971_v63 = vld [vmem:[%s1800_s20 + $0x70] sm:$0xf]  ;;  %v973_v0 = vld [vmem:[%s1800_s20 + $0x74] sm:$0xf] }
 0x15a   : >> { %970 = vst [vmem:[%s1796_s15 + $0x6c] sm:$0xf] %v969_v62  ;;  %972 = vst [vmem:[%s1796_s15 + $0x70] sm:$0xf] %v971_v63  ;;  %v975_v1 = vld [vmem:[%s1800_s20 + $0x78] sm:$0xf] }
 0x15b   : >> { %974 = vst [vmem:[%s1796_s15 + $0x74] sm:$0xf] %v973_v0  ;;  %v977_v2 = vld [vmem:[%s1800_s20 + $0x7c] sm:$0xf]  ;;  %976 = vst [vmem:[%s1796_s15 + $0x78] sm:$0xf] %v975_v1 }
 0x15c   : >> { %978 = vst [vmem:[%s1796_s15 + $0x7c] sm:$0xf] %v977_v2  ;;  %s2170_s4 = smov (%p980_p11, %s979_s4), 0  ;;  %s909_s30 = sadd.s32 1, %s1808_s30  }
 0x15d   : >> { %s1317_s5 = sshll.u32 %s2170_s4, 7  ;;  %p908_p12 = scmp.ge.s32.totalorder %s909_s30, %s2034_s29 }
 0x15e   : >> { %s984_s20 = scalar_lea.vmem %s1977_s12, %s1317_s5 [#allocation2]   ;;  %s985_s15 = scalar_lea.vmem %s2028_s27, %s1317_s5  }
 0x15f   : >> { %s2163_s23 = smov %s2170_s4  ;;  %911 = sbr.rel (!%p908_p12) target bundleno = 327 (0x147), region = 118 }
 0x164 PF: > { %s2138_s6 = sand.u32 31, %s2168_s22   ;;  %s1361_s7 = sshll.u32 %s2034_s29, 7 }
 0x165   : > { %s990_s8 = scalar_lea.vmem %s1977_s12, %s1361_s7 [#allocation2]   ;;  %s992_s9 = scalar_lea.vmem %s2028_s27, %s1361_s7  }
 0x166   : > { %p1322_p13 = scmp.le.s32.totalorder %s2138_s6, 0 }
 0x167   : > { %s1810_s10 = smov (!%p1322_p13), %s992_s9   ;;  %s1814_s11 = smov (!%p1322_p13), %s990_s8  }
 0x168   : > { %1191 = sbr.rel (%p1322_p13) target bundleno = 373 (0x175), region = 123  ;;  %s1818_s14 = smov (!%p1322_p13), 0  }
 0x169   : > { %s1822_s17 = smov (!%p1322_p13), 0  }
 0x16d LB: >> { %v1002_v3 = vld [vmem:[%s1816_s11] sm:$0xf]  ;;  %s1004_s18 = sadd.s32 1, %s1820_s14  ;;  %s996_s17 = sadd.s32 1, %s1824_s17   ;;  %s1824_s17 = sphi %s1822_s17, %s996_s17   ;;  %s1820_s14 = sphi %s1818_s14, %s1819_s14   ;;  %s1816_s11 = sphi %s1814_s11, %s1009_s11   ;;  %s1812_s10 = sphi %s1810_s10, %s1010_s10  }
 0x16e   : >> { %1003 = vst [vmem:[%s1812_s10] sm:$0xf] %v1002_v3  ;;  %p1005_p0 = scmp.ge.s32.totalorder %s1004_s18, %s2138_s6  ;;  %p995_p1 = scmp.ge.s32.totalorder %s996_s17, %s2138_s6 }
 0x170   : >> { %s2172_s18 = smov (%p1005_p0, %s1004_s18), 0  ;;  %998 = sbr.rel (!%p995_p1) target bundleno = 365 (0x16d), region = 129 }
 0x171   : >> { %s1323_s21 = sshll.u32 %s2172_s18, 2  ;;  %s1819_s14 = smov %s2172_s18  }
 0x172   : >> { %s1009_s11 = scalar_lea.vmem %s990_s8, %s1323_s21 [#allocation2]   ;;  %s1010_s10 = scalar_lea.vmem %s992_s9, %s1323_s21  }
 0x175 PF: > { %p10_p2 = scmp.ge.s32.totalorder %s1861_s16, 4   ;;  %s2164_s12 = smov %s1788_s13 }
 0x176   : > { %s2165_s13 = smov %s1869_s19  ;;  %s2166_s14 = smov %s1861_s16 }
 0x177   :  { %12 = sbr.rel (!%p10_p2) target bundleno = 2 (0x2), region = 140 }

// kernel: cnn_model_forward.5
= control target key start
LH: loop header
LB: loop body
LE: loop exit
PB: predicated region body
PF: predicated region fallthrough
CT: control target
= control target key end

     0   :  { %s4756_s1 = inlined_call_operand.vmem [shape: bf16[2048,256], index: 1, kind: input, shape index: {}]   ;;  %s4757_s0 = inlined_call_operand.vmem [shape: bf16[72,2048], index: 0, kind: input, shape index: {}]   ;;  %s4758_s2 = inlined_call_operand.vmem [shape: f32[1,256], index: 2, kind: input, shape index: {}]   ;;  %s4759_s3 = inlined_call_operand.vmem [shape: bf16[72,256], index: 3, kind: output, shape index: {}]  }
   0x1   :  { %v3099_v0 = vld [vmem:[%s4756_s1 + $0x74] ss:$8 sps:$4 sm:$0xff]   ;;  %v3103_v2 = vld [vmem:[%s4756_s1 + $0x70] ss:$8 sps:$4 sm:$0xff]   ;;  %v3105_v4 = vld [vmem:[%s4756_s1 + $0x64] ss:$8 sps:$4 sm:$0xff]  }
   0x2   :  { %v3101_v1 = vld [vmem:[%s4756_s1 + $0x174] ss:$8 sps:$4 sm:$0xff]   ;;  %2010 = vmatprep.subr.bf16.mxu0 %v3099_v0  ;;  %v3104_v3 = vld [vmem:[%s4756_s1 + $0x170] ss:$8 sps:$4 sm:$0xff]   ;;  %v3107_v5 = vld [vmem:[%s4756_s1 + $0x164] ss:$8 sps:$4 sm:$0xff]  }
   0x3   :  { %2091 = vmatprep.subr.bf16.mxu1 %v3101_v1  ;;  %2011 = vmatpush1.bf16.msra.mxu0 %v3103_v2  ;;  %v3109_v6 = vld [vmem:[%s4756_s1 + $0x60] ss:$8 sps:$4 sm:$0xff]   ;;  %v3111_v8 = vld [vmem:[%s4756_s1 + $0x54] ss:$8 sps:$4 sm:$0xff]   ;;  %v3115_v10 = vld [vmem:[%s4756_s1 + $0x50] ss:$8 sps:$4 sm:$0xff]  }
   0x4   :  { %2092 = vmatpush1.bf16.msra.mxu1 %v3104_v3  ;;  %2012 = vmatprep.subr.bf16.mxu0 %v3105_v4  ;;  %v3110_v7 = vld [vmem:[%s4756_s1 + $0x160] ss:$8 sps:$4 sm:$0xff]   ;;  %v3113_v9 = vld [vmem:[%s4756_s1 + $0x154] ss:$8 sps:$4 sm:$0xff]   ;;  %v3116_v11 = vld [vmem:[%s4756_s1 + $0x150] ss:$8 sps:$4 sm:$0xff]  }
   0x5   :  { %2093 = vmatprep.subr.bf16.mxu1 %v3107_v5  ;;  %v3117_v12 = vld [vmem:[%s4756_s1 + $0x44] ss:$8 sps:$4 sm:$0xff]   ;;  %v3121_v14 = vld [vmem:[%s4756_s1 + $0x40] ss:$8 sps:$4 sm:$0xff]   ;;  %v3123_v16 = vld [vmem:[%s4756_s1 + $0x34] ss:$8 sps:$4 sm:$0xff]  }
   0x6   :  { %v3119_v13 = vld [vmem:[%s4756_s1 + $0x144] ss:$8 sps:$4 sm:$0xff]   ;;  %v3122_v15 = vld [vmem:[%s4756_s1 + $0x140] ss:$8 sps:$4 sm:$0xff]   ;;  %v3125_v17 = vld [vmem:[%s4756_s1 + $0x134] ss:$8 sps:$4 sm:$0xff]  }
   0x7   :  { %2013 = vmatpush1.bf16.msra.mxu0 %v3109_v6  ;;  %v3127_v18 = vld [vmem:[%s4756_s1 + $0x30] ss:$8 sps:$4 sm:$0xff]   ;;  %v3129_v20 = vld [vmem:[%s4756_s1 + $0x24] ss:$8 sps:$4 sm:$0xff]   ;;  %v3133_v22 = vld [vmem:[%s4756_s1 + $0x20] ss:$8 sps:$4 sm:$0xff]  }
   0x8   :  { %2094 = vmatpush1.bf16.msra.mxu1 %v3110_v7  ;;  %2014 = vmatprep.subr.bf16.mxu0 %v3111_v8  ;;  %v3128_v19 = vld [vmem:[%s4756_s1 + $0x130] ss:$8 sps:$4 sm:$0xff]   ;;  %v3131_v21 = vld [vmem:[%s4756_s1 + $0x124] ss:$8 sps:$4 sm:$0xff]   ;;  %v3134_v23 = vld [vmem:[%s4756_s1 + $0x120] ss:$8 sps:$4 sm:$0xff]  }
   0x9   :  { %2095 = vmatprep.subr.bf16.mxu1 %v3113_v9  ;;  %v3135_v24 = vld [vmem:[%s4756_s1 + $0x14] ss:$8 sps:$4 sm:$0xff]   ;;  %v3139_v26 = vld [vmem:[%s4756_s1 + $0x10] ss:$8 sps:$4 sm:$0xff]   ;;  %v3141_v28 = vld [vmem:[%s4756_s1 + $0x4] ss:$8 sps:$4 sm:$0xff]  }
   0xa   :  { %v3137_v25 = vld [vmem:[%s4756_s1 + $0x114] ss:$8 sps:$4 sm:$0xff]   ;;  %v3140_v27 = vld [vmem:[%s4756_s1 + $0x110] ss:$8 sps:$4 sm:$0xff]   ;;  %v3143_v29 = vld [vmem:[%s4756_s1 + $0x104] ss:$8 sps:$4 sm:$0xff]  }
   0xb   :  { %2015 = vmatpush1.bf16.msra.mxu0 %v3115_v10  ;;  %v3145_v30 = vld [vmem:[%s4756_s1] ss:$8 sps:$4 sm:$0xff]   ;;  %v3147_v32 = vld [vmem:[%s4756_s1 + $0xf4] ss:$8 sps:$4 sm:$0xff]   ;;  %v3151_v34 = vld [vmem:[%s4756_s1 + $0xf0] ss:$8 sps:$4 sm:$0xff]  }
   0xc   :  { %2096 = vmatpush1.bf16.msra.mxu1 %v3116_v11  ;;  %2016 = vmatprep.subr.bf16.mxu0 %v3117_v12  ;;  %v3146_v31 = vld [vmem:[%s4756_s1 + $0x100] ss:$8 sps:$4 sm:$0xff]   ;;  %v3149_v33 = vld [vmem:[%s4756_s1 + $0x1f4] ss:$8 sps:$4 sm:$0xff]   ;;  %v3152_v35 = vld [vmem:[%s4756_s1 + $0x1f0] ss:$8 sps:$4 sm:$0xff]  }
   0xd   :  { %2097 = vmatprep.subr.bf16.mxu1 %v3119_v13  ;;  %v3153_v36 = vld [vmem:[%s4756_s1 + $0xe4] ss:$8 sps:$4 sm:$0xff]   ;;  %v3157_v38 = vld [vmem:[%s4756_s1 + $0xe0] ss:$8 sps:$4 sm:$0xff]   ;;  %v3159_v40 = vld [vmem:[%s4756_s1 + $0xd4] ss:$8 sps:$4 sm:$0xff]  }
   0xe   :  { %v3155_v37 = vld [vmem:[%s4756_s1 + $0x1e4] ss:$8 sps:$4 sm:$0xff]   ;;  %v3158_v39 = vld [vmem:[%s4756_s1 + $0x1e0] ss:$8 sps:$4 sm:$0xff]   ;;  %v3161_v41 = vld [vmem:[%s4756_s1 + $0x1d4] ss:$8 sps:$4 sm:$0xff]  }
   0xf   :  { %2017 = vmatpush1.bf16.msra.mxu0 %v3121_v14  ;;  %v3163_v42 = vld [vmem:[%s4756_s1 + $0xd0] ss:$8 sps:$4 sm:$0xff]   ;;  %v3165_v44 = vld [vmem:[%s4756_s1 + $0xc4] ss:$8 sps:$4 sm:$0xff]   ;;  %v3169_v46 = vld [vmem:[%s4756_s1 + $0xc0] ss:$8 sps:$4 sm:$0xff]  }
  0x10   :  { %2098 = vmatpush1.bf16.msra.mxu1 %v3122_v15  ;;  %2018 = vmatprep.subr.bf16.mxu0 %v3123_v16  ;;  %v3164_v43 = vld [vmem:[%s4756_s1 + $0x1d0] ss:$8 sps:$4 sm:$0xff]   ;;  %v3167_v45 = vld [vmem:[%s4756_s1 + $0x1c4] ss:$8 sps:$4 sm:$0xff]   ;;  %v3170_v47 = vld [vmem:[%s4756_s1 + $0x1c0] ss:$8 sps:$4 sm:$0xff]  }
  0x11   :  { %2099 = vmatprep.subr.bf16.mxu1 %v3125_v17  ;;  %v14_v48 = vld [vmem:[%s4757_s0] sm:$0xff]  ;;  %v15_v50 = vld [vmem:[%s4757_s0 + $0x8] sm:$0xff]  ;;  %v3171_v52 = vld [vmem:[%s4756_s1 + $0xb4] ss:$8 sps:$4 sm:$0xff]  }
  0x12   :  { %v22_v49 = vld [vmem:[%s4757_s0 + $0x40] sm:$0xff]  ;;  %v23_v51 = vld [vmem:[%s4757_s0 + $0x48] sm:$0xff]  ;;  %v3173_v54 = vld [vmem:[%s4756_s1 + $0x1b4] ss:$8 sps:$4 sm:$0xff]  }
  0x13   :  { %2019 = vmatpush1.bf16.msra.mxu0 %v3127_v18  ;;  %v2746_v53 = vcombine.high %v14_v48, %v22_v49  ;;  %v2748_v55 = vcombine.high %v15_v50, %v23_v51  ;;  %v3175_v56 = vld [vmem:[%s4756_s1 + $0xb0] ss:$8 sps:$4 sm:$0xff]   ;;  %v3177_v58 = vld [vmem:[%s4756_s1 + $0xa4] ss:$8 sps:$4 sm:$0xff]   ;;  %v3181_v60 = vld [vmem:[%s4756_s1 + $0xa0] ss:$8 sps:$4 sm:$0xff]   ;;  %v2745_v11 = vcombine.low %v14_v48, %v22_v49  ;;  %v2747_v12 = vcombine.low %v15_v50, %v23_v51 }
  0x14   :  { %2100 = vmatpush1.bf16.msra.mxu1 %v3128_v19  ;;  %2020 = vmatprep.subr.bf16.mxu0 %v3129_v20  ;;  %v3176_v57 = vld [vmem:[%s4756_s1 + $0x1b0] ss:$8 sps:$4 sm:$0xff]   ;;  %v3179_v59 = vld [vmem:[%s4756_s1 + $0x1a4] ss:$8 sps:$4 sm:$0xff]   ;;  %v3182_v61 = vld [vmem:[%s4756_s1 + $0x1a0] ss:$8 sps:$4 sm:$0xff]  }
  0x15   :  { %2101 = vmatprep.subr.bf16.mxu1 %v3131_v21  ;;  %2042 = vmatprep.mubr.bf16.mxu0 %v2746_v53  ;;  %v3183_v62 = vld [vmem:[%s4756_s1 + $0x94] ss:$8 sps:$4 sm:$0xff]   ;;  %v3187_v0 = vld [vmem:[%s4756_s1 + $0x90] ss:$8 sps:$4 sm:$0xff]   ;;  %v3189_v2 = vld [vmem:[%s4756_s1 + $0x84] ss:$8 sps:$4 sm:$0xff]  }
  0x16   :  { %2123 = vmatprep.mubr.bf16.mxu1 %v2748_v55  ;;  %v3185_v63 = vld [vmem:[%s4756_s1 + $0x194] ss:$8 sps:$4 sm:$0xff]   ;;  %v3188_v1 = vld [vmem:[%s4756_s1 + $0x190] ss:$8 sps:$4 sm:$0xff]   ;;  %v3191_v3 = vld [vmem:[%s4756_s1 + $0x184] ss:$8 sps:$4 sm:$0xff]  }
  0x17   :  { %2021 = vmatpush1.bf16.msra.mxu0 %v3133_v22  ;;  %v3193_v4 = vld [vmem:[%s4756_s1 + $0x80] ss:$8 sps:$4 sm:$0xff]   ;;  %v3197_v6 = vld [vmem:[%s4756_s1 + $0x274] ss:$8 sps:$4 sm:$0xff]   ;;  %v3195_v8 = vld [vmem:[%s4756_s1 + $0x270] ss:$8 sps:$4 sm:$0xff]  }
  0x18   :  { %2102 = vmatpush1.bf16.msra.mxu1 %v3134_v23  ;;  %2022 = vmatprep.subr.bf16.mxu0 %v3135_v24  ;;  %v3194_v5 = vld [vmem:[%s4756_s1 + $0x180] ss:$8 sps:$4 sm:$0xff]   ;;  %v3200_v7 = vld [vmem:[%s4756_s1 + $0x374] ss:$8 sps:$4 sm:$0xff]   ;;  %v3198_v9 = vld [vmem:[%s4756_s1 + $0x370] ss:$8 sps:$4 sm:$0xff]  }
  0x19   :  { %2103 = vmatprep.subr.bf16.mxu1 %v3137_v25  ;;  %v30_v10 = vld [vmem:[%s4757_s0 + $0x80] sm:$0xff]  ;;  %v31_v14 = vld [vmem:[%s4757_s0 + $0x88] sm:$0xff]  ;;  %v3209_v22 = vld [vmem:[%s4756_s1 + $0x254] ss:$8 sps:$4 sm:$0xff]  }
  0x1a   :  { %v38_v13 = vld [vmem:[%s4757_s0 + $0xc0] sm:$0xff]  ;;  %v39_v15 = vld [vmem:[%s4757_s0 + $0xc8] sm:$0xff]  ;;  %v3212_v23 = vld [vmem:[%s4756_s1 + $0x354] ss:$8 sps:$4 sm:$0xff]  }
  0x1b   :  { %2023 = vmatpush1.bf16.msra.mxu0 %v3139_v26  ;;  %v3203_v16 = vld [vmem:[%s4756_s1 + $0x264] ss:$8 sps:$4 sm:$0xff]   ;;  %v2762_v18 = vcombine.high %v30_v10, %v38_v13  ;;  %v2764_v19 = vcombine.high %v31_v14, %v39_v15  ;;  %v3201_v20 = vld [vmem:[%s4756_s1 + $0x260] ss:$8 sps:$4 sm:$0xff]   ;;  %v3207_v24 = vld [vmem:[%s4756_s1 + $0x250] ss:$8 sps:$4 sm:$0xff]  }
  0x1c   :  { %2104 = vmatpush1.bf16.msra.mxu1 %v3140_v27  ;;  %2024 = vmatprep.subr.bf16.mxu0 %v3141_v28  ;;  %v3206_v17 = vld [vmem:[%s4756_s1 + $0x364] ss:$8 sps:$4 sm:$0xff]   ;;  %v3204_v21 = vld [vmem:[%s4756_s1 + $0x360] ss:$8 sps:$4 sm:$0xff]   ;;  %v3210_v25 = vld [vmem:[%s4756_s1 + $0x350] ss:$8 sps:$4 sm:$0xff]   ;;  %v2761_v28 = vcombine.low %v30_v10, %v38_v13 }
  0x1d   :  { %2105 = vmatprep.subr.bf16.mxu1 %v3143_v29  ;;  %v46_v26 = vld [vmem:[%s4757_s0 + $0x100] sm:$0xff]  ;;  %v2763_v29 = vcombine.low %v31_v14, %v39_v15  ;;  %v3236_v55 = vld [vmem:[%s4756_s1 + $0x314] ss:$8 sps:$4 sm:$0xff]   ;;  %v3246_v13 = vld [vmem:[%s4756_s1 + $0x3f0] ss:$8 sps:$4 sm:$0xff]  }
  0x1e   :  { %v54_v27 = vld [vmem:[%s4757_s0 + $0x140] sm:$0xff] }
  0x1f   :  { %2025 = vmatpush1.bf16.msra.mxu0 %v3145_v30  ;;  %v47_v30 = vld [vmem:[%s4757_s0 + $0x108] sm:$0xff] }
  0x20   :  { %2106 = vmatpush1.bf16.msra.mxu1 %v3146_v31  ;;  %2026 = vmatprep.subr.bf16.mxu0 %v3147_v32  ;;  %v55_v31 = vld [vmem:[%s4757_s0 + $0x148] sm:$0xff] }
  0x21   :  { %2107 = vmatprep.subr.bf16.mxu1 %v3149_v33  ;;  %v3215_v32 = vld [vmem:[%s4756_s1 + $0x244] ss:$8 sps:$4 sm:$0xff]   ;;  %v3228_v53 = vld [vmem:[%s4756_s1 + $0x320] ss:$8 sps:$4 sm:$0xff]  }
  0x22   :  { %v3218_v33 = vld [vmem:[%s4756_s1 + $0x344] ss:$8 sps:$4 sm:$0xff]  }
  0x23   :  { %2027 = vmatpush2.bf16.msra.mxu0 %v3151_v34  ;;  %v2778_v34 = vcombine.high %v46_v26, %v54_v27  ;;  %v3227_v48 = vld [vmem:[%s4756_s1 + $0x224] ss:$8 sps:$4 sm:$0xff]  }
  0x24   :  { %2108 = vmatpush2.bf16.msra.mxu1 %v3152_v35  ;;  %2028 = vmatprep.subr.bf16.mxu0 %v3153_v36  ;;  %v2780_v35 = vcombine.high %v47_v30, %v55_v31  ;;  %v3213_v36 = vld [vmem:[%s4756_s1 + $0x240] ss:$8 sps:$4 sm:$0xff]   ;;  %v3230_v49 = vld [vmem:[%s4756_s1 + $0x324] ss:$8 sps:$4 sm:$0xff]  }
  0x25   :  { %2109 = vmatprep.subr.bf16.mxu1 %v3155_v37  ;;  %v3216_v37 = vld [vmem:[%s4756_s1 + $0x340] ss:$8 sps:$4 sm:$0xff]   ;;  %v3251_v14 = vld [vmem:[%s4756_s1 + $0x2e4] ss:$8 sps:$4 sm:$0xff]  }
  0x26   :  { %v3254_v15 = vld [vmem:[%s4756_s1 + $0x3e4] ss:$8 sps:$4 sm:$0xff]  }
  0x27   :  { %2029 = vmatpush2.bf16.msra.mxu0 %v3157_v38  ;;  %v3221_v38 = vld [vmem:[%s4756_s1 + $0x234] ss:$8 sps:$4 sm:$0xff]  }
  0x28   :  { %2110 = vmatpush2.bf16.msra.mxu1 %v3158_v39  ;;  %2030 = vmatprep.subr.bf16.mxu0 %v3159_v40  ;;  %v3224_v39 = vld [vmem:[%s4756_s1 + $0x334] ss:$8 sps:$4 sm:$0xff]   ;;  %v3219_v40 = vld [vmem:[%s4756_s1 + $0x230] ss:$8 sps:$4 sm:$0xff]  }
  0x29   :  { %2111 = vmatprep.subr.bf16.mxu1 %v3161_v41  ;;  %v3222_v41 = vld [vmem:[%s4756_s1 + $0x330] ss:$8 sps:$4 sm:$0xff]  }
  0x2b   :  { %2031 = vmatpush2.bf16.msra.mxu0 %v3163_v42  ;;  %v62_v42 = vld [vmem:[%s4757_s0 + $0x180] sm:$0xff] }
  0x2c   :  { %2112 = vmatpush2.bf16.msra.mxu1 %v3164_v43  ;;  %2032 = vmatprep.subr.bf16.mxu0 %v3165_v44  ;;  %v70_v43 = vld [vmem:[%s4757_s0 + $0x1c0] sm:$0xff]  ;;  %v2777_v44 = vcombine.low %v46_v26, %v54_v27 }
  0x2d   :  { %2113 = vmatprep.subr.bf16.mxu1 %v3167_v45  ;;  %v2779_v45 = vcombine.low %v47_v30, %v55_v31  ;;  %v2794_v50 = vcombine.high %v62_v42, %v70_v43  ;;  %v3261_v26 = vld [vmem:[%s4756_s1 + $0x2c0] ss:$8 sps:$4 sm:$0xff]   ;;  %v3267_v30 = vld [vmem:[%s4756_s1 + $0x2b0] ss:$8 sps:$4 sm:$0xff]  }
  0x2e   :  { %v3264_v27 = vld [vmem:[%s4756_s1 + $0x3c0] ss:$8 sps:$4 sm:$0xff]   ;;  %v3270_v31 = vld [vmem:[%s4756_s1 + $0x3b0] ss:$8 sps:$4 sm:$0xff]  }
  0x2f   :  { %2033 = vmatpush2.bf16.msra.mxu0 %v3169_v46  ;;  %v63_v46 = vld [vmem:[%s4757_s0 + $0x188] sm:$0xff] }
  0x30   :  { %2114 = vmatpush2.bf16.msra.mxu1 %v3170_v47  ;;  %2034 = vmatprep.subr.bf16.mxu0 %v3171_v52  ;;  %v71_v47 = vld [vmem:[%s4757_s0 + $0x1c8] sm:$0xff] }
  0x31   :  { %2115 = vmatprep.subr.bf16.mxu1 %v3173_v54  ;;  %v2796_v51 = vcombine.high %v63_v46, %v71_v47  ;;  %v3225_v52 = vld [vmem:[%s4756_s1 + $0x220] ss:$8 sps:$4 sm:$0xff]   ;;  %v3233_v54 = vld [vmem:[%s4756_s1 + $0x214] ss:$8 sps:$4 sm:$0xff]  }
  0x33   :  { %2035 = vmatpush2.bf16.msra.mxu0 %v3175_v56  ;;  %v78_v56 = vld [vmem:[%s4757_s0 + $0x200] sm:$0xff] }
  0x34   :  { %2116 = vmatpush2.bf16.msra.mxu1 %v3176_v57  ;;  %2036 = vmatprep.subr.bf16.mxu0 %v3177_v58  ;;  %v2793_v57 = vcombine.low %v62_v42, %v70_v43  ;;  %v2795_v58 = vcombine.low %v63_v46, %v71_v47  ;;  %v3289_v42 = vld [vmem:[%s4756_s1 + $0x280] ss:$8 sps:$4 sm:$0xff]   ;;  %v3295_v46 = vld [vmem:[%s4756_s1 + $0x470] ss:$8 sps:$4 sm:$0xff]  }
  0x35   :  { %2117 = vmatprep.subr.bf16.mxu1 %v3179_v59  ;;  %v79_v59 = vld [vmem:[%s4757_s0 + $0x208] sm:$0xff]  ;;  %v3298_v47 = vld [vmem:[%s4756_s1 + $0x570] ss:$8 sps:$4 sm:$0xff]  }
  0x36   :  { %v2811_v10 = vcombine.low %v79_v59, %v79_v59  ;;  %v3292_v43 = vld [vmem:[%s4756_s1 + $0x380] ss:$8 sps:$4 sm:$0xff]  }
  0x37   :  { %2037 = vmatpush2.bf16.msra.mxu0 %v3181_v60  ;;  %v3231_v60 = vld [vmem:[%s4756_s1 + $0x210] ss:$8 sps:$4 sm:$0xff]  }
  0x38   :  { %2118 = vmatpush2.bf16.msra.mxu1 %v3182_v61  ;;  %2038 = vmatprep.subr.bf16.mxu0 %v3183_v62  ;;  %v3234_v61 = vld [vmem:[%s4756_s1 + $0x310] ss:$8 sps:$4 sm:$0xff]   ;;  %v3239_v62 = vld [vmem:[%s4756_s1 + $0x204] ss:$8 sps:$4 sm:$0xff]  }
  0x39   :  { %2119 = vmatprep.subr.bf16.mxu1 %v3185_v63  ;;  %v3242_v63 = vld [vmem:[%s4756_s1 + $0x304] ss:$8 sps:$4 sm:$0xff]  }
  0x3b   :  { %2039 = vmatpush2.bf16.msra.mxu0 %v3187_v0  ;;  %v2810_v0 = vcombine.high %v78_v56, %v78_v56 }
  0x3c   :  { %2120 = vmatpush2.bf16.msra.mxu1 %v3188_v1  ;;  %2040 = vmatprep.subr.bf16.mxu0 %v3189_v2  ;;  %v2812_v1 = vcombine.high %v79_v59, %v79_v59  ;;  %v3237_v2 = vld [vmem:[%s4756_s1 + $0x200] ss:$8 sps:$4 sm:$0xff]  }
  0x3d   :  { %2121 = vmatprep.subr.bf16.mxu1 %v3191_v3  ;;  %v3240_v3 = vld [vmem:[%s4756_s1 + $0x300] ss:$8 sps:$4 sm:$0xff]  }
  0x3e   :  { %v3304_v59 = vld [vmem:[%s4756_s1 + $0x560] ss:$8 sps:$4 sm:$0xff]  }
  0x3f   :  { %2041 = vmatpush2.bf16.msra.mxu0 %v3193_v4  ;;  %v3245_v4 = vld [vmem:[%s4756_s1 + $0x2f4] ss:$8 sps:$4 sm:$0xff]  }
  0x40   :  { %2122 = vmatpush2.bf16.msra.mxu1 %v3194_v5  ;;  %2172 = vmatprep.subr.bf16.mxu0 %v3197_v6  ;;  %v3248_v5 = vld [vmem:[%s4756_s1 + $0x3f4] ss:$8 sps:$4 sm:$0xff]  }
  0x41   :  { %2253 = vmatprep.subr.bf16.mxu1 %v3200_v7  ;;  %v3870_v6 = vld [vmem:[%s4757_s0 + $0x10] sm:$0xff] }
  0x42   :  { %2043 = vmatmul.mubr.bf16.vlgmr.msra.gmra.mxu0 %v2745_v11  ;;  %v3875_v7 = vld [vmem:[%s4757_s0 + $0x50] sm:$0xff]  ;;  %v3885_v11 = vld [vmem:[%s4757_s0 + $0x58] sm:$0xff] }
  0x43   :  { %2124 = vmatmul.mubr.bf16.vlgmr.msra.gmra.mxu1 %v2747_v12  ;;  %2173 = vmatpush1.bf16.msra.mxu0 %v3195_v8  ;;  %v3880_v8 = vld [vmem:[%s4757_s0 + $0x18] sm:$0xff] }
  0x44   :  { %2254 = vmatpush1.bf16.msra.mxu1 %v3198_v9  ;;  %2174 = vmatprep.subr.bf16.mxu0 %v3203_v16  ;;  %v2809_v9 = vcombine.low %v78_v56, %v78_v56  ;;  %v3243_v12 = vld [vmem:[%s4756_s1 + $0x2f0] ss:$8 sps:$4 sm:$0xff]   ;;  %v2750_v16 = vcombine.high %v3870_v6, %v3875_v7 }
  0x45   :  { %2255 = vmatprep.subr.bf16.mxu1 %v3206_v17  ;;  %2052 = vmatprep.mubr.bf16.mxu0 %v2762_v18  ;;  %v2752_v17 = vcombine.high %v3880_v8, %v3885_v11  ;;  %v3249_v18 = vld [vmem:[%s4756_s1 + $0x2e0] ss:$8 sps:$4 sm:$0xff]  }
  0x46   :  { %2133 = vmatprep.mubr.bf16.mxu1 %v2764_v19  ;;  %v3252_v19 = vld [vmem:[%s4756_s1 + $0x3e0] ss:$8 sps:$4 sm:$0xff]  }
  0x47   :  { %2175 = vmatpush1.bf16.msra.mxu0 %v3201_v20  ;;  %v3257_v20 = vld [vmem:[%s4756_s1 + $0x2d4] ss:$8 sps:$4 sm:$0xff]  }
  0x48   :  { %2256 = vmatpush1.bf16.msra.mxu1 %v3204_v21  ;;  %2176 = vmatprep.subr.bf16.mxu0 %v3209_v22  ;;  %v3260_v21 = vld [vmem:[%s4756_s1 + $0x3d4] ss:$8 sps:$4 sm:$0xff]   ;;  %v3255_v22 = vld [vmem:[%s4756_s1 + $0x2d0] ss:$8 sps:$4 sm:$0xff]  }
  0x49   :  { %2257 = vmatprep.subr.bf16.mxu1 %v3212_v23  ;;  %v3258_v23 = vld [vmem:[%s4756_s1 + $0x3d0] ss:$8 sps:$4 sm:$0xff]  }
  0x4a   :  { %2053 = vmatmul.mubr.bf16.gmra.mxu0 %v2761_v28  ;;  %v3269_v28 = vld [vmem:[%s4756_s1 + $0x2b4] ss:$8 sps:$4 sm:$0xff]  }
  0x4b   :  { %2134 = vmatmul.mubr.bf16.gmra.mxu1 %v2763_v29  ;;  %2177 = vmatpush1.bf16.msra.mxu0 %v3207_v24  ;;  %v3263_v24 = vld [vmem:[%s4756_s1 + $0x2c4] ss:$8 sps:$4 sm:$0xff]   ;;  %v3272_v29 = vld [vmem:[%s4756_s1 + $0x3b4] ss:$8 sps:$4 sm:$0xff]  }
  0x4c   :  { %2258 = vmatpush1.bf16.msra.mxu1 %v3210_v25  ;;  %2178 = vmatprep.subr.bf16.mxu0 %v3215_v32  ;;  %v3266_v25 = vld [vmem:[%s4756_s1 + $0x3c4] ss:$8 sps:$4 sm:$0xff]  }
  0x4d   :  { %2259 = vmatprep.subr.bf16.mxu1 %v3218_v33  ;;  %2062 = vmatprep.mubr.bf16.mxu0 %v2778_v34  ;;  %v3278_v32 = vld [vmem:[%s4756_s1 + $0x2a4] ss:$8 sps:$4 sm:$0xff]   ;;  %v3276_v34 = vld [vmem:[%s4756_s1 + $0x2a0] ss:$8 sps:$4 sm:$0xff]  }
  0x4e   :  { %2143 = vmatprep.mubr.bf16.mxu1 %v2780_v35  ;;  %v3281_v33 = vld [vmem:[%s4756_s1 + $0x3a4] ss:$8 sps:$4 sm:$0xff]   ;;  %v3279_v35 = vld [vmem:[%s4756_s1 + $0x3a0] ss:$8 sps:$4 sm:$0xff]  }
  0x4f   :  { %2179 = vmatpush1.bf16.msra.mxu0 %v3213_v36  ;;  %v3285_v36 = vld [vmem:[%s4756_s1 + $0x294] ss:$8 sps:$4 sm:$0xff]  }
  0x50   :  { %2260 = vmatpush1.bf16.msra.mxu1 %v3216_v37  ;;  %2180 = vmatprep.subr.bf16.mxu0 %v3221_v38  ;;  %v3288_v37 = vld [vmem:[%s4756_s1 + $0x394] ss:$8 sps:$4 sm:$0xff]   ;;  %v3283_v38 = vld [vmem:[%s4756_s1 + $0x290] ss:$8 sps:$4 sm:$0xff]  }
  0x51   :  { %2261 = vmatprep.subr.bf16.mxu1 %v3224_v39  ;;  %v3286_v39 = vld [vmem:[%s4756_s1 + $0x390] ss:$8 sps:$4 sm:$0xff]  }
  0x52   :  { %2063 = vmatmul.mubr.bf16.gmra.mxu0 %v2777_v44  ;;  %v3297_v44 = vld [vmem:[%s4756_s1 + $0x474] ss:$8 sps:$4 sm:$0xff]  }
  0x53   :  { %2144 = vmatmul.mubr.bf16.gmra.mxu1 %v2779_v45  ;;  %2181 = vmatpush1.bf16.msra.mxu0 %v3219_v40  ;;  %v3291_v40 = vld [vmem:[%s4756_s1 + $0x284] ss:$8 sps:$4 sm:$0xff]   ;;  %v3300_v45 = vld [vmem:[%s4756_s1 + $0x574] ss:$8 sps:$4 sm:$0xff]  }
  0x54   :  { %2262 = vmatpush1.bf16.msra.mxu1 %v3222_v41  ;;  %2182 = vmatprep.subr.bf16.mxu0 %v3227_v48  ;;  %v3294_v41 = vld [vmem:[%s4756_s1 + $0x384] ss:$8 sps:$4 sm:$0xff]   ;;  %v32_v48 = vld [vmem:[%s4757_s0 + $0x90] sm:$0xff] }
  0x55   :  { %2263 = vmatprep.subr.bf16.mxu1 %v3230_v49  ;;  %2072 = vmatprep.mubr.bf16.mxu0 %v2794_v50  ;;  %v40_v49 = vld [vmem:[%s4757_s0 + $0xd0] sm:$0xff]  ;;  %v2749_v50 = vcombine.low %v3870_v6, %v3875_v7  ;;  %v3315_v6 = vld [vmem:[%s4756_s1 + $0x444] ss:$8 sps:$4 sm:$0xff]  }
  0x56   :  { %2153 = vmatprep.mubr.bf16.mxu1 %v2796_v51  ;;  %v2751_v51 = vcombine.low %v3880_v8, %v3885_v11  ;;  %v2766_v56 = vcombine.high %v32_v48, %v40_v49  ;;  %v3318_v7 = vld [vmem:[%s4756_s1 + $0x544] ss:$8 sps:$4 sm:$0xff]   ;;  %v3316_v11 = vld [vmem:[%s4756_s1 + $0x540] ss:$8 sps:$4 sm:$0xff]  }
  0x57   :  { %2183 = vmatpush1.bf16.msra.mxu0 %v3225_v52  ;;  %v33_v52 = vld [vmem:[%s4757_s0 + $0x98] sm:$0xff] }
  0x58   :  { %2264 = vmatpush1.bf16.msra.mxu1 %v3228_v53  ;;  %2184 = vmatprep.subr.bf16.mxu0 %v3233_v54  ;;  %v41_v53 = vld [vmem:[%s4757_s0 + $0xd8] sm:$0xff]  ;;  %v3303_v54 = vld [vmem:[%s4756_s1 + $0x464] ss:$8 sps:$4 sm:$0xff]  }
  0x59   :  { %2265 = vmatprep.subr.bf16.mxu1 %v3236_v55  ;;  %v3306_v55 = vld [vmem:[%s4756_s1 + $0x564] ss:$8 sps:$4 sm:$0xff]  }
  0x5a   :  { %2073 = vmatmul.mubr.bf16.gmra.mxu0 %v2793_v57  ;;  %v2768_v57 = vcombine.high %v33_v52, %v41_v53 }
  0x5b   :  { %2154 = vmatmul.mubr.bf16.gmra.mxu1 %v2795_v58  ;;  %2185 = vmatpush1.bf16.msra.mxu0 %v3231_v60  ;;  %v3301_v58 = vld [vmem:[%s4756_s1 + $0x460] ss:$8 sps:$4 sm:$0xff]   ;;  %v3309_v60 = vld [vmem:[%s4756_s1 + $0x454] ss:$8 sps:$4 sm:$0xff]  }
  0x5c   :  { %2266 = vmatpush1.bf16.msra.mxu1 %v3234_v61  ;;  %2186 = vmatprep.subr.bf16.mxu0 %v3239_v62  ;;  %v3312_v61 = vld [vmem:[%s4756_s1 + $0x554] ss:$8 sps:$4 sm:$0xff]   ;;  %v3307_v62 = vld [vmem:[%s4756_s1 + $0x450] ss:$8 sps:$4 sm:$0xff]  }
  0x5d   :  { %2267 = vmatprep.subr.bf16.mxu1 %v3242_v63  ;;  %2082 = vmatprep.mubr.bf16.mxu0 %v2810_v0  ;;  %v3310_v63 = vld [vmem:[%s4756_s1 + $0x550] ss:$8 sps:$4 sm:$0xff]  }
  0x5e   :  { %2163 = vmatprep.mubr.bf16.mxu1 %v2812_v1  ;;  %v48_v0 = vld [vmem:[%s4757_s0 + $0x110] sm:$0xff] }
  0x5f   :  { %2187 = vmatpush1.bf16.msra.mxu0 %v3237_v2  ;;  %v56_v1 = vld [vmem:[%s4757_s0 + $0x150] sm:$0xff]  ;;  %v2765_v2 = vcombine.low %v32_v48, %v40_v49  ;;  %v4142_v48 = vld [vmem:[%s4757_s0 + $0x28] sm:$0xff] }
  0x60   :  { %2268 = vmatpush1.bf16.msra.mxu1 %v3240_v3  ;;  %2188 = vmatprep.subr.bf16.mxu0 %v3245_v4  ;;  %v2767_v3 = vcombine.low %v33_v52, %v41_v53  ;;  %v49_v4 = vld [vmem:[%s4757_s0 + $0x118] sm:$0xff]  ;;  %v2782_v8 = vcombine.high %v48_v0, %v56_v1  ;;  %v4147_v49 = vld [vmem:[%s4757_s0 + $0x68] sm:$0xff] }
  0x61   :  { %2269 = vmatprep.subr.bf16.mxu1 %v3248_v5  ;;  %v57_v5 = vld [vmem:[%s4757_s0 + $0x158] sm:$0xff]  ;;  %v3355_v52 = vld [vmem:[%s4756_s1 + $0x4e4] ss:$8 sps:$4 sm:$0xff]  }
  0x62   :  { %2083 = vmatmul.mubr.bf16.gmra.mxu0 %v2809_v9  ;;  %v2784_v9 = vcombine.high %v49_v4, %v57_v5  ;;  %v3358_v53 = vld [vmem:[%s4756_s1 + $0x5e4] ss:$8 sps:$4 sm:$0xff]  }
  0x63   :  { %2164 = vmatmul.mubr.bf16.gmra.mxu1 %v2811_v10  ;;  %2189 = vmatpush2.bf16.msra.mxu0 %v3243_v12  ;;  %v3313_v10 = vld [vmem:[%s4756_s1 + $0x440] ss:$8 sps:$4 sm:$0xff]   ;;  %v3321_v12 = vld [vmem:[%s4756_s1 + $0x434] ss:$8 sps:$4 sm:$0xff]  }
  0x64   :  { %2270 = vmatpush2.bf16.msra.mxu1 %v3246_v13  ;;  %2190 = vmatprep.subr.bf16.mxu0 %v3251_v14  ;;  %v3324_v13 = vld [vmem:[%s4756_s1 + $0x534] ss:$8 sps:$4 sm:$0xff]   ;;  %v3319_v14 = vld [vmem:[%s4756_s1 + $0x430] ss:$8 sps:$4 sm:$0xff]  }
  0x65   :  { %2271 = vmatprep.subr.bf16.mxu1 %v3254_v15  ;;  %2204 = vmatprep.mubr.bf16.mxu0 %v2750_v16  ;;  %v3322_v15 = vld [vmem:[%s4756_s1 + $0x530] ss:$8 sps:$4 sm:$0xff]  }
  0x66   :  { %2285 = vmatprep.mubr.bf16.mxu1 %v2752_v17  ;;  %v64_v16 = vld [vmem:[%s4757_s0 + $0x190] sm:$0xff] }
  0x67   :  { %2191 = vmatpush2.bf16.msra.mxu0 %v3249_v18  ;;  %v72_v17 = vld [vmem:[%s4757_s0 + $0x1d0] sm:$0xff]  ;;  %v2781_v18 = vcombine.low %v48_v0, %v56_v1  ;;  %v3365_v0 = vld [vmem:[%s4756_s1 + $0x4c0] ss:$8 sps:$4 sm:$0xff]  }
  0x68   :  { %2272 = vmatpush2.bf16.msra.mxu1 %v3252_v19  ;;  %2192 = vmatprep.subr.bf16.mxu0 %v3257_v20  ;;  %v2783_v19 = vcombine.low %v49_v4, %v57_v5  ;;  %v65_v20 = vld [vmem:[%s4757_s0 + $0x198] sm:$0xff]  ;;  %v3368_v1 = vld [vmem:[%s4756_s1 + $0x5c0] ss:$8 sps:$4 sm:$0xff]  }
  0x69   :  { %2273 = vmatprep.subr.bf16.mxu1 %v3260_v21  ;;  %v73_v21 = vld [vmem:[%s4757_s0 + $0x1d8] sm:$0xff] }
  0x6a   :  { %v3371_v4 = vld [vmem:[%s4756_s1 + $0x4b0] ss:$8 sps:$4 sm:$0xff]  }
  0x6b   :  { %2193 = vmatpush2.bf16.msra.mxu0 %v3255_v22  ;;  %v3327_v22 = vld [vmem:[%s4756_s1 + $0x424] ss:$8 sps:$4 sm:$0xff]   ;;  %v3374_v5 = vld [vmem:[%s4756_s1 + $0x5b0] ss:$8 sps:$4 sm:$0xff]  }
  0x6c   :  { %2274 = vmatpush2.bf16.msra.mxu1 %v3258_v23  ;;  %2194 = vmatprep.subr.bf16.mxu0 %v3263_v24  ;;  %v3330_v23 = vld [vmem:[%s4756_s1 + $0x524] ss:$8 sps:$4 sm:$0xff]   ;;  %v2798_v24 = vcombine.high %v64_v16, %v72_v17 }
  0x6d   :  { %2275 = vmatprep.subr.bf16.mxu1 %v3266_v25  ;;  %v2800_v25 = vcombine.high %v65_v20, %v73_v21 }
  0x6f   :  { %2195 = vmatpush2.bf16.msra.mxu0 %v3261_v26  ;;  %v3325_v26 = vld [vmem:[%s4756_s1 + $0x420] ss:$8 sps:$4 sm:$0xff]  }
  0x70   :  { %2276 = vmatpush2.bf16.msra.mxu1 %v3264_v27  ;;  %2196 = vmatprep.subr.bf16.mxu0 %v3269_v28  ;;  %v3328_v27 = vld [vmem:[%s4756_s1 + $0x520] ss:$8 sps:$4 sm:$0xff]   ;;  %v3333_v28 = vld [vmem:[%s4756_s1 + $0x414] ss:$8 sps:$4 sm:$0xff]  }
  0x71   :  { %2277 = vmatprep.subr.bf16.mxu1 %v3272_v29  ;;  %v3336_v29 = vld [vmem:[%s4756_s1 + $0x514] ss:$8 sps:$4 sm:$0xff]  }
  0x73   :  { %2197 = vmatpush2.bf16.msra.mxu0 %v3267_v30  ;;  %v3331_v30 = vld [vmem:[%s4756_s1 + $0x410] ss:$8 sps:$4 sm:$0xff]  }
  0x74   :  { %2278 = vmatpush2.bf16.msra.mxu1 %v3270_v31  ;;  %2198 = vmatprep.subr.bf16.mxu0 %v3278_v32  ;;  %v2797_v31 = vcombine.low %v64_v16, %v72_v17  ;;  %v2799_v32 = vcombine.low %v65_v20, %v73_v21  ;;  %v3389_v16 = vld [vmem:[%s4756_s1 + $0x480] ss:$8 sps:$4 sm:$0xff]  }
  0x75   :  { %2279 = vmatprep.subr.bf16.mxu1 %v3281_v33  ;;  %v80_v33 = vld [vmem:[%s4757_s0 + $0x210] sm:$0xff]  ;;  %v3392_v17 = vld [vmem:[%s4756_s1 + $0x580] ss:$8 sps:$4 sm:$0xff]  }
  0x76   :  { %v34_v20 = vld [vmem:[%s4757_s0 + $0xa0] sm:$0xff] }
  0x77   :  { %2199 = vmatpush2.bf16.msra.mxu0 %v3276_v34  ;;  %v81_v34 = vld [vmem:[%s4757_s0 + $0x218] sm:$0xff] }
  0x78   :  { %2280 = vmatpush2.bf16.msra.mxu1 %v3279_v35  ;;  %2200 = vmatprep.subr.bf16.mxu0 %v3285_v36  ;;  %v3334_v35 = vld [vmem:[%s4756_s1 + $0x510] ss:$8 sps:$4 sm:$0xff]   ;;  %v3339_v36 = vld [vmem:[%s4756_s1 + $0x404] ss:$8 sps:$4 sm:$0xff]  }
  0x79   :  { %2281 = vmatprep.subr.bf16.mxu1 %v3288_v37  ;;  %v3342_v37 = vld [vmem:[%s4756_s1 + $0x504] ss:$8 sps:$4 sm:$0xff]  }
  0x7b   :  { %2201 = vmatpush2.bf16.msra.mxu0 %v3283_v38  ;;  %v2814_v38 = vcombine.high %v80_v33, %v80_v33 }
  0x7c   :  { %2282 = vmatpush2.bf16.msra.mxu1 %v3286_v39  ;;  %2202 = vmatprep.subr.bf16.mxu0 %v3291_v40  ;;  %v2816_v39 = vcombine.high %v81_v34, %v81_v34  ;;  %v3337_v40 = vld [vmem:[%s4756_s1 + $0x400] ss:$8 sps:$4 sm:$0xff]  }
  0x7d   :  { %2283 = vmatprep.subr.bf16.mxu1 %v3294_v41  ;;  %v3340_v41 = vld [vmem:[%s4756_s1 + $0x500] ss:$8 sps:$4 sm:$0xff]  }
  0x7f   :  { %2203 = vmatpush2.bf16.msra.mxu0 %v3289_v42  ;;  %v3347_v42 = vld [vmem:[%s4756_s1 + $0x4f4] ss:$8 sps:$4 sm:$0xff]  }
  0x80   :  { %2284 = vmatpush2.bf16.msra.mxu1 %v3292_v43  ;;  %2334 = vmatprep.subr.bf16.mxu0 %v3297_v44  ;;  %v3350_v43 = vld [vmem:[%s4756_s1 + $0x5f4] ss:$8 sps:$4 sm:$0xff]   ;;  %v4132_v44 = vld [vmem:[%s4757_s0 + $0x20] sm:$0xff] }
  0x81   :  { %2415 = vmatprep.subr.bf16.mxu1 %v3300_v45  ;;  %v4137_v45 = vld [vmem:[%s4757_s0 + $0x60] sm:$0xff] }
  0x82   :  { %2205 = vmatmul.mubr.bf16.vlgmr.msra.gmra.mxu0 %v2749_v50  ;;  %v3345_v50 = vld [vmem:[%s4756_s1 + $0x4f0] ss:$8 sps:$4 sm:$0xff]   ;;  %v2753_v21 = vcombine.low %v4132_v44, %v4137_v45 }
  0x83   :  { %2286 = vmatmul.mubr.bf16.vlgmr.msra.gmra.mxu1 %v2751_v51  ;;  %2335 = vmatpush1.bf16.msra.mxu0 %v3295_v46  ;;  %v2813_v46 = vcombine.low %v80_v33, %v80_v33  ;;  %v3348_v51 = vld [vmem:[%s4756_s1 + $0x5f0] ss:$8 sps:$4 sm:$0xff]   ;;  %v3404_v33 = vld [vmem:[%s4756_s1 + $0x760] ss:$8 sps:$4 sm:$0xff]  }
  0x84   :  { %2416 = vmatpush1.bf16.msra.mxu1 %v3298_v47  ;;  %2336 = vmatprep.subr.bf16.mxu0 %v3303_v54  ;;  %v2815_v47 = vcombine.low %v81_v34, %v81_v34  ;;  %v2754_v54 = vcombine.high %v4132_v44, %v4137_v45  ;;  %v3409_v34 = vld [vmem:[%s4756_s1 + $0x654] ss:$8 sps:$4 sm:$0xff]   ;;  %v3415_v44 = vld [vmem:[%s4756_s1 + $0x644] ss:$8 sps:$4 sm:$0xff]  }
  0x85   :  { %2417 = vmatprep.subr.bf16.mxu1 %v3306_v55  ;;  %2214 = vmatprep.mubr.bf16.mxu0 %v2766_v56  ;;  %v2756_v55 = vcombine.high %v4142_v48, %v4147_v49  ;;  %v3353_v56 = vld [vmem:[%s4756_s1 + $0x4e0] ss:$8 sps:$4 sm:$0xff]   ;;  %v3418_v45 = vld [vmem:[%s4756_s1 + $0x744] ss:$8 sps:$4 sm:$0xff]  }
  0x86   :  { %2295 = vmatprep.mubr.bf16.mxu1 %v2768_v57  ;;  %v3356_v57 = vld [vmem:[%s4756_s1 + $0x5e0] ss:$8 sps:$4 sm:$0xff]  }
  0x87   :  { %2337 = vmatpush1.bf16.msra.mxu0 %v3301_v58  ;;  %v3361_v58 = vld [vmem:[%s4756_s1 + $0x4d4] ss:$8 sps:$4 sm:$0xff]  }
  0x88   :  { %2418 = vmatpush1.bf16.msra.mxu1 %v3304_v59  ;;  %2338 = vmatprep.subr.bf16.mxu0 %v3309_v60  ;;  %v3364_v59 = vld [vmem:[%s4756_s1 + $0x5d4] ss:$8 sps:$4 sm:$0xff]   ;;  %v3359_v60 = vld [vmem:[%s4756_s1 + $0x4d0] ss:$8 sps:$4 sm:$0xff]  }
  0x89   :  { %2419 = vmatprep.subr.bf16.mxu1 %v3312_v61  ;;  %v3362_v61 = vld [vmem:[%s4756_s1 + $0x5d0] ss:$8 sps:$4 sm:$0xff]  }
  0x8a   :  { %2215 = vmatmul.mubr.bf16.gmra.mxu0 %v2765_v2  ;;  %v3373_v2 = vld [vmem:[%s4756_s1 + $0x4b4] ss:$8 sps:$4 sm:$0xff]  }
  0x8b   :  { %2296 = vmatmul.mubr.bf16.gmra.mxu1 %v2767_v3  ;;  %2339 = vmatpush1.bf16.msra.mxu0 %v3307_v62  ;;  %v3367_v62 = vld [vmem:[%s4756_s1 + $0x4c4] ss:$8 sps:$4 sm:$0xff]   ;;  %v3376_v3 = vld [vmem:[%s4756_s1 + $0x5b4] ss:$8 sps:$4 sm:$0xff]  }
  0x8c   :  { %2420 = vmatpush1.bf16.msra.mxu1 %v3310_v63  ;;  %2340 = vmatprep.subr.bf16.mxu0 %v3315_v6  ;;  %v3370_v63 = vld [vmem:[%s4756_s1 + $0x5c4] ss:$8 sps:$4 sm:$0xff]  }
  0x8d   :  { %2421 = vmatprep.subr.bf16.mxu1 %v3318_v7  ;;  %2224 = vmatprep.mubr.bf16.mxu0 %v2782_v8  ;;  %v3379_v6 = vld [vmem:[%s4756_s1 + $0x4a4] ss:$8 sps:$4 sm:$0xff]   ;;  %v3377_v8 = vld [vmem:[%s4756_s1 + $0x4a0] ss:$8 sps:$4 sm:$0xff]  }
  0x8e   :  { %2305 = vmatprep.mubr.bf16.mxu1 %v2784_v9  ;;  %v3382_v7 = vld [vmem:[%s4756_s1 + $0x5a4] ss:$8 sps:$4 sm:$0xff]   ;;  %v3380_v9 = vld [vmem:[%s4756_s1 + $0x5a0] ss:$8 sps:$4 sm:$0xff]  }
  0x8f   :  { %2341 = vmatpush1.bf16.msra.mxu0 %v3313_v10  ;;  %v3385_v10 = vld [vmem:[%s4756_s1 + $0x494] ss:$8 sps:$4 sm:$0xff]  }
  0x90   :  { %2422 = vmatpush1.bf16.msra.mxu1 %v3316_v11  ;;  %2342 = vmatprep.subr.bf16.mxu0 %v3321_v12  ;;  %v3388_v11 = vld [vmem:[%s4756_s1 + $0x594] ss:$8 sps:$4 sm:$0xff]   ;;  %v3383_v12 = vld [vmem:[%s4756_s1 + $0x490] ss:$8 sps:$4 sm:$0xff]  }
  0x91   :  { %2423 = vmatprep.subr.bf16.mxu1 %v3324_v13  ;;  %v3386_v13 = vld [vmem:[%s4756_s1 + $0x590] ss:$8 sps:$4 sm:$0xff]  }
  0x92   :  { %2225 = vmatmul.mubr.bf16.gmra.mxu0 %v2781_v18  ;;  %v3397_v18 = vld [vmem:[%s4756_s1 + $0x674] ss:$8 sps:$4 sm:$0xff]  }
  0x93   :  { %2306 = vmatmul.mubr.bf16.gmra.mxu1 %v2783_v19  ;;  %2343 = vmatpush1.bf16.msra.mxu0 %v3319_v14  ;;  %v3391_v14 = vld [vmem:[%s4756_s1 + $0x484] ss:$8 sps:$4 sm:$0xff]   ;;  %v3400_v19 = vld [vmem:[%s4756_s1 + $0x774] ss:$8 sps:$4 sm:$0xff]  }
  0x94   :  { %2424 = vmatpush1.bf16.msra.mxu1 %v3322_v15  ;;  %2344 = vmatprep.subr.bf16.mxu0 %v3327_v22  ;;  %v3394_v15 = vld [vmem:[%s4756_s1 + $0x584] ss:$8 sps:$4 sm:$0xff]   ;;  %v2755_v22 = vcombine.low %v4142_v48, %v4147_v49  ;;  %v3413_v48 = vld [vmem:[%s4756_s1 + $0x640] ss:$8 sps:$4 sm:$0xff]  }
  0x95   :  { %2425 = vmatprep.subr.bf16.mxu1 %v3330_v23  ;;  %2234 = vmatprep.mubr.bf16.mxu0 %v2798_v24  ;;  %v42_v23 = vld [vmem:[%s4757_s0 + $0xe0] sm:$0xff]  ;;  %v35_v24 = vld [vmem:[%s4757_s0 + $0xa8] sm:$0xff] }
  0x96   :  { %2315 = vmatprep.mubr.bf16.mxu1 %v2800_v25  ;;  %v43_v25 = vld [vmem:[%s4757_s0 + $0xe8] sm:$0xff] }
  0x97   :  { %2345 = vmatpush1.bf16.msra.mxu0 %v3325_v26  ;;  %v3395_v26 = vld [vmem:[%s4756_s1 + $0x670] ss:$8 sps:$4 sm:$0xff]   ;;  %v3416_v49 = vld [vmem:[%s4756_s1 + $0x740] ss:$8 sps:$4 sm:$0xff]  }
  0x98   :  { %2426 = vmatpush1.bf16.msra.mxu1 %v3328_v27  ;;  %2346 = vmatprep.subr.bf16.mxu0 %v3333_v28  ;;  %v3398_v27 = vld [vmem:[%s4756_s1 + $0x770] ss:$8 sps:$4 sm:$0xff]   ;;  %v3403_v28 = vld [vmem:[%s4756_s1 + $0x664] ss:$8 sps:$4 sm:$0xff]  }
  0x99   :  { %2427 = vmatprep.subr.bf16.mxu1 %v3336_v29  ;;  %v3406_v29 = vld [vmem:[%s4756_s1 + $0x764] ss:$8 sps:$4 sm:$0xff]  }
  0x9a   :  { %2235 = vmatmul.mubr.bf16.gmra.mxu0 %v2797_v31  ;;  %v2772_v31 = vcombine.high %v35_v24, %v43_v25 }
  0x9b   :  { %2316 = vmatmul.mubr.bf16.gmra.mxu1 %v2799_v32  ;;  %2347 = vmatpush1.bf16.msra.mxu0 %v3331_v30  ;;  %v2770_v30 = vcombine.high %v34_v20, %v42_v23  ;;  %v3401_v32 = vld [vmem:[%s4756_s1 + $0x660] ss:$8 sps:$4 sm:$0xff]  }
  0x9c   :  { %2428 = vmatpush1.bf16.msra.mxu1 %v3334_v35  ;;  %2348 = vmatprep.subr.bf16.mxu0 %v3339_v36  ;;  %v3412_v35 = vld [vmem:[%s4756_s1 + $0x754] ss:$8 sps:$4 sm:$0xff]   ;;  %v50_v36 = vld [vmem:[%s4757_s0 + $0x120] sm:$0xff] }
  0x9d   :  { %2429 = vmatprep.subr.bf16.mxu1 %v3342_v37  ;;  %2244 = vmatprep.mubr.bf16.mxu0 %v2814_v38  ;;  %v2769_v37 = vcombine.low %v34_v20, %v42_v23  ;;  %v2771_v38 = vcombine.low %v35_v24, %v43_v25  ;;  %v4409_v23 = vld [vmem:[%s4757_s0 + $0x78] sm:$0xff] }
  0x9e   :  { %2325 = vmatprep.mubr.bf16.mxu1 %v2816_v39  ;;  %v58_v39 = vld [vmem:[%s4757_s0 + $0x160] sm:$0xff]  ;;  %v3445_v24 = vld [vmem:[%s4756_s1 + $0x6f0] ss:$8 sps:$4 sm:$0xff]  }
  0x9f   :  { %2349 = vmatpush1.bf16.msra.mxu0 %v3337_v40  ;;  %v51_v40 = vld [vmem:[%s4757_s0 + $0x128] sm:$0xff]  ;;  %v3448_v25 = vld [vmem:[%s4756_s1 + $0x7f0] ss:$8 sps:$4 sm:$0xff]  }
  0xa0   :  { %2430 = vmatpush1.bf16.msra.mxu1 %v3340_v41  ;;  %2350 = vmatprep.subr.bf16.mxu0 %v3347_v42  ;;  %v59_v41 = vld [vmem:[%s4757_s0 + $0x168] sm:$0xff]  ;;  %v3407_v42 = vld [vmem:[%s4756_s1 + $0x650] ss:$8 sps:$4 sm:$0xff]  }
  0xa1   :  { %2431 = vmatprep.subr.bf16.mxu1 %v3350_v43  ;;  %v3410_v43 = vld [vmem:[%s4756_s1 + $0x750] ss:$8 sps:$4 sm:$0xff]  }
  0xa2   :  { %2245 = vmatmul.mubr.bf16.gmra.mxu0 %v2813_v46  ;;  %v2786_v46 = vcombine.high %v50_v36, %v58_v39 }
  0xa3   :  { %2326 = vmatmul.mubr.bf16.gmra.mxu1 %v2815_v47  ;;  %2351 = vmatpush2.bf16.msra.mxu0 %v3345_v50  ;;  %v2788_v47 = vcombine.high %v51_v40, %v59_v41  ;;  %v3421_v50 = vld [vmem:[%s4756_s1 + $0x634] ss:$8 sps:$4 sm:$0xff]  }
  0xa4   :  { %2432 = vmatpush2.bf16.msra.mxu1 %v3348_v51  ;;  %2352 = vmatprep.subr.bf16.mxu0 %v3355_v52  ;;  %v3424_v51 = vld [vmem:[%s4756_s1 + $0x734] ss:$8 sps:$4 sm:$0xff]   ;;  %v66_v52 = vld [vmem:[%s4757_s0 + $0x1a0] sm:$0xff] }
  0xa5   :  { %2433 = vmatprep.subr.bf16.mxu1 %v3358_v53  ;;  %2366 = vmatprep.mubr.bf16.mxu0 %v2754_v54  ;;  %v2785_v53 = vcombine.low %v50_v36, %v58_v39  ;;  %v2787_v54 = vcombine.low %v51_v40, %v59_v41  ;;  %v3467_v36 = vld [vmem:[%s4756_s1 + $0x6c4] ss:$8 sps:$4 sm:$0xff]   ;;  %v3468_v39 = vld [vmem:[%s4756_s1 + $0x7c0] ss:$8 sps:$4 sm:$0xff]   ;;  %v3473_v40 = vld [vmem:[%s4756_s1 + $0x6b4] ss:$8 sps:$4 sm:$0xff]  }
  0xa6   :  { %2447 = vmatprep.mubr.bf16.mxu1 %v2756_v55  ;;  %v74_v55 = vld [vmem:[%s4757_s0 + $0x1e0] sm:$0xff]  ;;  %v3476_v41 = vld [vmem:[%s4756_s1 + $0x7b4] ss:$8 sps:$4 sm:$0xff]  }
  0xa7   :  { %2353 = vmatpush2.bf16.msra.mxu0 %v3353_v56  ;;  %v67_v56 = vld [vmem:[%s4757_s0 + $0x1a8] sm:$0xff] }
  0xa8   :  { %2434 = vmatpush2.bf16.msra.mxu1 %v3356_v57  ;;  %2354 = vmatprep.subr.bf16.mxu0 %v3361_v58  ;;  %v75_v57 = vld [vmem:[%s4757_s0 + $0x1e8] sm:$0xff]  ;;  %v3419_v58 = vld [vmem:[%s4756_s1 + $0x630] ss:$8 sps:$4 sm:$0xff]  }
  0xa9   :  { %2435 = vmatprep.subr.bf16.mxu1 %v3364_v59  ;;  %v3422_v59 = vld [vmem:[%s4756_s1 + $0x730] ss:$8 sps:$4 sm:$0xff]  }
  0xab   :  { %2355 = vmatpush2.bf16.msra.mxu0 %v3359_v60  ;;  %v3427_v60 = vld [vmem:[%s4756_s1 + $0x624] ss:$8 sps:$4 sm:$0xff]  }
  0xac   :  { %2436 = vmatpush2.bf16.msra.mxu1 %v3362_v61  ;;  %2356 = vmatprep.subr.bf16.mxu0 %v3367_v62  ;;  %v3430_v61 = vld [vmem:[%s4756_s1 + $0x724] ss:$8 sps:$4 sm:$0xff]   ;;  %v2802_v62 = vcombine.high %v66_v52, %v74_v55 }
  0xad   :  { %2437 = vmatprep.subr.bf16.mxu1 %v3370_v63  ;;  %v2804_v63 = vcombine.high %v67_v56, %v75_v57 }
  0xaf   :  { %2357 = vmatpush2.bf16.msra.mxu0 %v3365_v0  ;;  %v3425_v0 = vld [vmem:[%s4756_s1 + $0x620] ss:$8 sps:$4 sm:$0xff]  }
  0xb0   :  { %2438 = vmatpush2.bf16.msra.mxu1 %v3368_v1  ;;  %2358 = vmatprep.subr.bf16.mxu0 %v3373_v2  ;;  %v3428_v1 = vld [vmem:[%s4756_s1 + $0x720] ss:$8 sps:$4 sm:$0xff]   ;;  %v3433_v2 = vld [vmem:[%s4756_s1 + $0x614] ss:$8 sps:$4 sm:$0xff]  }
  0xb1   :  { %2439 = vmatprep.subr.bf16.mxu1 %v3376_v3  ;;  %v3436_v3 = vld [vmem:[%s4756_s1 + $0x714] ss:$8 sps:$4 sm:$0xff]  }
  0xb3   :  { %2359 = vmatpush2.bf16.msra.mxu0 %v3371_v4  ;;  %v2801_v4 = vcombine.low %v66_v52, %v74_v55  ;;  %v3486_v52 = vld [vmem:[%s4756_s1 + $0x790] ss:$8 sps:$4 sm:$0xff]   ;;  %v3494_v55 = vld [vmem:[%s4756_s1 + $0x784] ss:$8 sps:$4 sm:$0xff]  }
  0xb4   :  { %2440 = vmatpush2.bf16.msra.mxu1 %v3374_v5  ;;  %2360 = vmatprep.subr.bf16.mxu0 %v3379_v6  ;;  %v2803_v5 = vcombine.low %v67_v56, %v75_v57  ;;  %v82_v6 = vld [vmem:[%s4757_s0 + $0x220] sm:$0xff] }
  0xb5   :  { %2441 = vmatprep.subr.bf16.mxu1 %v3382_v7  ;;  %v83_v7 = vld [vmem:[%s4757_s0 + $0x228] sm:$0xff] }
  0xb6   :  { %v2819_v20 = vcombine.low %v83_v7, %v83_v7  ;;  %v3489_v56 = vld [vmem:[%s4756_s1 + $0x680] ss:$8 sps:$4 sm:$0xff]  }
  0xb7   :  { %2361 = vmatpush2.bf16.msra.mxu0 %v3377_v8  ;;  %v3431_v8 = vld [vmem:[%s4756_s1 + $0x610] ss:$8 sps:$4 sm:$0xff]   ;;  %v3492_v57 = vld [vmem:[%s4756_s1 + $0x780] ss:$8 sps:$4 sm:$0xff]  }
  0xb8   :  { %2442 = vmatpush2.bf16.msra.mxu1 %v3380_v9  ;;  %2362 = vmatprep.subr.bf16.mxu0 %v3385_v10  ;;  %v3434_v9 = vld [vmem:[%s4756_s1 + $0x710] ss:$8 sps:$4 sm:$0xff]   ;;  %v3439_v10 = vld [vmem:[%s4756_s1 + $0x604] ss:$8 sps:$4 sm:$0xff]  }
  0xb9   :  { %2443 = vmatprep.subr.bf16.mxu1 %v3388_v11  ;;  %v3442_v11 = vld [vmem:[%s4756_s1 + $0x704] ss:$8 sps:$4 sm:$0xff]  }
  0xbb   :  { %2363 = vmatpush2.bf16.msra.mxu0 %v3383_v12  ;;  %v2818_v12 = vcombine.high %v82_v6, %v82_v6 }
  0xbc   :  { %2444 = vmatpush2.bf16.msra.mxu1 %v3386_v13  ;;  %2364 = vmatprep.subr.bf16.mxu0 %v3391_v14  ;;  %v2820_v13 = vcombine.high %v83_v7, %v83_v7  ;;  %v3437_v14 = vld [vmem:[%s4756_s1 + $0x600] ss:$8 sps:$4 sm:$0xff]  }
  0xbd   :  { %2445 = vmatprep.subr.bf16.mxu1 %v3394_v15  ;;  %v3440_v15 = vld [vmem:[%s4756_s1 + $0x700] ss:$8 sps:$4 sm:$0xff]  }
  0xbf   :  { %2365 = vmatpush2.bf16.msra.mxu0 %v3389_v16  ;;  %v3447_v16 = vld [vmem:[%s4756_s1 + $0x6f4] ss:$8 sps:$4 sm:$0xff]  }
  0xc0   :  { %2446 = vmatpush2.bf16.msra.mxu1 %v3392_v17  ;;  %2496 = vmatprep.subr.bf16.mxu0 %v3397_v18  ;;  %v3450_v17 = vld [vmem:[%s4756_s1 + $0x7f4] ss:$8 sps:$4 sm:$0xff]  }
  0xc1   :  { %2577 = vmatprep.subr.bf16.mxu1 %v3400_v19  ;;  %v4394_v18 = vld [vmem:[%s4757_s0 + $0x30] sm:$0xff]  ;;  %v2817_v19 = vcombine.low %v82_v6, %v82_v6 }
  0xc2   :  { %2367 = vmatmul.mubr.bf16.vlgmr.msra.gmra.mxu0 %v2753_v21  ;;  %v4399_v21 = vld [vmem:[%s4757_s0 + $0x70] sm:$0xff] }
  0xc3   :  { %2448 = vmatmul.mubr.bf16.vlgmr.msra.gmra.mxu1 %v2755_v22  ;;  %2497 = vmatpush1.bf16.msra.mxu0 %v3395_v26  ;;  %v4404_v22 = vld [vmem:[%s4757_s0 + $0x38] sm:$0xff]  ;;  %v3455_v26 = vld [vmem:[%s4756_s1 + $0x6e4] ss:$8 sps:$4 sm:$0xff]  }
  0xc4   :  { %2578 = vmatpush1.bf16.msra.mxu1 %v3398_v27  ;;  %2498 = vmatprep.subr.bf16.mxu0 %v3403_v28  ;;  %v3458_v27 = vld [vmem:[%s4756_s1 + $0x7e4] ss:$8 sps:$4 sm:$0xff]   ;;  %v2758_v28 = vcombine.high %v4394_v18, %v4399_v21 }
  0xc5   :  { %2579 = vmatprep.subr.bf16.mxu1 %v3406_v29  ;;  %2376 = vmatprep.mubr.bf16.mxu0 %v2770_v30  ;;  %v2760_v29 = vcombine.high %v4404_v22, %v4409_v23  ;;  %v3453_v30 = vld [vmem:[%s4756_s1 + $0x6e0] ss:$8 sps:$4 sm:$0xff]  }
  0xc6   :  { %2457 = vmatprep.mubr.bf16.mxu1 %v2772_v31  ;;  %v3456_v31 = vld [vmem:[%s4756_s1 + $0x7e0] ss:$8 sps:$4 sm:$0xff]  }
  0xc7   :  { %2499 = vmatpush1.bf16.msra.mxu0 %v3401_v32  ;;  %v3461_v32 = vld [vmem:[%s4756_s1 + $0x6d4] ss:$8 sps:$4 sm:$0xff]  }
  0xc8   :  { %2580 = vmatpush1.bf16.msra.mxu1 %v3404_v33  ;;  %2500 = vmatprep.subr.bf16.mxu0 %v3409_v34  ;;  %v3464_v33 = vld [vmem:[%s4756_s1 + $0x7d4] ss:$8 sps:$4 sm:$0xff]   ;;  %v3459_v34 = vld [vmem:[%s4756_s1 + $0x6d0] ss:$8 sps:$4 sm:$0xff]  }
  0xc9   :  { %2581 = vmatprep.subr.bf16.mxu1 %v3412_v35  ;;  %v3462_v35 = vld [vmem:[%s4756_s1 + $0x7d0] ss:$8 sps:$4 sm:$0xff]  }
  0xca   :  { %2377 = vmatmul.mubr.bf16.gmra.mxu0 %v2769_v37  ;;  %v3470_v37 = vld [vmem:[%s4756_s1 + $0x7c4] ss:$8 sps:$4 sm:$0xff]  }
  0xcb   :  { %2458 = vmatmul.mubr.bf16.gmra.mxu1 %v2771_v38  ;;  %2501 = vmatpush1.bf16.msra.mxu0 %v3407_v42  ;;  %v3465_v38 = vld [vmem:[%s4756_s1 + $0x6c0] ss:$8 sps:$4 sm:$0xff]   ;;  %v3471_v42 = vld [vmem:[%s4756_s1 + $0x6b0] ss:$8 sps:$4 sm:$0xff]  }
  0xcc   :  { %2582 = vmatpush1.bf16.msra.mxu1 %v3410_v43  ;;  %2502 = vmatprep.subr.bf16.mxu0 %v3415_v44  ;;  %v3474_v43 = vld [vmem:[%s4756_s1 + $0x7b0] ss:$8 sps:$4 sm:$0xff]   ;;  %v3479_v44 = vld [vmem:[%s4756_s1 + $0x6a4] ss:$8 sps:$4 sm:$0xff]  }
  0xcd   :  { %2583 = vmatprep.subr.bf16.mxu1 %v3418_v45  ;;  %2386 = vmatprep.mubr.bf16.mxu0 %v2786_v46  ;;  %v3482_v45 = vld [vmem:[%s4756_s1 + $0x7a4] ss:$8 sps:$4 sm:$0xff]   ;;  %v3477_v46 = vld [vmem:[%s4756_s1 + $0x6a0] ss:$8 sps:$4 sm:$0xff]  }
  0xce   :  { %2467 = vmatprep.mubr.bf16.mxu1 %v2788_v47  ;;  %v3480_v47 = vld [vmem:[%s4756_s1 + $0x7a0] ss:$8 sps:$4 sm:$0xff]  }
  0xcf   :  { %2503 = vmatpush1.bf16.msra.mxu0 %v3413_v48  ;;  %v344_v48 = vlaneseq }
  0xd0   :  { %2584 = vmatpush1.bf16.msra.mxu1 %v3416_v49  ;;  %2504 = vmatprep.subr.bf16.mxu0 %v3421_v50  ;;  %v3485_v49 = vld [vmem:[%s4756_s1 + $0x694] ss:$8 sps:$4 sm:$0xff]  }
  0xd1   :  { %2585 = vmatprep.subr.bf16.mxu1 %v3424_v51  ;;  %v3488_v50 = vld [vmem:[%s4756_s1 + $0x794] ss:$8 sps:$4 sm:$0xff]   ;;  %v3483_v51 = vld [vmem:[%s4756_s1 + $0x690] ss:$8 sps:$4 sm:$0xff]  }
  0xd2   :  { %2387 = vmatmul.mubr.bf16.gmra.mxu0 %v2785_v53  ;;  %v345_v53 = vshrl.u32 %v344_v48, 7 }
  0xd3   :  { %2468 = vmatmul.mubr.bf16.gmra.mxu1 %v2787_v54  ;;  %2505 = vmatpush1.bf16.msra.mxu0 %v3419_v58  ;;  %v3491_v54 = vld [vmem:[%s4756_s1 + $0x684] ss:$8 sps:$4 sm:$0xff]   ;;  %v342_v58 = vld [vmem:[%s4758_s2] sm:$0x3] }
  0xd4   :  { %2586 = vmatpush1.bf16.msra.mxu1 %v3422_v59  ;;  %2506 = vmatprep.subr.bf16.mxu0 %v3427_v60  ;;  %v346_v59 = vsub.s32 0, %v345_v53  ;;  %v36_v60 = vld [vmem:[%s4757_s0 + $0xb0] sm:$0xff] }
  0xd5   :  { %2587 = vmatprep.subr.bf16.mxu1 %v3430_v61  ;;  %2396 = vmatprep.mubr.bf16.mxu0 %v2802_v62  ;;  %v44_v61 = vld [vmem:[%s4757_s0 + $0xf0] sm:$0xff]  ;;  %v37_v62 = vld [vmem:[%s4757_s0 + $0xb8] sm:$0xff] }
  0xd6   :  { %2477 = vmatprep.mubr.bf16.mxu1 %v2804_v63  ;;  %v45_v63 = vld [vmem:[%s4757_s0 + $0xf8] sm:$0xff] }
  0xd7   :  { %2507 = vmatpush1.bf16.msra.mxu0 %v3425_v0  ;;  %v350_v0 = vsub.s32 1, %v345_v53 }
  0xd8   :  { %2588 = vmatpush1.bf16.msra.mxu1 %v3428_v1  ;;  %2508 = vmatprep.subr.bf16.mxu0 %v3433_v2  ;;  %v2757_v1 = vcombine.low %v4394_v18, %v4399_v21  ;;  %v2759_v2 = vcombine.low %v4404_v22, %v4409_v23  ;;  %v2775_v21 = vcombine.low %v37_v62, %v45_v63 }
  0xd9   :  { %2589 = vmatprep.subr.bf16.mxu1 %v3436_v3  ;;  %v4524_v3 = vrot.slane %v342_v58, %v346_v59  ;;  %v4526_v6 = vrot.slane %v342_v58, %v350_v0  ;;  %v84_v58 = vld [vmem:[%s4757_s0 + $0x230] sm:$0xff]  ;;  %v85_v59 = vld [vmem:[%s4757_s0 + $0x238] sm:$0xff] }
  0xda   :  { %2397 = vmatmul.mubr.bf16.gmra.mxu0 %v2801_v4  ;;  %v2774_v4 = vcombine.high %v36_v60, %v44_v61 }
  0xdb   :  { %2478 = vmatmul.mubr.bf16.gmra.mxu1 %v2803_v5  ;;  %2509 = vmatpush1.bf16.msra.mxu0 %v3431_v8  ;;  %v2776_v5 = vcombine.high %v37_v62, %v45_v63 }
  0xdc   :  { %2590 = vmatpush1.bf16.msra.mxu1 %v3434_v9  ;;  %2510 = vmatprep.subr.bf16.mxu0 %v3439_v10  ;;  %v52_v10 = vld [vmem:[%s4757_s0 + $0x130] sm:$0xff] }
  0xdd   :  { %2591 = vmatprep.subr.bf16.mxu1 %v3442_v11  ;;  %2406 = vmatprep.mubr.bf16.mxu0 %v2818_v12 }
  0xde   :  { %2487 = vmatprep.mubr.bf16.mxu1 %v2820_v13  ;;  %v60_v13 = vld [vmem:[%s4757_s0 + $0x170] sm:$0xff] }
  0xdf   :  { %2511 = vmatpush1.bf16.msra.mxu0 %v3437_v14  ;;  %v53_v14 = vld [vmem:[%s4757_s0 + $0x138] sm:$0xff] }
  0xe0   :  { %2592 = vmatpush1.bf16.msra.mxu1 %v3440_v15  ;;  %2512 = vmatprep.subr.bf16.mxu0 %v3447_v16  ;;  %v61_v15 = vld [vmem:[%s4757_s0 + $0x178] sm:$0xff] }
  0xe1   :  { %2593 = vmatprep.subr.bf16.mxu1 %v3450_v17 }
  0xe2   :  { %2407 = vmatmul.mubr.bf16.gmra.mxu0 %v2817_v19 }
  0xe3   :  { %2488 = vmatmul.mubr.bf16.gmra.mxu1 %v2819_v20  ;;  %2513 = vmatpush2.bf16.msra.mxu0 %v3445_v24  ;;  %v2773_v20 = vcombine.low %v36_v60, %v44_v61  ;;  %v2790_v24 = vcombine.high %v52_v10, %v60_v13 }
  0xe4   :  { %2594 = vmatpush2.bf16.msra.mxu1 %v3448_v25  ;;  %2514 = vmatprep.subr.bf16.mxu0 %v3455_v26  ;;  %v2792_v25 = vcombine.high %v53_v14, %v61_v15 }
  0xe5   :  { %2595 = vmatprep.subr.bf16.mxu1 %v3458_v27  ;;  %2528 = vmatprep.mubr.bf16.mxu0 %v2758_v28 }
  0xe6   :  { %2609 = vmatprep.mubr.bf16.mxu1 %v2760_v29 }
  0xe7   :  { %2515 = vmatpush2.bf16.msra.mxu0 %v3453_v30 }
  0xe8   :  { %2596 = vmatpush2.bf16.msra.mxu1 %v3456_v31  ;;  %2516 = vmatprep.subr.bf16.mxu0 %v3461_v32 }
  0xe9   :  { %2597 = vmatprep.subr.bf16.mxu1 %v3464_v33  ;;  %v68_v33 = vld [vmem:[%s4757_s0 + $0x1b0] sm:$0xff] }
  0xeb   :  { %2517 = vmatpush2.bf16.msra.mxu0 %v3459_v34 }
  0xec   :  { %2598 = vmatpush2.bf16.msra.mxu1 %v3462_v35  ;;  %2518 = vmatprep.subr.bf16.mxu0 %v3467_v36  ;;  %v76_v35 = vld [vmem:[%s4757_s0 + $0x1f0] sm:$0xff]  ;;  %v69_v36 = vld [vmem:[%s4757_s0 + $0x1b8] sm:$0xff] }
  0xed   :  { %2599 = vmatprep.subr.bf16.mxu1 %v3470_v37  ;;  %v77_v37 = vld [vmem:[%s4757_s0 + $0x1f8] sm:$0xff]  ;;  %v2805_v0 = vcombine.low %v68_v33, %v76_v35 }
  0xef   :  { %2519 = vmatpush2.bf16.msra.mxu0 %v3465_v38 }
  0xf0   :  { %2600 = vmatpush2.bf16.msra.mxu1 %v3468_v39  ;;  %2520 = vmatprep.subr.bf16.mxu0 %v3473_v40 }
  0xf1   :  { %2601 = vmatprep.subr.bf16.mxu1 %v3476_v41 }
  0xf3   :  { %2521 = vmatpush2.bf16.msra.mxu0 %v3471_v42  ;;  %v2789_v42 = vcombine.low %v52_v10, %v60_v13 }
  0xf4   :  { %2602 = vmatpush2.bf16.msra.mxu1 %v3474_v43  ;;  %2522 = vmatprep.subr.bf16.mxu0 %v3479_v44  ;;  %v2791_v43 = vcombine.low %v53_v14, %v61_v15 }
  0xf5   :  { %2603 = vmatprep.subr.bf16.mxu1 %v3482_v45 }
  0xf7   :  { %2523 = vmatpush2.bf16.msra.mxu0 %v3477_v46  ;;  %v2806_v46 = vcombine.high %v68_v33, %v76_v35 }
  0xf8   :  { %2604 = vmatpush2.bf16.msra.mxu1 %v3480_v47  ;;  %2524 = vmatprep.subr.bf16.mxu0 %v3485_v49  ;;  %v2808_v47 = vcombine.high %v69_v36, %v77_v37 }
  0xf9   :  { %2605 = vmatprep.subr.bf16.mxu1 %v3488_v50 }
  0xfb   :  { %2525 = vmatpush2.bf16.msra.mxu0 %v3483_v51 }
  0xfc   :  { %2606 = vmatpush2.bf16.msra.mxu1 %v3486_v52  ;;  %2526 = vmatprep.subr.bf16.mxu0 %v3491_v54 }
  0xfd   :  { %2607 = vmatprep.subr.bf16.mxu1 %v3494_v55 }
  0xff   :  { %2527 = vmatpush2.bf16.msra.mxu0 %v3489_v56 }
 0x100   :  { %2608 = vmatpush2.bf16.msra.mxu1 %v3492_v57 }
 0x102   :  { %v2044_v7 = vpop.f32.mrf.mxu0  ;;  %2529 = vmatmul.mubr.bf16.vlgmr.msra.gmra.mxu0 %v2757_v1  ;;  %v2807_v1 = vcombine.low %v69_v36, %v77_v37 }
 0x103   :  { %v2125_v8 = vpop.f32.mrf.mxu1  ;;  %2610 = vmatmul.mubr.bf16.vlgmr.msra.gmra.mxu1 %v2759_v2  ;;  %v2045_v9 = vadd.f32 %v2044_v7, %v4524_v3  ;;  %2538 = vmatprep.mubr.bf16.mxu0 %v2774_v4  ;;  %v2824_v7 = vcombine.high %v85_v59, %v85_v59 }
 0x104   :  { %2619 = vmatprep.mubr.bf16.mxu1 %v2776_v5  ;;  %v2046_v11 = vpop.f32.mrf.mxu0  ;;  %v2822_v5 = vcombine.high %v84_v58, %v84_v58 }
 0x105   :  { %v2127_v12 = vpop.f32.mrf.mxu1  ;;  %v4541_v16 = vadd.f32 %v2125_v8, %v2045_v9  ;;  %v2047_v17 = vadd.f32 %v2046_v11, %v4526_v6 }
 0x106   :  { %v2048_v18 = vpop.f32.mrf.mxu0 }
 0x107   :  { %v2129_v19 = vpop.f32.mrf.mxu1  ;;  %v4544_v22 = vadd.f32 %v2127_v12, %v2047_v17  ;;  %v2049_v23 = vadd.f32 %v2048_v18, %v4524_v3 }
 0x108   :  { %v2050_v26 = vpop.f32.mrf.mxu0 }
 0x109   :  { %v2131_v27 = vpop.f32.mrf.mxu1  ;;  %v4547_v28 = vadd.f32 %v2129_v19, %v2049_v23  ;;  %v2051_v29 = vadd.f32 %v2050_v26, %v4526_v6 }
 0x10a   :  { %2539 = vmatmul.mubr.bf16.gmra.mxu0 %v2773_v20  ;;  %v2054_v30 = vpop.f32.mrf.mxu0 }
 0x10b   :  { %2620 = vmatmul.mubr.bf16.gmra.mxu1 %v2775_v21  ;;  %v2135_v31 = vpop.f32.mrf.mxu1  ;;  %v4550_v32 = vadd.f32 %v2131_v27, %v2051_v29  ;;  %2548 = vmatprep.mubr.bf16.mxu0 %v2790_v24  ;;  %v2055_v34 = vadd.f32 %v2054_v30, %v4524_v3  ;;  %v2821_v24 = vcombine.low %v84_v58, %v84_v58 }
 0x10c   :  { %2629 = vmatprep.mubr.bf16.mxu1 %v2792_v25  ;;  %v2056_v38 = vpop.f32.mrf.mxu0  ;;  %v2823_v25 = vcombine.low %v85_v59, %v85_v59 }
 0x10d   :  { %v2137_v39 = vpop.f32.mrf.mxu1  ;;  %v2057_v40 = vadd.f32 %v2056_v38, %v4526_v6  ;;  %v4566_v41 = vadd.f32 %v2135_v31, %v2055_v34 }
 0x10e   :  { %v2058_v44 = vpop.f32.mrf.mxu0 }
 0x10f   :  { %v2139_v45 = vpop.f32.mrf.mxu1  ;;  %v2059_v48 = vadd.f32 %v2058_v44, %v4524_v3  ;;  %v4569_v49 = vadd.f32 %v2137_v39, %v2057_v40 }
 0x110   :  { %v2060_v50 = vpop.f32.mrf.mxu0 }
 0x111   :  { %v2141_v51 = vpop.f32.mrf.mxu1  ;;  %v2061_v52 = vadd.f32 %v2060_v50, %v4526_v6  ;;  %v4572_v53 = vadd.f32 %v2139_v45, %v2059_v48 }
 0x112   :  { %2549 = vmatmul.mubr.bf16.gmra.mxu0 %v2789_v42  ;;  %v2064_v54 = vpop.f32.mrf.mxu0 }
 0x113   :  { %2630 = vmatmul.mubr.bf16.gmra.mxu1 %v2791_v43  ;;  %v2145_v55 = vpop.f32.mrf.mxu1  ;;  %2558 = vmatprep.mubr.bf16.mxu0 %v2806_v46  ;;  %v2065_v56 = vadd.f32 %v2064_v54, %v4524_v3  ;;  %v4575_v57 = vadd.f32 %v2141_v51, %v2061_v52 }
 0x114   :  { %2639 = vmatprep.mubr.bf16.mxu1 %v2808_v47  ;;  %v2066_v60 = vpop.f32.mrf.mxu0 }
 0x115   :  { %v2147_v61 = vpop.f32.mrf.mxu1  ;;  %v2067_v62 = vadd.f32 %v2066_v60, %v4526_v6  ;;  %v4584_v63 = vadd.f32 %v2145_v55, %v2065_v56 }
 0x116   :  { %v2068_v2 = vpop.f32.mrf.mxu0 }
 0x117   :  { %v2149_v4 = vpop.f32.mrf.mxu1  ;;  %v2069_v8 = vadd.f32 %v2068_v2, %v4524_v3  ;;  %v4587_v9 = vadd.f32 %v2147_v61, %v2067_v62 }
 0x118   :  { %v2070_v10 = vpop.f32.mrf.mxu0 }
 0x119   :  { %v2151_v11 = vpop.f32.mrf.mxu1  ;;  %v2071_v12 = vadd.f32 %v2070_v10, %v4526_v6  ;;  %v4590_v13 = vadd.f32 %v2149_v4, %v2069_v8 }
 0x11a   :  { %2559 = vmatmul.mubr.bf16.gmra.mxu0 %v2805_v0  ;;  %v2074_v14 = vpop.f32.mrf.mxu0 }
 0x11b   :  { %2640 = vmatmul.mubr.bf16.gmra.mxu1 %v2807_v1  ;;  %v2155_v15 = vpop.f32.mrf.mxu1  ;;  %2568 = vmatprep.mubr.bf16.mxu0 %v2822_v5  ;;  %v2075_v17 = vadd.f32 %v2074_v14, %v4524_v3  ;;  %v4593_v18 = vadd.f32 %v2151_v11, %v2071_v12 }
 0x11c   :  { %2649 = vmatprep.mubr.bf16.mxu1 %v2824_v7  ;;  %v2076_v19 = vpop.f32.mrf.mxu0 }
 0x11d   :  { %v2157_v20 = vpop.f32.mrf.mxu1  ;;  %v2077_v21 = vadd.f32 %v2076_v19, %v4526_v6  ;;  %v4596_v23 = vadd.f32 %v2155_v15, %v2075_v17 }
 0x11e   :  { %v2078_v26 = vpop.f32.mrf.mxu0 }
 0x11f   :  { %v2159_v27 = vpop.f32.mrf.mxu1  ;;  %v2079_v29 = vadd.f32 %v2078_v26, %v4524_v3  ;;  %v4599_v30 = vadd.f32 %v2157_v20, %v2077_v21 }
 0x120   :  { %v2080_v31 = vpop.f32.mrf.mxu0 }
 0x121   :  { %v2161_v33 = vpop.f32.mrf.mxu1  ;;  %v2081_v34 = vadd.f32 %v2080_v31, %v4526_v6  ;;  %v4602_v35 = vadd.f32 %v2159_v27, %v2079_v29 }
 0x122   :  { %2569 = vmatmul.mubr.bf16.gmra.mxu0 %v2821_v24  ;;  %v2084_v36 = vpop.f32.mrf.mxu0 }
 0x123   :  { %2650 = vmatmul.mubr.bf16.gmra.mxu1 %v2823_v25  ;;  %v2165_v37 = vpop.f32.mrf.mxu1  ;;  %v2085_v38 = vadd.f32 %v2084_v36, %v4524_v3  ;;  %v4605_v39 = vadd.f32 %v2161_v33, %v2081_v34 }
 0x124   :  { %v2086_v40 = vpop.f32.mrf.mxu0 }
 0x125   :  { %v2167_v42 = vpop.f32.mrf.mxu1  ;;  %v2087_v43 = vadd.f32 %v2086_v40, %v4526_v6  ;;  %v4608_v44 = vadd.f32 %v2165_v37, %v2085_v38 }
 0x126   :  { %v2088_v45 = vpop.f32.mrf.mxu0 }
 0x127   :  { %v2169_v46 = vpop.f32.mrf.mxu1  ;;  %v4610_v47 = vadd.f32 %v2167_v42, %v2087_v43 }
 0x128   :  { %v2089_v48 = vpop.f32.mrf.mxu0 }
 0x129   :  { %v2170_v50 = vpop.f32.mrf.mxu1 }
 0x142   :  { %v2206_v51 = vpop.f32.mrf.mxu0 }
 0x143   :  { %v2287_v52 = vpop.f32.mrf.mxu1  ;;  %v2207_v54 = vadd.f32 %v2206_v51, %v4541_v16 }
 0x144   :  { %v2208_v55 = vpop.f32.mrf.mxu0 }
 0x145   :  { %v2289_v3 = vpop.f32.mrf.mxu1  ;;  %v4613_v56 = vadd.f32 %v2287_v52, %v2207_v54  ;;  %v2209_v58 = vadd.f32 %v2208_v55, %v4544_v22 }
 0x146   :  { %v2210_v59 = vpop.f32.mrf.mxu0 }
 0x147   :  { %v2291_v6 = vpop.f32.mrf.mxu1  ;;  %v4616_v60 = vadd.f32 %v2289_v3, %v2209_v58  ;;  %v2211_v61 = vadd.f32 %v2210_v59, %v4547_v28 }
 0x148   :  { %v2212_v62 = vpop.f32.mrf.mxu0 }
 0x149   :  { %v2293_v0 = vpop.f32.mrf.mxu1  ;;  %v4619_v1 = vadd.f32 %v2291_v6, %v2211_v61  ;;  %v2213_v2 = vadd.f32 %v2212_v62, %v4550_v32 }
 0x14a   :  { %v2216_v4 = vpop.f32.mrf.mxu0 }
 0x14b   :  { %v2297_v16 = vpop.f32.mrf.mxu1  ;;  %v4622_v5 = vadd.f32 %v2293_v0, %v2213_v2  ;;  %v2217_v7 = vadd.f32 %v2216_v4, %v4566_v41 }
 0x14c   :  { %v2218_v8 = vpop.f32.mrf.mxu0 }
 0x14d   :  { %v2299_v22 = vpop.f32.mrf.mxu1  ;;  %v2219_v10 = vadd.f32 %v2218_v8, %v4569_v49  ;;  %v4626_v11 = vadd.f32 %v2297_v16, %v2217_v7 }
 0x14e   :  { %v2220_v12 = vpop.f32.mrf.mxu0 }
 0x14f   :  { %v2301_v28 = vpop.f32.mrf.mxu1  ;;  %v2221_v14 = vadd.f32 %v2220_v12, %v4572_v53  ;;  %v4629_v15 = vadd.f32 %v2299_v22, %v2219_v10 }
 0x150   :  { %v2222_v17 = vpop.f32.mrf.mxu0 }
 0x151   :  { %v2303_v32 = vpop.f32.mrf.mxu1  ;;  %v2223_v19 = vadd.f32 %v2222_v17, %v4575_v57  ;;  %v4632_v20 = vadd.f32 %v2301_v28, %v2221_v14 }
 0x152   :  { %v2226_v21 = vpop.f32.mrf.mxu0 }
 0x153   :  { %v2307_v41 = vpop.f32.mrf.mxu1  ;;  %v2227_v24 = vadd.f32 %v2226_v21, %v4584_v63  ;;  %v4635_v25 = vadd.f32 %v2303_v32, %v2223_v19 }
 0x154   :  { %v2228_v49 = vpop.f32.mrf.mxu0 }
 0x155   :  { %v2309_v26 = vpop.f32.mrf.mxu1  ;;  %v2229_v27 = vadd.f32 %v2228_v49, %v4587_v9  ;;  %v4638_v29 = vadd.f32 %v2307_v41, %v2227_v24 }
 0x156   :  { %v2230_v53 = vpop.f32.mrf.mxu0 }
 0x157   :  { %v2311_v31 = vpop.f32.mrf.mxu1  ;;  %v2231_v33 = vadd.f32 %v2230_v53, %v4590_v13  ;;  %v4641_v34 = vadd.f32 %v2309_v26, %v2229_v27 }
 0x158   :  { %v2232_v57 = vpop.f32.mrf.mxu0 }
 0x159   :  { %v2313_v36 = vpop.f32.mrf.mxu1  ;;  %v2233_v37 = vadd.f32 %v2232_v57, %v4593_v18  ;;  %v2312_v38 = vadd.f32 %v2311_v31, %v2231_v33 }
 0x15a   :  { %v2236_v63 = vpop.f32.mrf.mxu0 }
 0x15b   :  { %v2317_v40 = vpop.f32.mrf.mxu1  ;;  %v2237_v42 = vadd.f32 %v2236_v63, %v4596_v23  ;;  %v4645_v43 = vadd.f32 %v2313_v36, %v2233_v37 }
 0x15c   :  { %v2238_v9 = vpop.f32.mrf.mxu0 }
 0x15d   :  { %v2319_v45 = vpop.f32.mrf.mxu1  ;;  %v2239_v46 = vadd.f32 %v2238_v9, %v4599_v30  ;;  %v2318_v48 = vadd.f32 %v2317_v40, %v2237_v42 }
 0x15e   :  { %v2240_v50 = vpop.f32.mrf.mxu0 }
 0x15f   :  { %v2321_v13 = vpop.f32.mrf.mxu1  ;;  %v2241_v51 = vadd.f32 %v2240_v50, %v4602_v35  ;;  %v4649_v52 = vadd.f32 %v2319_v45, %v2239_v46 }
 0x160   :  { %v2242_v54 = vpop.f32.mrf.mxu0 }
 0x161   :  { %v2323_v18 = vpop.f32.mrf.mxu1  ;;  %v2243_v55 = vadd.f32 %v2242_v54, %v4605_v39  ;;  %v2322_v3 = vadd.f32 %v2321_v13, %v2241_v51 }
 0x162   :  { %v2246_v58 = vpop.f32.mrf.mxu0 }
 0x163   :  { %v2327_v23 = vpop.f32.mrf.mxu1  ;;  %v2247_v59 = vadd.f32 %v2246_v58, %v4608_v44  ;;  %v4653_v6 = vadd.f32 %v2323_v18, %v2243_v55 }
 0x164   :  { %v2248_v61 = vpop.f32.mrf.mxu0 }
 0x165   :  { %v2329_v30 = vpop.f32.mrf.mxu1  ;;  %v2249_v62 = vadd.f32 %v2248_v61, %v4610_v47  ;;  %v2328_v0 = vadd.f32 %v2327_v23, %v2247_v59 }
 0x166   :  { %v2250_v2 = vpop.f32.mrf.mxu0 }
 0x167   :  { %v2331_v35 = vpop.f32.mrf.mxu1  ;;  %v4656_v4 = vadd.f32 %v2329_v30, %v2249_v62 }
 0x168   :  { %v2251_v16 = vpop.f32.mrf.mxu0 }
 0x169   :  { %v2332_v7 = vpop.f32.mrf.mxu1 }
 0x182   :  { %v2368_v8 = vpop.f32.mrf.mxu0 }
 0x183   :  { %v2449_v39 = vpop.f32.mrf.mxu1  ;;  %v2369_v22 = vadd.f32 %v2368_v8, %v4613_v56 }
 0x184   :  { %v2370_v10 = vpop.f32.mrf.mxu0 }
 0x185   :  { %v2451_v12 = vpop.f32.mrf.mxu1  ;;  %v2450_v44 = vadd.f32 %v2449_v39, %v2369_v22 }
 0x186   :  { %v2372_v28 = vpop.f32.mrf.mxu0 }
 0x187   :  { %v2453_v14 = vpop.f32.mrf.mxu1  ;;  %v2373_v17 = vadd.f32 %v2372_v28, %v4619_v1 }
 0x188   :  { %v2374_v32 = vpop.f32.mrf.mxu0 }
 0x189   :  { %v2455_v47 = vpop.f32.mrf.mxu1  ;;  %v2454_v19 = vadd.f32 %v2453_v14, %v2373_v17 }
 0x18a   :  { %v2378_v21 = vpop.f32.mrf.mxu0 }
 0x18b   :  { %v2459_v41 = vpop.f32.mrf.mxu1  ;;  %v2379_v24 = vadd.f32 %v2378_v21, %v4626_v11 }
 0x18c   :  { %v2380_v49 = vpop.f32.mrf.mxu0 }
 0x18d   :  { %v4661_v26 = vpop.f32.mrf.mxu1  ;;  %v4663_v27 = vadd.f32 %v2459_v41, %v2379_v24  ;;  %v2375_v24 = vadd.f32 %v2374_v32, %v4622_v5 }
 0x18e   :  { %v2382_v56 = vpop.f32.mrf.mxu0 }
 0x18f   :  { %v2463_v53 = vpop.f32.mrf.mxu1  ;;  %v2383_v31 = vadd.f32 %v2382_v56, %v4632_v20 }
 0x190   :  { %v2384_v33 = vpop.f32.mrf.mxu0 }
 0x191   :  { %v4666_v57 = vpop.f32.mrf.mxu1  ;;  %v4668_v1 = vadd.f32 %v2463_v53, %v2383_v31  ;;  %v2385_v5 = vadd.f32 %v2384_v33, %v4635_v25 }
 0x192   :  { %v2388_v36 = vpop.f32.mrf.mxu0 }
 0x193   :  { %v2469_v37 = vpop.f32.mrf.mxu1  ;;  %v2389_v63 = vadd.f32 %v2388_v36, %v4638_v29  ;;  %v2466_v25 = vadd.f32 %v4666_v57, %v2385_v5 }
 0x194   :  { %v4671_v40 = vpop.f32.mrf.mxu0 }
 0x195   :  { %v4673_v11 = vpop.f32.mrf.mxu1  ;;  %v4675_v42 = vadd.f32 %v2469_v37, %v2389_v63 }
 0x196   :  { %v2392_v9 = vpop.f32.mrf.mxu0 }
 0x197   :  { %v2473_v45 = vpop.f32.mrf.mxu1  ;;  %v2393_v46 = vadd.f32 %v2392_v9, %v2312_v38  ;;  %v2456_v9 = vadd.f32 %v2455_v47, %v2375_v24 }
 0x198   :  { %v4677_v50 = vpop.f32.mrf.mxu0 }
 0x199   :  { %v4679_v20 = vpop.f32.mrf.mxu1  ;;  %v4681_v13 = vadd.f32 %v2473_v45, %v2393_v46  ;;  %v2381_v45 = vadd.f32 %v2380_v49, %v4629_v15  ;;  %v2395_v57 = vadd.f32 %v4677_v50, %v4645_v43 }
 0x19a   :  { %v2398_v51 = vpop.f32.mrf.mxu0 }
 0x19b   :  { %v2479_v54 = vpop.f32.mrf.mxu1  ;;  %v2399_v18 = vadd.f32 %v2398_v51, %v2318_v48  ;;  %v2476_v43 = vadd.f32 %v4679_v20, %v2395_v57 }
 0x19c   :  { %v4683_v55 = vpop.f32.mrf.mxu0 }
 0x19d   :  { %v4685_v29 = vpop.f32.mrf.mxu1  ;;  %v4687_v58 = vadd.f32 %v2479_v54, %v2399_v18 }
 0x19e   :  { %v2402_v23 = vpop.f32.mrf.mxu0 }
 0x19f   :  { %v2483_v59 = vpop.f32.mrf.mxu1  ;;  %v2403_v61 = vadd.f32 %v2402_v23, %v2322_v3  ;;  %v2371_v3 = vadd.f32 %v2370_v10, %v4616_v60 }
 0x1a0   :  { %v4689_v30 = vpop.f32.mrf.mxu0 }
 0x1a1   :  { %v4691_v38 = vpop.f32.mrf.mxu1  ;;  %v4693_v62 = vadd.f32 %v2483_v59, %v2403_v61  ;;  %v2452_v41 = vadd.f32 %v2451_v12, %v2371_v3  ;;  %v2462_v59 = vadd.f32 %v4661_v26, %v2381_v45  ;;  %v2391_v26 = vadd.f32 %v4671_v40, %v4641_v34 }
 0x1a2   :  { %v2408_v2 = vpop.f32.mrf.mxu0  ;;  %v2405_v20 = vadd.f32 %v4689_v30, %v4653_v6 }
 0x1a3   :  { %v2489_v35 = vpop.f32.mrf.mxu1  ;;  %v2409_v16 = vadd.f32 %v2408_v2, %v2328_v0  ;;  %v2472_v34 = vadd.f32 %v4673_v11, %v2391_v26  ;;  %v2401_v11 = vadd.f32 %v4683_v55, %v4649_v52 }
 0x1a4   :  { %v4695_v7 = vpop.f32.mrf.mxu0  ;;  %v2486_v6 = vadd.f32 %v4691_v38, %v2405_v20 }
 0x1a5   :  { %v4697_v48 = vpop.f32.mrf.mxu1  ;;  %v4699_v8 = vadd.f32 %v2489_v35, %v2409_v16  ;;  %v2482_v52 = vadd.f32 %v4685_v29, %v2401_v11  ;;  %v2411_v29 = vadd.f32 %v4695_v7, %v4656_v4 }
 0x1a6   :  { %v2412_v39 = vpop.f32.mrf.mxu0 }
 0x1a7   :  { %v2493_v22 = vpop.f32.mrf.mxu1 }
 0x1a8   :  { %v2413_v28 = vpop.f32.mrf.mxu0 }
 0x1a9   :  { %v2494_v14 = vpop.f32.mrf.mxu1 }
 0x1c2   :  { %v2530_v17 = vpop.f32.mrf.mxu0 }
 0x1c3   :  { %v2611_v21 = vpop.f32.mrf.mxu1  ;;  %v2531_v56 = vadd.f32 %v2530_v17, %v2450_v44 }
 0x1c4   :  { %v2532_v53 = vpop.f32.mrf.mxu0 }
 0x1c5   :  { %v2613_v0 = vpop.f32.mrf.mxu1  ;;  %v2612_v31 = vadd.f32 %v2611_v21, %v2531_v56  ;;  %v2533_v36 = vadd.f32 %v2532_v53, %v2452_v41 }
 0x1c6   :  { %v2534_v37 = vpop.f32.mrf.mxu0 }
 0x1c7   :  { %v2615_v63 = vpop.f32.mrf.mxu1  ;;  %v2614_v46 = vadd.f32 %v2613_v0, %v2533_v36  ;;  %v2535_v51 = vadd.f32 %v2534_v37, %v2454_v19  ;;  %v2658_v60 = vmax.f32 %v2612_v31, 0.0 }
 0x1c8   :  { %v2536_v54 = vpop.f32.mrf.mxu0 }
 0x1c9   :  { %v2617_v18 = vpop.f32.mrf.mxu1  ;;  %v2659_v10 = vmax.f32 %v2614_v46, 0.0  ;;  %v2616_v23 = vadd.f32 %v2615_v63, %v2535_v51  ;;  %v2537_v12 = vadd.f32 %v2536_v54, %v2456_v9 }
 0x1ca   :  { %v2540_v44 = vpop.f32.mrf.mxu0 }
 0x1cb   :  { %v2621_v32 = vpop.f32.mrf.mxu1  ;;  %v3090_v61 = vpack.c.bf16 %v2659_v10, %v2658_v60  ;;  %v2618_v2 = vadd.f32 %v2617_v18, %v2537_v12  ;;  %v2541_v47 = vadd.f32 %v2540_v44, %v4663_v27  ;;  %v2660_v19 = vmax.f32 %v2616_v23, 0.0 }
 0x1cc   :  { %v2542_v35 = vpop.f32.mrf.mxu0 }
 0x1cd   :  { %v2623_v15 = vpop.f32.mrf.mxu1  ;;  %2732 = vst [vmem:[%s4759_s3] sm:$0xff] %v3090_v61  ;;  %v2661_v49 = vmax.f32 %v2618_v2, 0.0  ;;  %v2622_v16 = vadd.f32 %v2621_v32, %v2541_v47  ;;  %v2543_v39 = vadd.f32 %v2542_v35, %v2462_v59 }
 0x1ce   :  { %v2544_v33 = vpop.f32.mrf.mxu0 }
 0x1cf   :  { %v2625_v22 = vpop.f32.mrf.mxu1  ;;  %v3091_v28 = vpack.c.bf16 %v2661_v49, %v2660_v19  ;;  %v2624_v14 = vadd.f32 %v2623_v15, %v2543_v39  ;;  %v2545_v27 = vadd.f32 %v2544_v33, %v4668_v1  ;;  %v2662_v21 = vmax.f32 %v2622_v16, 0.0 }
 0x1d0   :  { %v2546_v3 = vpop.f32.mrf.mxu0 }
 0x1d1   :  { %v2627_v17 = vpop.f32.mrf.mxu1  ;;  %2733 = vst [vmem:[%s4759_s3 + $0x8] sm:$0xff] %v3091_v28  ;;  %v2663_v41 = vmax.f32 %v2624_v14, 0.0  ;;  %v2626_v24 = vadd.f32 %v2625_v22, %v2545_v27  ;;  %v2547_v56 = vadd.f32 %v2546_v3, %v2466_v25 }
 0x1d2   :  { %v2550_v53 = vpop.f32.mrf.mxu0 }
 0x1d3   :  { %v2631_v0 = vpop.f32.mrf.mxu1  ;;  %v3092_v40 = vpack.c.bf16 %v2663_v41, %v2662_v21  ;;  %v2628_v31 = vadd.f32 %v2627_v17, %v2547_v56  ;;  %v2551_v1 = vadd.f32 %v2550_v53, %v4675_v42  ;;  %v2664_v63 = vmax.f32 %v2626_v24, 0.0 }
 0x1d4   :  { %v2552_v36 = vpop.f32.mrf.mxu0  ;;  %v2492_v17 = vadd.f32 %v4697_v48, %v2411_v29 }
 0x1d5   :  { %v2633_v37 = vpop.f32.mrf.mxu1  ;;  %2734 = vst [vmem:[%s4759_s3 + $0x10] sm:$0xff] %v3092_v40  ;;  %v2665_v9 = vmax.f32 %v2628_v31, 0.0  ;;  %v2632_v45 = vadd.f32 %v2631_v0, %v2551_v1  ;;  %v2553_v46 = vadd.f32 %v2552_v36, %v2472_v34 }
 0x1d6   :  { %v2554_v50 = vpop.f32.mrf.mxu0 }
 0x1d7   :  { %v2635_v51 = vpop.f32.mrf.mxu1  ;;  %v3093_v54 = vpack.c.bf16 %v2665_v9, %v2664_v63  ;;  %v2634_v18 = vadd.f32 %v2633_v37, %v2553_v46  ;;  %v2555_v42 = vadd.f32 %v2554_v50, %v4681_v13  ;;  %v2666_v23 = vmax.f32 %v2632_v45, 0.0 }
 0x1d8   :  { %v2556_v60 = vpop.f32.mrf.mxu0 }
 0x1d9   :  { %v2637_v10 = vpop.f32.mrf.mxu1  ;;  %2735 = vst [vmem:[%s4759_s3 + $0x18] sm:$0xff] %v3093_v54  ;;  %v2667_v12 = vmax.f32 %v2634_v18, 0.0  ;;  %v2636_v5 = vadd.f32 %v2635_v51, %v2555_v42  ;;  %v2557_v44 = vadd.f32 %v2556_v60, %v2476_v43 }
 0x1da   :  { %v2560_v32 = vpop.f32.mrf.mxu0 }
 0x1db   :  { %v2641_v59 = vpop.f32.mrf.mxu1  ;;  %v3094_v55 = vpack.c.bf16 %v2667_v12, %v2666_v23  ;;  %v2638_v61 = vadd.f32 %v2637_v10, %v2557_v44  ;;  %v2561_v13 = vadd.f32 %v2560_v32, %v4687_v58  ;;  %v2668_v35 = vmax.f32 %v2636_v5, 0.0 }
 0x1dc   :  { %v2562_v2 = vpop.f32.mrf.mxu0 }
 0x1dd   :  { %v2643_v47 = vpop.f32.mrf.mxu1  ;;  %2736 = vst [vmem:[%s4759_s3 + $0x20] sm:$0xff] %v3094_v55  ;;  %v2669_v15 = vmax.f32 %v2638_v61, 0.0  ;;  %v2642_v19 = vadd.f32 %v2641_v59, %v2561_v13  ;;  %v2563_v49 = vadd.f32 %v2562_v2, %v2482_v52 }
 0x1de   :  { %v2564_v30 = vpop.f32.mrf.mxu0 }
 0x1df   :  { %v2645_v16 = vpop.f32.mrf.mxu1  ;;  %v3095_v39 = vpack.c.bf16 %v2669_v15, %v2668_v35  ;;  %v2644_v25 = vadd.f32 %v2643_v47, %v2563_v49  ;;  %v2565_v58 = vadd.f32 %v2564_v30, %v4693_v62  ;;  %v2670_v26 = vmax.f32 %v2642_v19, 0.0 }
 0x1e0   :  { %v2566_v33 = vpop.f32.mrf.mxu0 }
 0x1e1   :  { %v2647_v22 = vpop.f32.mrf.mxu1  ;;  %2737 = vst [vmem:[%s4759_s3 + $0x28] sm:$0xff] %v3095_v39  ;;  %v2671_v28 = vmax.f32 %v2644_v25, 0.0  ;;  %v2646_v14 = vadd.f32 %v2645_v16, %v2565_v58  ;;  %v2567_v27 = vadd.f32 %v2566_v33, %v2486_v6 }
 0x1e2   :  { %v2570_v38 = vpop.f32.mrf.mxu0 }
 0x1e3   :  { %v2651_v3 = vpop.f32.mrf.mxu1  ;;  %v3096_v21 = vpack.c.bf16 %v2671_v28, %v2670_v26  ;;  %v2648_v4 = vadd.f32 %v2647_v22, %v2567_v27  ;;  %v2571_v7 = vadd.f32 %v2570_v38, %v4699_v8  ;;  %v2672_v24 = vmax.f32 %v2646_v14, 0.0 }
 0x1e4   :  { %v2572_v41 = vpop.f32.mrf.mxu0 }
 0x1e5   :  { %v2653_v62 = vpop.f32.mrf.mxu1  ;;  %2738 = vst [vmem:[%s4759_s3 + $0x30] sm:$0xff] %v3096_v21  ;;  %v2673_v56 = vmax.f32 %v2648_v4, 0.0  ;;  %v2652_v57 = vadd.f32 %v2651_v3, %v2571_v7  ;;  %v2573_v53 = vadd.f32 %v2572_v41, %v2492_v17 }
 0x1e6   :  { %v2574_v0 = vpop.f32.mrf.mxu0 }
 0x1e7   :  { %v2655_v34 = vpop.f32.mrf.mxu1  ;;  %v3097_v40 = vpack.c.bf16 %v2673_v56, %v2672_v24  ;;  %v2654_v31 = vadd.f32 %v2653_v62, %v2573_v53  ;;  %v2674_v8 = vmax.f32 %v2652_v57, 0.0 }
 0x1e8   :  { %v2575_v1 = vpop.f32.mrf.mxu0 }
 0x1e9   :  { %v2656_v48 = vpop.f32.mrf.mxu1  ;;  %2739 = vst [vmem:[%s4759_s3 + $0x38] sm:$0xff] %v3097_v40  ;;  %v2675_v36 = vmax.f32 %v2654_v31, 0.0 }
 0x1eb   :  { %v3098_v37 = vpack.c.bf16 %v2675_v36, %v2674_v8 }
 0x1ed   :  { %2740 = vst [vmem:[%s4759_s3 + $0x40] sm:$0xff] %v3098_v37 }

// kernel: cnn_model_forward.6
= control target key start
LH: loop header
LB: loop body
LE: loop exit
PB: predicated region body
PF: predicated region fallthrough
CT: control target
= control target key end

     0   :  { %s3136_s1 = inlined_call_operand.vmem [shape: bf16[2304,128], index: 1, kind: input, shape index: {}]   ;;  %s3137_s0 = inlined_call_operand.vmem [shape: bf16[32,2304], index: 0, kind: input, shape index: {}]   ;;  %s3138_s2 = inlined_call_operand.vmem [shape: f32[1,128], index: 2, kind: input, shape index: {}]   ;;  %s3139_s3 = inlined_call_operand.vmem [shape: bf16[32,128], index: 3, kind: output, shape index: {}]  }
   0x1   :  { %v2327_v0 = vld [vmem:[%s3136_s1 + $0x78] sm:$0xff]   ;;  %v2331_v4 = vld [vmem:[%s3136_s1 + $0x70] sm:$0xff]   ;;  %v2335_v8 = vld [vmem:[%s3136_s1 + $0x68] sm:$0xff]  }
   0x2   :  { %v2328_v1 = vld [vmem:[%s3136_s1 + $0xf8] sm:$0xff]   ;;  %2059 = vmatprep.subr.bf16.mxu0 %v2327_v0  ;;  %v2332_v5 = vld [vmem:[%s3136_s1 + $0xf0] sm:$0xff]   ;;  %v2336_v9 = vld [vmem:[%s3136_s1 + $0xe8] sm:$0xff]  }
   0x3   :  { %v2329_v2 = vld [vmem:[%s3136_s1 + $0x38] sm:$0xff]   ;;  %2087 = vmatprep.subr.bf16.mxu1 %v2328_v1  ;;  %v2333_v6 = vld [vmem:[%s3136_s1 + $0x30] sm:$0xff]   ;;  %v2337_v10 = vld [vmem:[%s3136_s1 + $0x28] sm:$0xff]  }
   0x4   :  { %v2330_v3 = vld [vmem:[%s3136_s1 + $0xb8] sm:$0xff]   ;;  %2060 = vmatpush3.bf16.msra.mxu0 %v2329_v2  ;;  %v2334_v7 = vld [vmem:[%s3136_s1 + $0xb0] sm:$0xff]   ;;  %v2338_v11 = vld [vmem:[%s3136_s1 + $0xa8] sm:$0xff]  }
   0x5   :  { %2088 = vmatpush3.bf16.msra.mxu1 %v2330_v3  ;;  %2061 = vmatprep.subr.bf16.mxu0 %v2331_v4  ;;  %v2339_v12 = vld [vmem:[%s3136_s1 + $0x60] sm:$0xff]   ;;  %v2343_v16 = vld [vmem:[%s3136_s1 + $0x58] sm:$0xff]   ;;  %v2347_v20 = vld [vmem:[%s3136_s1 + $0x50] sm:$0xff]  }
   0x6   :  { %2089 = vmatprep.subr.bf16.mxu1 %v2332_v5  ;;  %v2340_v13 = vld [vmem:[%s3136_s1 + $0xe0] sm:$0xff]   ;;  %v2344_v17 = vld [vmem:[%s3136_s1 + $0xd8] sm:$0xff]   ;;  %v2348_v21 = vld [vmem:[%s3136_s1 + $0xd0] sm:$0xff]  }
   0x7   :  { %v2341_v14 = vld [vmem:[%s3136_s1 + $0x20] sm:$0xff]   ;;  %v2345_v18 = vld [vmem:[%s3136_s1 + $0x18] sm:$0xff]   ;;  %v2349_v22 = vld [vmem:[%s3136_s1 + $0x10] sm:$0xff]  }
   0x8   :  { %2062 = vmatpush3.bf16.msra.mxu0 %v2333_v6  ;;  %v2342_v15 = vld [vmem:[%s3136_s1 + $0xa0] sm:$0xff]   ;;  %v2346_v19 = vld [vmem:[%s3136_s1 + $0x98] sm:$0xff]   ;;  %v2350_v23 = vld [vmem:[%s3136_s1 + $0x90] sm:$0xff]  }
   0x9   :  { %2090 = vmatpush3.bf16.msra.mxu1 %v2334_v7  ;;  %2063 = vmatprep.subr.bf16.mxu0 %v2335_v8  ;;  %v2351_v24 = vld [vmem:[%s3136_s1 + $0x48] sm:$0xff]   ;;  %v2355_v28 = vld [vmem:[%s3136_s1 + $0x40] sm:$0xff]   ;;  %v2365_v36 = vld [vmem:[%s3136_s1 + $0x178] sm:$0xff]  }
   0xa   :  { %2091 = vmatprep.subr.bf16.mxu1 %v2336_v9  ;;  %v2352_v25 = vld [vmem:[%s3136_s1 + $0xc8] sm:$0xff]   ;;  %v2356_v29 = vld [vmem:[%s3136_s1 + $0xc0] sm:$0xff]   ;;  %v2366_v37 = vld [vmem:[%s3136_s1 + $0x1f8] sm:$0xff]  }
   0xb   :  { %v2353_v26 = vld [vmem:[%s3136_s1 + $0x8] sm:$0xff]   ;;  %v2357_v30 = vld [vmem:[%s3136_s1] sm:$0xff]   ;;  %v2367_v38 = vld [vmem:[%s3136_s1 + $0x138] sm:$0xff]  }
   0xc   :  { %2064 = vmatpush3.bf16.msra.mxu0 %v2337_v10  ;;  %v2354_v27 = vld [vmem:[%s3136_s1 + $0x88] sm:$0xff]   ;;  %v2358_v31 = vld [vmem:[%s3136_s1 + $0x80] sm:$0xff]   ;;  %v2368_v39 = vld [vmem:[%s3136_s1 + $0x1b8] sm:$0xff]  }
   0xd   :  { %2092 = vmatpush3.bf16.msra.mxu1 %v2338_v11  ;;  %2065 = vmatprep.subr.bf16.mxu0 %v2339_v12  ;;  %v2359_v32 = vld [vmem:[%s3137_s0] ss:$72 sps:$4 sm:$0xff]   ;;  %v2361_v33 = vld [vmem:[%s3137_s0 + $0x4] ss:$72 sps:$4 sm:$0xff]   ;;  %v2369_v40 = vld [vmem:[%s3136_s1 + $0x170] sm:$0xff]  }
   0xe   :  { %2093 = vmatprep.subr.bf16.mxu1 %v2340_v13  ;;  %v2362_v34 = vld [vmem:[%s3137_s0 + $0x8] ss:$72 sps:$4 sm:$0xff]   ;;  %v2364_v35 = vld [vmem:[%s3137_s0 + $0xc] ss:$72 sps:$4 sm:$0xff]   ;;  %1422 = vmatprep.mubr.bf16.mxu0 %v2361_v33  ;;  %v2377_v48 = vld [vmem:[%s3136_s1 + $0x160] sm:$0xff]  }
   0xf   :  { %1471 = vmatprep.mubr.bf16.mxu1 %v2364_v35  ;;  %v2370_v41 = vld [vmem:[%s3136_s1 + $0x1f0] sm:$0xff]   ;;  %v2373_v44 = vld [vmem:[%s3136_s1 + $0x168] sm:$0xff]   ;;  %v2378_v49 = vld [vmem:[%s3136_s1 + $0x1e0] sm:$0xff]  }
  0x10   :  { %2066 = vmatpush3.bf16.msra.mxu0 %v2341_v14  ;;  %v2371_v42 = vld [vmem:[%s3136_s1 + $0x130] sm:$0xff]   ;;  %v2374_v45 = vld [vmem:[%s3136_s1 + $0x1e8] sm:$0xff]   ;;  %v2379_v50 = vld [vmem:[%s3136_s1 + $0x120] sm:$0xff]  }
  0x11   :  { %2094 = vmatpush3.bf16.msra.mxu1 %v2342_v15  ;;  %2067 = vmatprep.subr.bf16.mxu0 %v2343_v16  ;;  %v2372_v43 = vld [vmem:[%s3136_s1 + $0x1b0] sm:$0xff]   ;;  %v2375_v46 = vld [vmem:[%s3136_s1 + $0x128] sm:$0xff]   ;;  %v2380_v51 = vld [vmem:[%s3136_s1 + $0x1a0] sm:$0xff]  }
  0x12   :  { %2095 = vmatprep.subr.bf16.mxu1 %v2344_v17  ;;  %v2376_v47 = vld [vmem:[%s3136_s1 + $0x1a8] sm:$0xff]   ;;  %v2381_v52 = vld [vmem:[%s3137_s0 + $0x94] ss:$72 sps:$4 sm:$0xff]   ;;  %v2385_v55 = vld [vmem:[%s3137_s0 + $0x90] ss:$72 sps:$4 sm:$0xff]  }
  0x13   :  { %v2383_v53 = vld [vmem:[%s3136_s1 + $0x158] sm:$0xff]   ;;  %v2391_v60 = vld [vmem:[%s3136_s1 + $0x150] sm:$0xff]   ;;  %v2395_v0 = vld [vmem:[%s3136_s1 + $0x148] sm:$0xff]  }
  0x14   :  { %2068 = vmatpush3.bf16.msra.mxu0 %v2345_v18  ;;  %v2384_v54 = vld [vmem:[%s3136_s1 + $0x1d8] sm:$0xff]   ;;  %v2392_v61 = vld [vmem:[%s3136_s1 + $0x1d0] sm:$0xff]   ;;  %v2396_v1 = vld [vmem:[%s3136_s1 + $0x1c8] sm:$0xff]  }
  0x15   :  { %2096 = vmatpush3.bf16.msra.mxu1 %v2346_v19  ;;  %2069 = vmatprep.subr.bf16.mxu0 %v2347_v20  ;;  %v2386_v56 = vld [vmem:[%s3136_s1 + $0x118] sm:$0xff]   ;;  %v2393_v62 = vld [vmem:[%s3136_s1 + $0x110] sm:$0xff]   ;;  %v2397_v2 = vld [vmem:[%s3136_s1 + $0x108] sm:$0xff]  }
  0x16   :  { %2097 = vmatprep.subr.bf16.mxu1 %v2348_v21  ;;  %v2387_v57 = vld [vmem:[%s3136_s1 + $0x198] sm:$0xff]   ;;  %v2394_v63 = vld [vmem:[%s3136_s1 + $0x190] sm:$0xff]   ;;  %v2398_v3 = vld [vmem:[%s3136_s1 + $0x188] sm:$0xff]  }
  0x17   :  { %v2388_v58 = vld [vmem:[%s3137_s0 + $0x9c] ss:$72 sps:$4 sm:$0xff]   ;;  %v2390_v59 = vld [vmem:[%s3137_s0 + $0x98] ss:$72 sps:$4 sm:$0xff]   ;;  %v2413_v16 = vld [vmem:[%s3136_s1 + $0x270] sm:$0xff]  }
  0x18   :  { %2070 = vmatpush3.bf16.msra.mxu0 %v2349_v22  ;;  %v2399_v4 = vld [vmem:[%s3136_s1 + $0x140] sm:$0xff]   ;;  %v2403_v8 = vld [vmem:[%s3137_s0 + $0x10] ss:$72 sps:$4 sm:$0xff]   ;;  %v2405_v9 = vld [vmem:[%s3137_s0 + $0x14] ss:$72 sps:$4 sm:$0xff]  }
  0x19   :  { %2098 = vmatpush3.bf16.msra.mxu1 %v2350_v23  ;;  %2071 = vmatprep.subr.bf16.mxu0 %v2351_v24  ;;  %v2400_v5 = vld [vmem:[%s3136_s1 + $0x1c0] sm:$0xff]   ;;  %v2409_v12 = vld [vmem:[%s3136_s1 + $0x278] sm:$0xff]   ;;  %v2414_v17 = vld [vmem:[%s3136_s1 + $0x2f0] sm:$0xff]  }
  0x1a   :  { %2099 = vmatprep.subr.bf16.mxu1 %v2352_v25  ;;  %v2401_v6 = vld [vmem:[%s3136_s1 + $0x100] sm:$0xff]   ;;  %v2410_v13 = vld [vmem:[%s3136_s1 + $0x2f8] sm:$0xff]   ;;  %v2415_v18 = vld [vmem:[%s3136_s1 + $0x230] sm:$0xff]  }
  0x1b   :  { %v2402_v7 = vld [vmem:[%s3136_s1 + $0x180] sm:$0xff]   ;;  %v2411_v14 = vld [vmem:[%s3136_s1 + $0x238] sm:$0xff]   ;;  %v2416_v19 = vld [vmem:[%s3136_s1 + $0x2b0] sm:$0xff]  }
  0x1c   :  { %2072 = vmatpush3.bf16.msra.mxu0 %v2353_v26  ;;  %v2406_v10 = vld [vmem:[%s3137_s0 + $0x18] ss:$72 sps:$4 sm:$0xff]   ;;  %v2408_v11 = vld [vmem:[%s3137_s0 + $0x1c] ss:$72 sps:$4 sm:$0xff]   ;;  %v2420_v22 = vld [vmem:[%s3136_s1 + $0x268] sm:$0xff]  }
  0x1d   :  { %2100 = vmatpush3.bf16.msra.mxu1 %v2354_v27  ;;  %2073 = vmatprep.subr.bf16.mxu0 %v2355_v28  ;;  %v2412_v15 = vld [vmem:[%s3136_s1 + $0x2b8] sm:$0xff]   ;;  %v2417_v20 = vld [vmem:[%s3137_s0 + $0xa4] ss:$72 sps:$4 sm:$0xff]   ;;  %v2419_v21 = vld [vmem:[%s3137_s0 + $0xa0] ss:$72 sps:$4 sm:$0xff]  }
  0x1e   :  { %2101 = vmatprep.subr.bf16.mxu1 %v2356_v29  ;;  %v2421_v23 = vld [vmem:[%s3136_s1 + $0x2e8] sm:$0xff]   ;;  %v2427_v28 = vld [vmem:[%s3136_s1 + $0x260] sm:$0xff]   ;;  %v2432_v33 = vld [vmem:[%s3136_s1 + $0x2d8] sm:$0xff]  }
  0x1f   :  { %v2422_v24 = vld [vmem:[%s3137_s0 + $0xac] ss:$72 sps:$4 sm:$0xff]   ;;  %v2426_v27 = vld [vmem:[%s3137_s0 + $0xa8] ss:$72 sps:$4 sm:$0xff]   ;;  %v2428_v29 = vld [vmem:[%s3136_s1 + $0x2e0] sm:$0xff]  }
  0x20   :  { %2074 = vmatpush3.bf16.msra.mxu0 %v2357_v30  ;;  %v2424_v25 = vld [vmem:[%s3136_s1 + $0x228] sm:$0xff]   ;;  %v2429_v30 = vld [vmem:[%s3136_s1 + $0x220] sm:$0xff]   ;;  %v2434_v35 = vld [vmem:[%s3136_s1 + $0x298] sm:$0xff]  }
  0x21   :  { %2102 = vmatpush3.bf16.msra.mxu1 %v2358_v31  ;;  %2115 = vmatprep.subr.bf16.mxu0 %v2365_v36  ;;  %v2425_v26 = vld [vmem:[%s3136_s1 + $0x2a8] sm:$0xff]   ;;  %v2430_v31 = vld [vmem:[%s3136_s1 + $0x2a0] sm:$0xff]   ;;  %v2435_v36 = vld [vmem:[%s3136_s1 + $0x250] sm:$0xff]  }
  0x22   :  { %2143 = vmatprep.subr.bf16.mxu1 %v2366_v37  ;;  %v2436_v37 = vld [vmem:[%s3136_s1 + $0x2d0] sm:$0xff]  }
  0x23   :  { %1423 = vmatmul.mubr.bf16.vlgmr.msra.gmra.mxu0 %v2359_v32  ;;  %v2431_v32 = vld [vmem:[%s3136_s1 + $0x258] sm:$0xff]  }
  0x24   :  { %1472 = vmatmul.mubr.bf16.vlgmr.msra.gmra.mxu1 %v2362_v34  ;;  %2116 = vmatpush3.bf16.msra.mxu0 %v2367_v38  ;;  %v2433_v34 = vld [vmem:[%s3136_s1 + $0x218] sm:$0xff]   ;;  %v2437_v38 = vld [vmem:[%s3136_s1 + $0x210] sm:$0xff]  }
  0x25   :  { %2144 = vmatpush3.bf16.msra.mxu1 %v2368_v39  ;;  %2117 = vmatprep.subr.bf16.mxu0 %v2369_v40  ;;  %v2438_v39 = vld [vmem:[%s3136_s1 + $0x290] sm:$0xff]   ;;  %v2439_v40 = vld [vmem:[%s3136_s1 + $0x248] sm:$0xff]  }
  0x26   :  { %2145 = vmatprep.subr.bf16.mxu1 %v2370_v41  ;;  %1430 = vmatprep.mubr.bf16.mxu0 %v2381_v52  ;;  %v2440_v41 = vld [vmem:[%s3136_s1 + $0x2c8] sm:$0xff]   ;;  %v2453_v52 = vld [vmem:[%s3136_s1 + $0x378] sm:$0xff]  }
  0x27   :  { %1479 = vmatprep.mubr.bf16.mxu1 %v2388_v58  ;;  %v2459_v58 = vld [vmem:[%s3136_s1 + $0x330] sm:$0xff]  }
  0x28   :  { %2118 = vmatpush3.bf16.msra.mxu0 %v2371_v42  ;;  %v2441_v42 = vld [vmem:[%s3136_s1 + $0x208] sm:$0xff]  }
  0x29   :  { %2146 = vmatpush3.bf16.msra.mxu1 %v2372_v43  ;;  %2119 = vmatprep.subr.bf16.mxu0 %v2373_v44  ;;  %v2442_v43 = vld [vmem:[%s3136_s1 + $0x288] sm:$0xff]   ;;  %v2443_v44 = vld [vmem:[%s3136_s1 + $0x240] sm:$0xff]  }
  0x2a   :  { %2147 = vmatprep.subr.bf16.mxu1 %v2374_v45  ;;  %v2444_v45 = vld [vmem:[%s3136_s1 + $0x2c0] sm:$0xff]  }
  0x2b   :  { %1431 = vmatmul.mubr.bf16.gmra.mxu0 %v2385_v55  ;;  %v2456_v55 = vld [vmem:[%s3136_s1 + $0x3b8] sm:$0xff]  }
  0x2c   :  { %2120 = vmatpush3.bf16.msra.mxu0 %v2375_v46  ;;  %1480 = vmatmul.mubr.bf16.gmra.mxu1 %v2390_v59  ;;  %v2445_v46 = vld [vmem:[%s3136_s1 + $0x200] sm:$0xff]   ;;  %v2460_v59 = vld [vmem:[%s3136_s1 + $0x3b0] sm:$0xff]  }
  0x2d   :  { %2148 = vmatpush3.bf16.msra.mxu1 %v2376_v47  ;;  %2121 = vmatprep.subr.bf16.mxu0 %v2377_v48  ;;  %v2446_v47 = vld [vmem:[%s3136_s1 + $0x280] sm:$0xff]  }
  0x2e   :  { %2149 = vmatprep.subr.bf16.mxu1 %v2378_v49  ;;  %1520 = vmatprep.mubr.bf16.mxu0 %v2405_v9  ;;  %v2447_v48 = vld [vmem:[%s3137_s0 + $0x20] ss:$72 sps:$4 sm:$0xff]   ;;  %v2449_v49 = vld [vmem:[%s3137_s0 + $0x24] ss:$72 sps:$4 sm:$0xff]   ;;  %v2476_v9 = vld [vmem:[%s3136_s1 + $0x3d8] sm:$0xff]  }
  0x2f   :  { %1569 = vmatprep.mubr.bf16.mxu1 %v2408_v11  ;;  %v2478_v11 = vld [vmem:[%s3136_s1 + $0x398] sm:$0xff]  }
  0x30   :  { %2122 = vmatpush3.bf16.msra.mxu0 %v2379_v50  ;;  %v2450_v50 = vld [vmem:[%s3137_s0 + $0x28] ss:$72 sps:$4 sm:$0xff]  }
  0x31   :  { %2150 = vmatpush3.bf16.msra.mxu1 %v2380_v51  ;;  %2123 = vmatprep.subr.bf16.mxu0 %v2383_v53  ;;  %v2452_v51 = vld [vmem:[%s3137_s0 + $0x2c] ss:$72 sps:$4 sm:$0xff]   ;;  %v2454_v53 = vld [vmem:[%s3136_s1 + $0x3f8] sm:$0xff]  }
  0x32   :  { %2151 = vmatprep.subr.bf16.mxu1 %v2384_v54  ;;  %v2455_v54 = vld [vmem:[%s3136_s1 + $0x338] sm:$0xff]  }
  0x34   :  { %2124 = vmatpush3.bf16.msra.mxu0 %v2386_v56  ;;  %v2457_v56 = vld [vmem:[%s3136_s1 + $0x370] sm:$0xff]  }
  0x35   :  { %2152 = vmatpush3.bf16.msra.mxu1 %v2387_v57  ;;  %2125 = vmatprep.subr.bf16.mxu0 %v2391_v60  ;;  %v2458_v57 = vld [vmem:[%s3136_s1 + $0x3f0] sm:$0xff]  }
  0x36   :  { %2153 = vmatprep.subr.bf16.mxu1 %v2392_v61  ;;  %v2461_v60 = vld [vmem:[%s3137_s0 + $0xb4] ss:$72 sps:$4 sm:$0xff]   ;;  %v2463_v61 = vld [vmem:[%s3137_s0 + $0xb0] ss:$72 sps:$4 sm:$0xff]  }
  0x38   :  { %2126 = vmatpush3.bf16.msra.mxu0 %v2393_v62  ;;  %v2464_v62 = vld [vmem:[%s3136_s1 + $0x368] sm:$0xff]  }
  0x39   :  { %2154 = vmatpush3.bf16.msra.mxu1 %v2394_v63  ;;  %2127 = vmatprep.subr.bf16.mxu0 %v2395_v0  ;;  %v2465_v63 = vld [vmem:[%s3136_s1 + $0x3e8] sm:$0xff]   ;;  %v2466_v0 = vld [vmem:[%s3137_s0 + $0xbc] ss:$72 sps:$4 sm:$0xff]  }
  0x3a   :  { %2155 = vmatprep.subr.bf16.mxu1 %v2396_v1  ;;  %v2468_v1 = vld [vmem:[%s3136_s1 + $0x328] sm:$0xff]  }
  0x3c   :  { %2128 = vmatpush3.bf16.msra.mxu0 %v2397_v2  ;;  %v2469_v2 = vld [vmem:[%s3136_s1 + $0x3a8] sm:$0xff]  }
  0x3d   :  { %2156 = vmatpush3.bf16.msra.mxu1 %v2398_v3  ;;  %2129 = vmatprep.subr.bf16.mxu0 %v2399_v4  ;;  %v2470_v3 = vld [vmem:[%s3137_s0 + $0xb8] ss:$72 sps:$4 sm:$0xff]  }
  0x3e   :  { %2157 = vmatprep.subr.bf16.mxu1 %v2400_v5  ;;  %v2471_v4 = vld [vmem:[%s3136_s1 + $0x360] sm:$0xff]  }
  0x3f   :  { %v2472_v5 = vld [vmem:[%s3136_s1 + $0x3e0] sm:$0xff]  }
  0x40   :  { %2130 = vmatpush3.bf16.msra.mxu0 %v2401_v6  ;;  %v2473_v6 = vld [vmem:[%s3136_s1 + $0x320] sm:$0xff]  }
  0x41   :  { %2158 = vmatpush3.bf16.msra.mxu1 %v2402_v7  ;;  %2171 = vmatprep.subr.bf16.mxu0 %v2409_v12  ;;  %v2474_v7 = vld [vmem:[%s3136_s1 + $0x3a0] sm:$0xff]   ;;  %v2479_v12 = vld [vmem:[%s3136_s1 + $0x350] sm:$0xff]  }
  0x42   :  { %2199 = vmatprep.subr.bf16.mxu1 %v2410_v13  ;;  %v2480_v13 = vld [vmem:[%s3136_s1 + $0x3d0] sm:$0xff]  }
  0x43   :  { %1521 = vmatmul.mubr.bf16.vlgmr.msra.gmra.mxu0 %v2403_v8  ;;  %v2475_v8 = vld [vmem:[%s3136_s1 + $0x358] sm:$0xff]  }
  0x44   :  { %1570 = vmatmul.mubr.bf16.vlgmr.msra.gmra.mxu1 %v2406_v10  ;;  %2172 = vmatpush3.bf16.msra.mxu0 %v2411_v14  ;;  %v2477_v10 = vld [vmem:[%s3136_s1 + $0x318] sm:$0xff]   ;;  %v2481_v14 = vld [vmem:[%s3136_s1 + $0x310] sm:$0xff]  }
  0x45   :  { %2200 = vmatpush3.bf16.msra.mxu1 %v2412_v15  ;;  %2173 = vmatprep.subr.bf16.mxu0 %v2413_v16  ;;  %v2482_v15 = vld [vmem:[%s3136_s1 + $0x390] sm:$0xff]   ;;  %v2483_v16 = vld [vmem:[%s3136_s1 + $0x348] sm:$0xff]  }
  0x46   :  { %2201 = vmatprep.subr.bf16.mxu1 %v2414_v17  ;;  %1528 = vmatprep.mubr.bf16.mxu0 %v2417_v20  ;;  %v2484_v17 = vld [vmem:[%s3136_s1 + $0x3c8] sm:$0xff]   ;;  %v2487_v20 = vld [vmem:[%s3136_s1 + $0x340] sm:$0xff]  }
  0x47   :  { %1577 = vmatprep.mubr.bf16.mxu1 %v2422_v24  ;;  %v2491_v24 = vld [vmem:[%s3137_s0 + $0x30] ss:$72 sps:$4 sm:$0xff]  }
  0x48   :  { %2174 = vmatpush3.bf16.msra.mxu0 %v2415_v18  ;;  %v2485_v18 = vld [vmem:[%s3136_s1 + $0x308] sm:$0xff]  }
  0x49   :  { %2202 = vmatpush3.bf16.msra.mxu1 %v2416_v19  ;;  %2175 = vmatprep.subr.bf16.mxu0 %v2420_v22  ;;  %v2486_v19 = vld [vmem:[%s3136_s1 + $0x388] sm:$0xff]   ;;  %v2489_v22 = vld [vmem:[%s3136_s1 + $0x300] sm:$0xff]  }
  0x4a   :  { %2203 = vmatprep.subr.bf16.mxu1 %v2421_v23  ;;  %v2490_v23 = vld [vmem:[%s3136_s1 + $0x380] sm:$0xff]  }
  0x4b   :  { %1529 = vmatmul.mubr.bf16.gmra.mxu0 %v2419_v21  ;;  %v2488_v21 = vld [vmem:[%s3136_s1 + $0x3c0] sm:$0xff]  }
  0x4c   :  { %2176 = vmatpush3.bf16.msra.mxu0 %v2424_v25  ;;  %1578 = vmatmul.mubr.bf16.gmra.mxu1 %v2426_v27  ;;  %v2493_v25 = vld [vmem:[%s3137_s0 + $0x34] ss:$72 sps:$4 sm:$0xff]  }
  0x4d   :  { %2204 = vmatpush3.bf16.msra.mxu1 %v2425_v26  ;;  %2177 = vmatprep.subr.bf16.mxu0 %v2427_v28  ;;  %v2494_v26 = vld [vmem:[%s3137_s0 + $0x38] ss:$72 sps:$4 sm:$0xff]   ;;  %v2496_v27 = vld [vmem:[%s3137_s0 + $0x3c] ss:$72 sps:$4 sm:$0xff]  }
  0x4e   :  { %2205 = vmatprep.subr.bf16.mxu1 %v2428_v29  ;;  %1618 = vmatprep.mubr.bf16.mxu0 %v2449_v49  ;;  %v2497_v28 = vld [vmem:[%s3136_s1 + $0x478] sm:$0xff]   ;;  %v2518_v49 = vld [vmem:[%s3136_s1 + $0x400] sm:$0xff]  }
  0x4f   :  { %1667 = vmatprep.mubr.bf16.mxu1 %v2452_v51  ;;  %v2498_v29 = vld [vmem:[%s3136_s1 + $0x438] sm:$0xff]  }
  0x50   :  { %2178 = vmatpush3.bf16.msra.mxu0 %v2429_v30  ;;  %v2499_v30 = vld [vmem:[%s3136_s1 + $0x470] sm:$0xff]  }
  0x51   :  { %2206 = vmatpush3.bf16.msra.mxu1 %v2430_v31  ;;  %2179 = vmatprep.subr.bf16.mxu0 %v2431_v32  ;;  %v2500_v31 = vld [vmem:[%s3136_s1 + $0x430] sm:$0xff]   ;;  %v2501_v32 = vld [vmem:[%s3137_s0 + $0xc4] ss:$72 sps:$4 sm:$0xff]  }
  0x52   :  { %2207 = vmatprep.subr.bf16.mxu1 %v2432_v33  ;;  %v2503_v33 = vld [vmem:[%s3137_s0 + $0xc0] ss:$72 sps:$4 sm:$0xff]   ;;  %v2522_v51 = vld [vmem:[%s3137_s0 + $0xd0] ss:$72 sps:$4 sm:$0xff]  }
  0x54   :  { %2180 = vmatpush3.bf16.msra.mxu0 %v2433_v34  ;;  %v2504_v34 = vld [vmem:[%s3136_s1 + $0x468] sm:$0xff]  }
  0x55   :  { %2208 = vmatpush3.bf16.msra.mxu1 %v2434_v35  ;;  %2181 = vmatprep.subr.bf16.mxu0 %v2435_v36  ;;  %v2505_v35 = vld [vmem:[%s3137_s0 + $0xcc] ss:$72 sps:$4 sm:$0xff]  }
  0x56   :  { %2209 = vmatprep.subr.bf16.mxu1 %v2436_v37  ;;  %v2507_v36 = vld [vmem:[%s3136_s1 + $0x428] sm:$0xff]  }
  0x57   :  { %v2508_v37 = vld [vmem:[%s3137_s0 + $0xc8] ss:$72 sps:$4 sm:$0xff]  }
  0x58   :  { %2182 = vmatpush3.bf16.msra.mxu0 %v2437_v38  ;;  %v2509_v38 = vld [vmem:[%s3136_s1 + $0x460] sm:$0xff]  }
  0x59   :  { %2210 = vmatpush3.bf16.msra.mxu1 %v2438_v39  ;;  %2183 = vmatprep.subr.bf16.mxu0 %v2439_v40  ;;  %v2510_v39 = vld [vmem:[%s3136_s1 + $0x420] sm:$0xff]   ;;  %v2511_v40 = vld [vmem:[%s3136_s1 + $0x458] sm:$0xff]  }
  0x5a   :  { %2211 = vmatprep.subr.bf16.mxu1 %v2440_v41  ;;  %v2512_v41 = vld [vmem:[%s3136_s1 + $0x418] sm:$0xff]  }
  0x5c   :  { %2184 = vmatpush3.bf16.msra.mxu0 %v2441_v42  ;;  %v2513_v42 = vld [vmem:[%s3136_s1 + $0x450] sm:$0xff]  }
  0x5d   :  { %2212 = vmatpush3.bf16.msra.mxu1 %v2442_v43  ;;  %2185 = vmatprep.subr.bf16.mxu0 %v2443_v44  ;;  %v2514_v43 = vld [vmem:[%s3136_s1 + $0x410] sm:$0xff]   ;;  %v2521_v44 = vld [vmem:[%s3137_s0 + $0x44] ss:$72 sps:$4 sm:$0xff]  }
  0x5e   :  { %2213 = vmatprep.subr.bf16.mxu1 %v2444_v45  ;;  %v2515_v45 = vld [vmem:[%s3136_s1 + $0x448] sm:$0xff]  }
  0x60   :  { %2186 = vmatpush3.bf16.msra.mxu0 %v2445_v46  ;;  %v2524_v46 = vld [vmem:[%s3137_s0 + $0xd4] ss:$72 sps:$4 sm:$0xff]  }
  0x61   :  { %2214 = vmatpush3.bf16.msra.mxu1 %v2446_v47  ;;  %2227 = vmatprep.subr.bf16.mxu0 %v2453_v52  ;;  %v2516_v47 = vld [vmem:[%s3136_s1 + $0x408] sm:$0xff]  }
  0x62   :  { %2255 = vmatprep.subr.bf16.mxu1 %v2454_v53 }
  0x63   :  { %1619 = vmatmul.mubr.bf16.vlgmr.msra.gmra.mxu0 %v2447_v48  ;;  %v2517_v48 = vld [vmem:[%s3136_s1 + $0x440] sm:$0xff]  }
  0x64   :  { %1668 = vmatmul.mubr.bf16.vlgmr.msra.gmra.mxu1 %v2450_v50  ;;  %2228 = vmatpush3.bf16.msra.mxu0 %v2455_v54  ;;  %v2519_v50 = vld [vmem:[%s3137_s0 + $0x40] ss:$72 sps:$4 sm:$0xff]  }
  0x65   :  { %2256 = vmatpush3.bf16.msra.mxu1 %v2456_v55  ;;  %2229 = vmatprep.subr.bf16.mxu0 %v2457_v56 }
  0x66   :  { %2257 = vmatprep.subr.bf16.mxu1 %v2458_v57  ;;  %1626 = vmatprep.mubr.bf16.mxu0 %v2461_v60 }
  0x67   :  { %1675 = vmatprep.mubr.bf16.mxu1 %v2466_v0 }
  0x68   :  { %2230 = vmatpush3.bf16.msra.mxu0 %v2459_v58 }
  0x69   :  { %2258 = vmatpush3.bf16.msra.mxu1 %v2460_v59  ;;  %2231 = vmatprep.subr.bf16.mxu0 %v2464_v62 }
  0x6a   :  { %2259 = vmatprep.subr.bf16.mxu1 %v2465_v63 }
  0x6b   :  { %1627 = vmatmul.mubr.bf16.gmra.mxu0 %v2463_v61 }
  0x6c   :  { %2232 = vmatpush3.bf16.msra.mxu0 %v2468_v1  ;;  %1676 = vmatmul.mubr.bf16.gmra.mxu1 %v2470_v3 }
  0x6d   :  { %2260 = vmatpush3.bf16.msra.mxu1 %v2469_v2  ;;  %2233 = vmatprep.subr.bf16.mxu0 %v2471_v4 }
  0x6e   :  { %2261 = vmatprep.subr.bf16.mxu1 %v2472_v5  ;;  %1716 = vmatprep.mubr.bf16.mxu0 %v2493_v25 }
  0x6f   :  { %1765 = vmatprep.mubr.bf16.mxu1 %v2496_v27 }
  0x70   :  { %2234 = vmatpush3.bf16.msra.mxu0 %v2473_v6 }
  0x71   :  { %2262 = vmatpush3.bf16.msra.mxu1 %v2474_v7  ;;  %2235 = vmatprep.subr.bf16.mxu0 %v2475_v8 }
  0x72   :  { %2263 = vmatprep.subr.bf16.mxu1 %v2476_v9 }
  0x74   :  { %2236 = vmatpush3.bf16.msra.mxu0 %v2477_v10 }
  0x75   :  { %2264 = vmatpush3.bf16.msra.mxu1 %v2478_v11  ;;  %2237 = vmatprep.subr.bf16.mxu0 %v2479_v12 }
  0x76   :  { %2265 = vmatprep.subr.bf16.mxu1 %v2480_v13 }
  0x78   :  { %2238 = vmatpush3.bf16.msra.mxu0 %v2481_v14 }
  0x79   :  { %2266 = vmatpush3.bf16.msra.mxu1 %v2482_v15  ;;  %2239 = vmatprep.subr.bf16.mxu0 %v2483_v16 }
  0x7a   :  { %2267 = vmatprep.subr.bf16.mxu1 %v2484_v17 }
  0x7c   :  { %2240 = vmatpush3.bf16.msra.mxu0 %v2485_v18 }
  0x7d   :  { %2268 = vmatpush3.bf16.msra.mxu1 %v2486_v19  ;;  %2241 = vmatprep.subr.bf16.mxu0 %v2487_v20 }
  0x7e   :  { %2269 = vmatprep.subr.bf16.mxu1 %v2488_v21 }
  0x80   :  { %2242 = vmatpush3.bf16.msra.mxu0 %v2489_v22 }
  0x81   :  { %2270 = vmatpush3.bf16.msra.mxu1 %v2490_v23  ;;  %2283 = vmatprep.subr.bf16.mxu0 %v2497_v28 }
  0x82   :  { %2311 = vmatprep.subr.bf16.mxu1 %v2497_v28 }
  0x83   :  { %1717 = vmatmul.mubr.bf16.vlgmr.msra.gmra.mxu0 %v2491_v24 }
  0x84   :  { %1766 = vmatmul.mubr.bf16.vlgmr.msra.gmra.mxu1 %v2494_v26  ;;  %2284 = vmatpush3.bf16.msra.mxu0 %v2498_v29 }
  0x85   :  { %2319 = vmatpush3.bf16.msra.mxu1 %v2498_v29  ;;  %2285 = vmatprep.subr.bf16.mxu0 %v2499_v30 }
  0x86   :  { %2312 = vmatprep.subr.bf16.mxu1 %v2499_v30  ;;  %1724 = vmatprep.mubr.bf16.mxu0 %v2501_v32 }
  0x87   :  { %1773 = vmatprep.mubr.bf16.mxu1 %v2505_v35 }
  0x88   :  { %2286 = vmatpush3.bf16.msra.mxu0 %v2500_v31 }
  0x89   :  { %2320 = vmatpush3.bf16.msra.mxu1 %v2500_v31  ;;  %2287 = vmatprep.subr.bf16.mxu0 %v2504_v34 }
  0x8a   :  { %2313 = vmatprep.subr.bf16.mxu1 %v2504_v34 }
  0x8b   :  { %1725 = vmatmul.mubr.bf16.gmra.mxu0 %v2503_v33 }
  0x8c   :  { %2288 = vmatpush3.bf16.msra.mxu0 %v2507_v36  ;;  %1774 = vmatmul.mubr.bf16.gmra.mxu1 %v2508_v37 }
  0x8d   :  { %2321 = vmatpush3.bf16.msra.mxu1 %v2507_v36  ;;  %2289 = vmatprep.subr.bf16.mxu0 %v2509_v38 }
  0x8e   :  { %2314 = vmatprep.subr.bf16.mxu1 %v2509_v38  ;;  %1814 = vmatprep.mubr.bf16.mxu0 %v2521_v44 }
  0x8f   :  { %1822 = vmatprep.mubr.bf16.mxu1 %v2524_v46 }
  0x90   :  { %2290 = vmatpush3.bf16.msra.mxu0 %v2510_v39 }
  0x91   :  { %2322 = vmatpush3.bf16.msra.mxu1 %v2510_v39  ;;  %2291 = vmatprep.subr.bf16.mxu0 %v2511_v40 }
  0x92   :  { %2315 = vmatprep.subr.bf16.mxu1 %v2511_v40 }
  0x94   :  { %2292 = vmatpush3.bf16.msra.mxu0 %v2512_v41 }
  0x95   :  { %2323 = vmatpush3.bf16.msra.mxu1 %v2512_v41  ;;  %2293 = vmatprep.subr.bf16.mxu0 %v2513_v42 }
  0x96   :  { %2316 = vmatprep.subr.bf16.mxu1 %v2513_v42  ;;  %v1859_v42 = vld [vmem:[%s3138_s2] ss:$0 sm:$0xff] }
  0x98   :  { %2294 = vmatpush3.bf16.msra.mxu0 %v2514_v43 }
  0x99   :  { %2324 = vmatpush3.bf16.msra.mxu1 %v2514_v43  ;;  %2295 = vmatprep.subr.bf16.mxu0 %v2515_v45 }
  0x9a   :  { %2317 = vmatprep.subr.bf16.mxu1 %v2515_v45 }
  0x9c   :  { %2296 = vmatpush3.bf16.msra.mxu0 %v2516_v47 }
  0x9d   :  { %2325 = vmatpush3.bf16.msra.mxu1 %v2516_v47  ;;  %2297 = vmatprep.subr.bf16.mxu0 %v2517_v48 }
  0x9e   :  { %2318 = vmatprep.subr.bf16.mxu1 %v2517_v48 }
  0xa0   :  { %2298 = vmatpush3.bf16.msra.mxu0 %v2518_v49 }
  0xa1   :  { %2326 = vmatpush3.bf16.msra.mxu1 %v2518_v49 }
  0xa3   :  { %1815 = vmatmul.mubr.bf16.vlgmr.msra.gmra.mxu0 %v2519_v50 }
  0xa4   :  { %1823 = vmatmul.mubr.bf16.vlgmr.msra.gmra.mxu1 %v2522_v51 }
  0xe3   :  { %v2075_v52 = vpop.f32.mrf.mxu0 }
  0xe4   :  { %v2103_v54 = vpop.f32.mrf.mxu1 }
  0xe5   :  { %v2076_v53 = vpop.f32.mrf.mxu0 }
  0xe6   :  { %v2104_v56 = vpop.f32.mrf.mxu1  ;;  %v2077_v41 = vadd.f32 %v2076_v53, %v2075_v52 }
  0xe7   :  { %v2078_v55 = vpop.f32.mrf.mxu0  ;;  %v2105_v51 = vadd.f32 %v2104_v56, %v2103_v54 }
  0xe8   :  { %v3085_v59 = vpop.f32.mrf.mxu1  ;;  %v1425_v48 = vadd.f32 %v2077_v41, %v1859_v42 }
  0xe9   :  { %v2079_v57 = vpop.f32.mrf.mxu0 }
  0xea   :  { %v3087_v61 = vpop.f32.mrf.mxu1  ;;  %v2080_v44 = vadd.f32 %v2079_v57, %v2078_v55 }
  0xeb   :  { %v2081_v58 = vpop.f32.mrf.mxu0  ;;  %v2108_v55 = vadd.f32 %v3087_v61, %v3085_v59 }
  0xec   :  { %v2109_v62 = vpop.f32.mrf.mxu1 }
  0xed   :  { %v2082_v60 = vpop.f32.mrf.mxu0 }
  0xee   :  { %v2110_v0 = vpop.f32.mrf.mxu1  ;;  %v2083_v43 = vadd.f32 %v2082_v60, %v2081_v58 }
  0xef   :  { %v2084_v63 = vpop.f32.mrf.mxu0  ;;  %v2111_v50 = vadd.f32 %v2110_v0, %v2109_v62 }
  0xf0   :  { %v2112_v3 = vpop.f32.mrf.mxu1  ;;  %v1433_v49 = vadd.f32 %v2083_v43, %v1859_v42 }
  0xf1   :  { %v2085_v1 = vpop.f32.mrf.mxu0 }
  0xf2   :  { %v2113_v5 = vpop.f32.mrf.mxu1  ;;  %v2086_v47 = vadd.f32 %v2085_v1, %v2084_v63  ;;  %v1482_v60 = vadd.f32 %v2111_v50, %v1433_v49 }
  0xf3   :  { %v2114_v53 = vadd.f32 %v2113_v5, %v2112_v3 }
  0xf4   :  { %v1436_v52 = vadd.f32 %v2086_v47, %v1859_v42 }
  0xf6   :  { %v1485_v54 = vadd.f32 %v2114_v53, %v1436_v52 }
 0x103   :  { %v2131_v2 = vpop.f32.mrf.mxu0 }
 0x104   :  { %v3089_v6 = vpop.f32.mrf.mxu1 }
 0x105   :  { %v2132_v4 = vpop.f32.mrf.mxu0 }
 0x106   :  { %v3091_v8 = vpop.f32.mrf.mxu1 }
 0x107   :  { %v2134_v7 = vpop.f32.mrf.mxu0 }
 0x108   :  { %v3093_v10 = vpop.f32.mrf.mxu1 }
 0x109   :  { %v2135_v9 = vpop.f32.mrf.mxu0 }
 0x10a   :  { %v3095_v12 = vpop.f32.mrf.mxu1  ;;  %v2136_v57 = vadd.f32 %v2135_v9, %v2134_v7 }
 0x10b   :  { %v2137_v11 = vpop.f32.mrf.mxu0  ;;  %v2164_v61 = vadd.f32 %v3095_v12, %v3093_v10 }
 0x10c   :  { %v2165_v14 = vpop.f32.mrf.mxu1 }
 0x10d   :  { %v2138_v13 = vpop.f32.mrf.mxu0 }
 0x10e   :  { %v2166_v16 = vpop.f32.mrf.mxu1 }
 0x10f   :  { %v2140_v15 = vpop.f32.mrf.mxu0  ;;  %v2167_v0 = vadd.f32 %v2166_v16, %v2165_v14 }
 0x110   :  { %v2168_v18 = vpop.f32.mrf.mxu1 }
 0x111   :  { %v2141_v17 = vpop.f32.mrf.mxu0 }
 0x112   :  { %v2169_v20 = vpop.f32.mrf.mxu1  ;;  %v2142_v63 = vadd.f32 %v2141_v17, %v2140_v15 }
 0x123   :  { %v2187_v19 = vpop.f32.mrf.mxu0 }
 0x124   :  { %v3097_v22 = vpop.f32.mrf.mxu1 }
 0x125   :  { %v2188_v21 = vpop.f32.mrf.mxu0  ;;  %3140 = vst [vmem:[#allocation2_spill] sm:$0xff] %v3097_v22  ;;  %v1474_v22 = vadd.f32 %v2105_v51, %v1425_v48 }
 0x126   :  { %v3099_v24 = vpop.f32.mrf.mxu1  ;;  %v2189_v3 = vadd.f32 %v2188_v21, %v2187_v19 }
 0x127   :  { %v2190_v23 = vpop.f32.mrf.mxu0  ;;  %3141 = vst [vmem:[#allocation3_spill] sm:$0xff] %v3099_v24  ;;  %v2139_v24 = vadd.f32 %v2138_v13, %v2137_v11  ;;  %v1534_v11 = vadd.f32 %v2142_v63, %v1485_v54  ;;  %v2170_v13 = vadd.f32 %v2169_v20, %v2168_v18 }
 0x128   :  { %v3101_v26 = vpop.f32.mrf.mxu1 }
 0x129   :  { %v2191_v25 = vpop.f32.mrf.mxu0  ;;  %3142 = vst [vmem:[#allocation4_spill] sm:$0xff] %v3101_v26  ;;  %v1531_v56 = vadd.f32 %v2139_v24, %v1482_v60  ;;  %v1583_v16 = vadd.f32 %v2170_v13, %v1534_v11 }
 0x12a   :  { %v3103_v28 = vpop.f32.mrf.mxu1  ;;  %v2192_v7 = vadd.f32 %v2191_v25, %v2190_v23 }
 0x12b   :  { %v2193_v27 = vpop.f32.mrf.mxu0  ;;  %3143 = vst [vmem:[#allocation5_spill] sm:$0xff] %v3103_v28  ;;  %v2133_v28 = vadd.f32 %v2132_v4, %v2131_v2  ;;  %v2161_v2 = vadd.f32 %v3091_v8, %v3089_v6  ;;  %v1580_v15 = vadd.f32 %v2167_v0, %v1531_v56 }
 0x12c   :  { %v2221_v30 = vpop.f32.mrf.mxu1  ;;  %v3146_v8 = vld [vmem:[#allocation2_spill] sm:$0xff] }
 0x12d   :  { %v2194_v29 = vpop.f32.mrf.mxu0  ;;  %v1523_v41 = vadd.f32 %v2133_v28, %v1474_v22 }
 0x12e   :  { %v2222_v32 = vpop.f32.mrf.mxu1  ;;  %v3147_v19 = vld [vmem:[#allocation3_spill] sm:$0xff] }
 0x12f   :  { %v2196_v31 = vpop.f32.mrf.mxu0  ;;  %v1572_v59 = vadd.f32 %v2161_v2, %v1523_v41  ;;  %v2223_v6 = vadd.f32 %v2222_v32, %v2221_v30  ;;  %v2217_v21 = vadd.f32 %v3147_v19, %v3146_v8 }
 0x130   :  { %v2224_v34 = vpop.f32.mrf.mxu1  ;;  %v3148_v12 = vld [vmem:[#allocation4_spill] sm:$0xff] }
 0x131   :  { %v2197_v33 = vpop.f32.mrf.mxu0  ;;  %v1621_v24 = vadd.f32 %v2189_v3, %v1572_v59 }
 0x132   :  { %v2225_v36 = vpop.f32.mrf.mxu1  ;;  %v2198_v17 = vadd.f32 %v2197_v33, %v2196_v31  ;;  %v3149_v23 = vld [vmem:[#allocation5_spill] sm:$0xff] }
 0x133   :  { %v1670_v10 = vadd.f32 %v2217_v21, %v1621_v24  ;;  %v2220_v25 = vadd.f32 %v3149_v23, %v3148_v12 }
 0x143   :  { %v2243_v35 = vpop.f32.mrf.mxu0 }
 0x144   :  { %v3105_v37 = vpop.f32.mrf.mxu1 }
 0x145   :  { %3144 = vst [vmem:[#allocation6_spill] sm:$0xff] %v3105_v37  ;;  %v2244_v38 = vpop.f32.mrf.mxu0  ;;  %v1428_v37 = vadd.f32 %v2080_v44, %v1859_v42  ;;  %v2195_v42 = vadd.f32 %v2194_v29, %v2193_v27  ;;  %v1632_v27 = vadd.f32 %v2198_v17, %v1583_v16  ;;  %v2226_v29 = vadd.f32 %v2225_v36, %v2224_v34 }
 0x146   :  { %v3107_v39 = vpop.f32.mrf.mxu1  ;;  %v2245_v18 = vadd.f32 %v2244_v38, %v2243_v35 }
 0x147   :  { %3145 = vst [vmem:[#allocation7_spill] sm:$0xff] %v3107_v39  ;;  %v2246_v40 = vpop.f32.mrf.mxu0  ;;  %v1477_v1 = vadd.f32 %v2108_v55, %v1428_v37  ;;  %v1629_v28 = vadd.f32 %v2195_v42, %v1580_v15  ;;  %v1681_v50 = vadd.f32 %v2226_v29, %v1632_v27 }
 0x148   :  { %v3112_v45 = vpop.f32.mrf.mxu1  ;;  %v1719_v30 = vadd.f32 %v2245_v18, %v1670_v10 }
 0x149   :  { %v2247_v46 = vpop.f32.mrf.mxu0  ;;  %v1526_v4 = vadd.f32 %v2136_v57, %v1477_v1  ;;  %v1678_v44 = vadd.f32 %v2223_v6, %v1629_v28 }
 0x14a   :  { %v3114_v26 = vpop.f32.mrf.mxu1  ;;  %v2248_v31 = vadd.f32 %v2247_v46, %v2246_v40 }
 0x14b   :  { %v2249_v39 = vpop.f32.mrf.mxu0  ;;  %v1575_v22 = vadd.f32 %v2164_v61, %v1526_v4  ;;  %v2276_v1 = vadd.f32 %v3114_v26, %v3112_v45 }
 0x14c   :  { %v2277_v58 = vpop.f32.mrf.mxu1  ;;  %v3150_v38 = vld [vmem:[#allocation6_spill] sm:$0xff] }
 0x14d   :  { %v2250_v62 = vpop.f32.mrf.mxu0  ;;  %v1624_v37 = vadd.f32 %v2192_v7, %v1575_v22 }
 0x14e   :  { %v2278_v5 = vpop.f32.mrf.mxu1  ;;  %v2251_v43 = vadd.f32 %v2250_v62, %v2249_v39  ;;  %v3151_v53 = vld [vmem:[#allocation7_spill] sm:$0xff] }
 0x14f   :  { %v2252_v9 = vpop.f32.mrf.mxu0  ;;  %v1673_v49 = vadd.f32 %v2220_v25, %v1624_v37  ;;  %v2279_v52 = vadd.f32 %v2278_v5, %v2277_v58  ;;  %v2273_v34 = vadd.f32 %v3151_v53, %v3150_v38 }
 0x150   :  { %v2280_v14 = vpop.f32.mrf.mxu1  ;;  %v1727_v51 = vadd.f32 %v2251_v43, %v1678_v44 }
 0x151   :  { %v2253_v20 = vpop.f32.mrf.mxu0  ;;  %v1722_v36 = vadd.f32 %v2248_v31, %v1673_v49  ;;  %v1768_v63 = vadd.f32 %v2273_v34, %v1719_v30 }
 0x152   :  { %v2281_v33 = vpop.f32.mrf.mxu1  ;;  %v2254_v47 = vadd.f32 %v2253_v20, %v2252_v9  ;;  %v1776_v62 = vadd.f32 %v2279_v52, %v1727_v51 }
 0x153   :  { %v2282_v60 = vadd.f32 %v2281_v33, %v2280_v14  ;;  %v1771_v56 = vadd.f32 %v2276_v1, %v1722_v36 }
 0x154   :  { %v1730_v57 = vadd.f32 %v2254_v47, %v1681_v50 }
 0x156   :  { %v1779_v4 = vadd.f32 %v2282_v60, %v1730_v57 }
 0x163   :  { %v2299_v48 = vpop.f32.mrf.mxu0 }
 0x164   :  { %v2305_v32 = vpop.f32.mrf.mxu1 }
 0x165   :  { %v2300_v35 = vpop.f32.mrf.mxu0 }
 0x166   :  { %v2301_v39 = vadd.f32 %v2300_v35, %v2299_v48  ;;  %v2306_v55 = vpop.f32.mrf.mxu1 }
 0x167   :  { %v2307_v40 = vadd.f32 %v2306_v55, %v2305_v32  ;;  %v2302_v46 = vpop.f32.mrf.mxu0 }
 0x168   :  { %v2308_v41 = vpop.f32.mrf.mxu1  ;;  %v1817_v58 = vadd.f32 %v2301_v39, %v1768_v63 }
 0x169   :  { %v2303_v54 = vpop.f32.mrf.mxu0  ;;  %v1825_v3 = vadd.f32 %v2307_v40, %v1776_v62 }
 0x16a   :  { %v2304_v0 = vadd.f32 %v2303_v54, %v2302_v46  ;;  %v2309_v2 = vpop.f32.mrf.mxu1  ;;  %v1831_v42 = vmax.f32 %v1817_v58, 0.0 }
 0x16b   :  { %v2310_v5 = vadd.f32 %v2309_v2, %v2308_v41  ;;  %v1833_v61 = vmax.f32 %v1825_v3, 0.0 }
 0x16c   :  { %v1820_v11 = vadd.f32 %v2304_v0, %v1771_v56 }
 0x16d   :  { %v1828_v13 = vadd.f32 %v2310_v5, %v1779_v4 }
 0x16e   :  { %v1832_v59 = vmax.f32 %v1820_v11, 0.0 }
 0x16f   :  { %v1834_v7 = vmax.f32 %v1828_v13, 0.0 }
 0x170   :  { %v2051_v9 = vpack.c.bf16 %v1832_v59, %v1831_v42 }
 0x171   :  { %v2056_v15 = vpack.c.bf16 %v1834_v7, %v1833_v61 }
 0x172   :  { %2052 = vst [vmem:[%s3139_s3] sm:$0xff] %v2051_v9  }
 0x173   :  { %2058 = vst [vmem:[%s3139_s3 + $0x8] sm:$0xff] %v2056_v15  }

// kernel: cnn_model_forward.7
= control target key start
LH: loop header
LB: loop body
LE: loop exit
PB: predicated region body
PF: predicated region fallthrough
CT: control target
= control target key end

     0   :  { %v538_v36 = vlaneseq  ;;  %v5672_v37 = vmov 1966171168   ;;  %s7502_s0 = inlined_call_operand.vmem [shape: bf16[2,2048], index: 0, kind: input, shape index: {}]   ;;  %s7503_s1 = inlined_call_operand.vmem [shape: bf16[2048,512], index: 1, kind: input, shape index: {}]   ;;  %s7504_s2 = inlined_call_operand.vmem [shape: f32[1,512], index: 2, kind: input, shape index: {}]   ;;  %s7505_s3 = inlined_call_operand.vmem [shape: bf16[512,128], index: 3, kind: input, shape index: {}]   ;;  %s7506_s4 = inlined_call_operand.vmem [shape: f32[1,128], index: 4, kind: input, shape index: {}]   ;;  %s7507_s5 = inlined_call_operand.hbm [shape: f32[2,128], index: 5, kind: output, shape index: {}]  }
   0x1   :  { %v4847_v0 = vld [vmem:[%s7503_s1 + $0xe4] ss:$16 sps:$4 sm:$0xff]   ;;  %v4851_v2 = vld [vmem:[%s7503_s1 + $0xe0] ss:$16 sps:$4 sm:$0xff]   ;;  %v562_v38 = vunpack.c.l.s4 %v5672_v37 }
   0x2   :  { %v4849_v1 = vld [vmem:[%s7503_s1 + $0x2e4] ss:$16 sps:$4 sm:$0xff]   ;;  %3234 = vmatprep.subr.bf16.mxu0 %v4847_v0  ;;  %v4852_v3 = vld [vmem:[%s7503_s1 + $0x2e0] ss:$16 sps:$4 sm:$0xff]   ;;  %v5821_v42 = vshrl.u32 %v538_v36, 7 }
   0x3   :  { %3275 = vmatprep.subr.bf16.mxu1 %v4849_v1  ;;  %v4853_v4 = vld [vmem:[%s7503_s1 + $0xc4] ss:$16 sps:$4 sm:$0xff]   ;;  %3235 = vmatpush1.bf16.msra.mxu0 %v4851_v2  ;;  %v4857_v6 = vld [vmem:[%s7503_s1 + $0xc0] ss:$16 sps:$4 sm:$0xff]   ;;  %v563_v43 = vunpack.c.0.s8 %v562_v38 }
   0x4   :  { %3276 = vmatpush1.bf16.msra.mxu1 %v4852_v3  ;;  %v4855_v5 = vld [vmem:[%s7503_s1 + $0x2c4] ss:$16 sps:$4 sm:$0xff]   ;;  %3236 = vmatprep.subr.bf16.mxu0 %v4853_v4  ;;  %v4858_v7 = vld [vmem:[%s7503_s1 + $0x2c0] ss:$16 sps:$4 sm:$0xff]  }
   0x5   :  { %3277 = vmatprep.subr.bf16.mxu1 %v4855_v5  ;;  %v4859_v8 = vld [vmem:[%s7503_s1 + $0xa4] ss:$16 sps:$4 sm:$0xff]   ;;  %v4863_v10 = vld [vmem:[%s7503_s1 + $0xa0] ss:$16 sps:$4 sm:$0xff]   ;;  %v5839_v49 = vsub.s32 %v563_v43, %v5821_v42 }
   0x6   :  { %v4861_v9 = vld [vmem:[%s7503_s1 + $0x2a4] ss:$16 sps:$4 sm:$0xff]   ;;  %v4864_v11 = vld [vmem:[%s7503_s1 + $0x2a0] ss:$16 sps:$4 sm:$0xff]  }
   0x7   :  { %3237 = vmatpush1.bf16.msra.mxu0 %v4857_v6  ;;  %v4865_v12 = vld [vmem:[%s7503_s1 + $0x84] ss:$16 sps:$4 sm:$0xff]   ;;  %v4869_v14 = vld [vmem:[%s7503_s1 + $0x80] ss:$16 sps:$4 sm:$0xff]  }
   0x8   :  { %3278 = vmatpush1.bf16.msra.mxu1 %v4858_v7  ;;  %3238 = vmatprep.subr.bf16.mxu0 %v4859_v8  ;;  %v4867_v13 = vld [vmem:[%s7503_s1 + $0x284] ss:$16 sps:$4 sm:$0xff]   ;;  %v4870_v15 = vld [vmem:[%s7503_s1 + $0x280] ss:$16 sps:$4 sm:$0xff]  }
   0x9   :  { %3279 = vmatprep.subr.bf16.mxu1 %v4861_v9  ;;  %v4871_v16 = vld [vmem:[%s7503_s1 + $0x64] ss:$16 sps:$4 sm:$0xff]   ;;  %v4875_v18 = vld [vmem:[%s7503_s1 + $0x60] ss:$16 sps:$4 sm:$0xff]  }
   0xa   :  { %v4873_v17 = vld [vmem:[%s7503_s1 + $0x264] ss:$16 sps:$4 sm:$0xff]   ;;  %v4876_v19 = vld [vmem:[%s7503_s1 + $0x260] ss:$16 sps:$4 sm:$0xff]  }
   0xb   :  { %3239 = vmatpush1.bf16.msra.mxu0 %v4863_v10  ;;  %v4877_v20 = vld [vmem:[%s7503_s1 + $0x44] ss:$16 sps:$4 sm:$0xff]   ;;  %v4881_v22 = vld [vmem:[%s7503_s1 + $0x40] ss:$16 sps:$4 sm:$0xff]  }
   0xc   :  { %3280 = vmatpush1.bf16.msra.mxu1 %v4864_v11  ;;  %3240 = vmatprep.subr.bf16.mxu0 %v4865_v12  ;;  %v4879_v21 = vld [vmem:[%s7503_s1 + $0x244] ss:$16 sps:$4 sm:$0xff]   ;;  %v4882_v23 = vld [vmem:[%s7503_s1 + $0x240] ss:$16 sps:$4 sm:$0xff]  }
   0xd   :  { %3281 = vmatprep.subr.bf16.mxu1 %v4867_v13  ;;  %v4883_v24 = vld [vmem:[%s7503_s1 + $0x24] ss:$16 sps:$4 sm:$0xff]   ;;  %v4887_v26 = vld [vmem:[%s7503_s1 + $0x20] ss:$16 sps:$4 sm:$0xff]  }
   0xe   :  { %v4885_v25 = vld [vmem:[%s7503_s1 + $0x224] ss:$16 sps:$4 sm:$0xff]   ;;  %v4888_v27 = vld [vmem:[%s7503_s1 + $0x220] ss:$16 sps:$4 sm:$0xff]  }
   0xf   :  { %3241 = vmatpush1.bf16.msra.mxu0 %v4869_v14  ;;  %v4889_v28 = vld [vmem:[%s7503_s1 + $0x4] ss:$16 sps:$4 sm:$0xff]   ;;  %v4893_v30 = vld [vmem:[%s7503_s1] ss:$16 sps:$4 sm:$0xff]  }
  0x10   :  { %3282 = vmatpush1.bf16.msra.mxu1 %v4870_v15  ;;  %3242 = vmatprep.subr.bf16.mxu0 %v4871_v16  ;;  %v4891_v29 = vld [vmem:[%s7503_s1 + $0x204] ss:$16 sps:$4 sm:$0xff]   ;;  %v4894_v31 = vld [vmem:[%s7503_s1 + $0x200] ss:$16 sps:$4 sm:$0xff]  }
  0x11   :  { %3283 = vmatprep.subr.bf16.mxu1 %v4873_v17  ;;  %v4895_v32 = vld [vmem:[%s7503_s1 + $0x1e4] ss:$16 sps:$4 sm:$0xff]   ;;  %v4899_v34 = vld [vmem:[%s7503_s1 + $0x1e0] ss:$16 sps:$4 sm:$0xff]  }
  0x12   :  { %v4897_v33 = vld [vmem:[%s7503_s1 + $0x3e4] ss:$16 sps:$4 sm:$0xff]   ;;  %v4900_v35 = vld [vmem:[%s7503_s1 + $0x3e0] ss:$16 sps:$4 sm:$0xff]  }
  0x13   :  { %3243 = vmatpush1.bf16.msra.mxu0 %v4875_v18  ;;  %v4901_v39 = vld [vmem:[%s7503_s1 + $0x1c4] ss:$16 sps:$4 sm:$0xff]   ;;  %v4905_v41 = vld [vmem:[%s7503_s1 + $0x1c0] ss:$16 sps:$4 sm:$0xff]  }
  0x14   :  { %3284 = vmatpush1.bf16.msra.mxu1 %v4876_v19  ;;  %3244 = vmatprep.subr.bf16.mxu0 %v4877_v20  ;;  %v4903_v40 = vld [vmem:[%s7503_s1 + $0x3c4] ss:$16 sps:$4 sm:$0xff]   ;;  %v4906_v44 = vld [vmem:[%s7503_s1 + $0x3c0] ss:$16 sps:$4 sm:$0xff]  }
  0x15   :  { %3285 = vmatprep.subr.bf16.mxu1 %v4879_v21  ;;  %v4907_v45 = vld [vmem:[%s7503_s1 + $0x1a4] ss:$16 sps:$4 sm:$0xff]   ;;  %v4911_v47 = vld [vmem:[%s7503_s1 + $0x1a0] ss:$16 sps:$4 sm:$0xff]  }
  0x16   :  { %v4909_v46 = vld [vmem:[%s7503_s1 + $0x3a4] ss:$16 sps:$4 sm:$0xff]   ;;  %v4912_v48 = vld [vmem:[%s7503_s1 + $0x3a0] ss:$16 sps:$4 sm:$0xff]  }
  0x17   :  { %3245 = vmatpush1.bf16.msra.mxu0 %v4881_v22  ;;  %v4913_v50 = vld [vmem:[%s7503_s1 + $0x184] ss:$16 sps:$4 sm:$0xff]   ;;  %v4917_v53 = vld [vmem:[%s7503_s1 + $0x180] ss:$16 sps:$4 sm:$0xff]  }
  0x18   :  { %3286 = vmatpush1.bf16.msra.mxu1 %v4882_v23  ;;  %3246 = vmatprep.subr.bf16.mxu0 %v4883_v24  ;;  %v4915_v51 = vld [vmem:[%s7503_s1 + $0x384] ss:$16 sps:$4 sm:$0xff]   ;;  %v4918_v55 = vld [vmem:[%s7503_s1 + $0x380] ss:$16 sps:$4 sm:$0xff]  }
  0x19   :  { %3287 = vmatprep.subr.bf16.mxu1 %v4885_v25  ;;  %v22_v52 = vld [vmem:[%s7502_s0] sm:$0xff] }
  0x1a   :  { %v567_v54 = vrot.slane %v22_v52, %v5839_v49  ;;  %v4919_v56 = vld [vmem:[%s7503_s1 + $0x164] ss:$16 sps:$4 sm:$0xff]   ;;  %v4923_v59 = vld [vmem:[%s7503_s1 + $0x160] ss:$16 sps:$4 sm:$0xff]   ;;  %v560_v1 = vcombine.high %v22_v52, %v22_v52 }
  0x1b   :  { %3247 = vmatpush1.bf16.msra.mxu0 %v4887_v26  ;;  %v4921_v57 = vld [vmem:[%s7503_s1 + $0x364] ss:$16 sps:$4 sm:$0xff]   ;;  %v4924_v61 = vld [vmem:[%s7503_s1 + $0x360] ss:$16 sps:$4 sm:$0xff]  }
  0x1c   :  { %3288 = vmatpush1.bf16.msra.mxu1 %v4888_v27  ;;  %3248 = vmatprep.subr.bf16.mxu0 %v4889_v28  ;;  %v575_v58 = vcombine.high %v567_v54, %v567_v54  ;;  %v4925_v62 = vld [vmem:[%s7503_s1 + $0x144] ss:$16 sps:$4 sm:$0xff]   ;;  %v4929_v2 = vld [vmem:[%s7503_s1 + $0x140] ss:$16 sps:$4 sm:$0xff]   ;;  %v5897_v6 = vrot.slane %v560_v1, %v5839_v49  ;;  %v5917_v13 = vrot.slane %v567_v54, %v5839_v49 }
  0x1d   :  { %3289 = vmatprep.subr.bf16.mxu1 %v4891_v29  ;;  %v4927_v63 = vld [vmem:[%s7503_s1 + $0x344] ss:$16 sps:$4 sm:$0xff]   ;;  %v4930_v3 = vld [vmem:[%s7503_s1 + $0x340] ss:$16 sps:$4 sm:$0xff]  }
  0x1e   :  { %v5867_v60 = vrot.slane %v575_v58, %v5839_v49  ;;  %v4931_v4 = vld [vmem:[%s7503_s1 + $0x124] ss:$16 sps:$4 sm:$0xff]   ;;  %v4935_v7 = vld [vmem:[%s7503_s1 + $0x120] ss:$16 sps:$4 sm:$0xff]   ;;  %v576_v11 = vcombine.high %v5897_v6, %v5897_v6  ;;  %v5933_v18 = vcombine.high %v5917_v13, %v5917_v13 }
  0x1f   :  { %3249 = vmatpush1.bf16.msra.mxu0 %v4893_v30  ;;  %v4933_v5 = vld [vmem:[%s7503_s1 + $0x324] ss:$16 sps:$4 sm:$0xff]   ;;  %v4936_v8 = vld [vmem:[%s7503_s1 + $0x320] ss:$16 sps:$4 sm:$0xff]  }
  0x20   :  { %3290 = vmatpush1.bf16.msra.mxu1 %v4894_v31  ;;  %3250 = vmatprep.subr.bf16.mxu0 %v4895_v32  ;;  %v5880_v0 = vcombine.high %v5867_v60, %v5867_v60  ;;  %v4937_v9 = vld [vmem:[%s7503_s1 + $0x104] ss:$16 sps:$4 sm:$0xff]   ;;  %v4941_v12 = vld [vmem:[%s7503_s1 + $0x100] ss:$16 sps:$4 sm:$0xff]   ;;  %v5929_v17 = vrot.slane %v576_v11, %v5839_v49 }
  0x21   :  { %3291 = vmatprep.subr.bf16.mxu1 %v4897_v33  ;;  %3266 = vmatprep.mubr.bf16.mxu0 %v5867_v60  ;;  %v4939_v10 = vld [vmem:[%s7503_s1 + $0x304] ss:$16 sps:$4 sm:$0xff]   ;;  %v4942_v14 = vld [vmem:[%s7503_s1 + $0x300] ss:$16 sps:$4 sm:$0xff]  }
  0x22   :  { %3307 = vmatprep.mubr.bf16.mxu1 %v5880_v0  ;;  %v4945_v15 = vld [vmem:[%s7503_s1 + $0x4e4] ss:$16 sps:$4 sm:$0xff]   ;;  %v4943_v19 = vld [vmem:[%s7503_s1 + $0x4e0] ss:$16 sps:$4 sm:$0xff]   ;;  %v5949_v23 = vcombine.high %v5929_v17, %v5929_v17 }
  0x23   :  { %3251 = vmatpush2.bf16.msra.mxu0 %v4899_v34  ;;  %v4948_v16 = vld [vmem:[%s7503_s1 + $0x6e4] ss:$16 sps:$4 sm:$0xff]   ;;  %v4946_v20 = vld [vmem:[%s7503_s1 + $0x6e0] ss:$16 sps:$4 sm:$0xff]  }
  0x24   :  { %3292 = vmatpush2.bf16.msra.mxu1 %v4900_v35  ;;  %3252 = vmatprep.subr.bf16.mxu0 %v4901_v39  ;;  %v4951_v21 = vld [vmem:[%s7503_s1 + $0x4c4] ss:$16 sps:$4 sm:$0xff]   ;;  %v4949_v24 = vld [vmem:[%s7503_s1 + $0x4c0] ss:$16 sps:$4 sm:$0xff]  }
  0x25   :  { %3293 = vmatprep.subr.bf16.mxu1 %v4903_v40  ;;  %v4954_v22 = vld [vmem:[%s7503_s1 + $0x6c4] ss:$16 sps:$4 sm:$0xff]   ;;  %v4952_v25 = vld [vmem:[%s7503_s1 + $0x6c0] ss:$16 sps:$4 sm:$0xff]  }
  0x26   :  { %v4957_v26 = vld [vmem:[%s7503_s1 + $0x4a4] ss:$16 sps:$4 sm:$0xff]   ;;  %v4955_v28 = vld [vmem:[%s7503_s1 + $0x4a0] ss:$16 sps:$4 sm:$0xff]  }
  0x27   :  { %3253 = vmatpush2.bf16.msra.mxu0 %v4905_v41  ;;  %v4960_v27 = vld [vmem:[%s7503_s1 + $0x6a4] ss:$16 sps:$4 sm:$0xff]   ;;  %v4958_v29 = vld [vmem:[%s7503_s1 + $0x6a0] ss:$16 sps:$4 sm:$0xff]  }
  0x28   :  { %3294 = vmatpush2.bf16.msra.mxu1 %v4906_v44  ;;  %3254 = vmatprep.subr.bf16.mxu0 %v4907_v45  ;;  %v4963_v30 = vld [vmem:[%s7503_s1 + $0x484] ss:$16 sps:$4 sm:$0xff]   ;;  %v4961_v32 = vld [vmem:[%s7503_s1 + $0x480] ss:$16 sps:$4 sm:$0xff]  }
  0x29   :  { %3295 = vmatprep.subr.bf16.mxu1 %v4909_v46  ;;  %v4966_v31 = vld [vmem:[%s7503_s1 + $0x684] ss:$16 sps:$4 sm:$0xff]   ;;  %v4964_v33 = vld [vmem:[%s7503_s1 + $0x680] ss:$16 sps:$4 sm:$0xff]  }
  0x2a   :  { %v4969_v34 = vld [vmem:[%s7503_s1 + $0x464] ss:$16 sps:$4 sm:$0xff]   ;;  %v4967_v36 = vld [vmem:[%s7503_s1 + $0x460] ss:$16 sps:$4 sm:$0xff]  }
  0x2b   :  { %3255 = vmatpush2.bf16.msra.mxu0 %v4911_v47  ;;  %v4972_v35 = vld [vmem:[%s7503_s1 + $0x664] ss:$16 sps:$4 sm:$0xff]   ;;  %v4970_v37 = vld [vmem:[%s7503_s1 + $0x660] ss:$16 sps:$4 sm:$0xff]  }
  0x2c   :  { %3296 = vmatpush2.bf16.msra.mxu1 %v4912_v48  ;;  %3256 = vmatprep.subr.bf16.mxu0 %v4913_v50  ;;  %v4975_v38 = vld [vmem:[%s7503_s1 + $0x444] ss:$16 sps:$4 sm:$0xff]   ;;  %v4973_v40 = vld [vmem:[%s7503_s1 + $0x440] ss:$16 sps:$4 sm:$0xff]  }
  0x2d   :  { %3297 = vmatprep.subr.bf16.mxu1 %v4915_v51  ;;  %v4978_v39 = vld [vmem:[%s7503_s1 + $0x644] ss:$16 sps:$4 sm:$0xff]   ;;  %v4976_v41 = vld [vmem:[%s7503_s1 + $0x640] ss:$16 sps:$4 sm:$0xff]  }
  0x2e   :  { %v4981_v43 = vld [vmem:[%s7503_s1 + $0x424] ss:$16 sps:$4 sm:$0xff]   ;;  %v4979_v45 = vld [vmem:[%s7503_s1 + $0x420] ss:$16 sps:$4 sm:$0xff]  }
  0x2f   :  { %3257 = vmatpush2.bf16.msra.mxu0 %v4917_v53  ;;  %v4984_v44 = vld [vmem:[%s7503_s1 + $0x624] ss:$16 sps:$4 sm:$0xff]   ;;  %v4982_v46 = vld [vmem:[%s7503_s1 + $0x620] ss:$16 sps:$4 sm:$0xff]  }
  0x30   :  { %3298 = vmatpush2.bf16.msra.mxu1 %v4918_v55  ;;  %3258 = vmatprep.subr.bf16.mxu0 %v4919_v56  ;;  %v4987_v47 = vld [vmem:[%s7503_s1 + $0x404] ss:$16 sps:$4 sm:$0xff]   ;;  %v4985_v50 = vld [vmem:[%s7503_s1 + $0x400] ss:$16 sps:$4 sm:$0xff]  }
  0x31   :  { %3299 = vmatprep.subr.bf16.mxu1 %v4921_v57  ;;  %v4990_v48 = vld [vmem:[%s7503_s1 + $0x604] ss:$16 sps:$4 sm:$0xff]   ;;  %v4988_v51 = vld [vmem:[%s7503_s1 + $0x600] ss:$16 sps:$4 sm:$0xff]  }
  0x32   :  { %v4993_v52 = vld [vmem:[%s7503_s1 + $0x5e4] ss:$16 sps:$4 sm:$0xff]   ;;  %v4991_v54 = vld [vmem:[%s7503_s1 + $0x5e0] ss:$16 sps:$4 sm:$0xff]  }
  0x33   :  { %3259 = vmatpush2.bf16.msra.mxu0 %v4923_v59  ;;  %v4996_v53 = vld [vmem:[%s7503_s1 + $0x7e4] ss:$16 sps:$4 sm:$0xff]   ;;  %v4994_v55 = vld [vmem:[%s7503_s1 + $0x7e0] ss:$16 sps:$4 sm:$0xff]  }
  0x34   :  { %3300 = vmatpush2.bf16.msra.mxu1 %v4924_v61  ;;  %3260 = vmatprep.subr.bf16.mxu0 %v4925_v62  ;;  %v4999_v56 = vld [vmem:[%s7503_s1 + $0x5c4] ss:$16 sps:$4 sm:$0xff]   ;;  %v4997_v58 = vld [vmem:[%s7503_s1 + $0x5c0] ss:$16 sps:$4 sm:$0xff]  }
  0x35   :  { %3301 = vmatprep.subr.bf16.mxu1 %v4927_v63  ;;  %v5002_v57 = vld [vmem:[%s7503_s1 + $0x7c4] ss:$16 sps:$4 sm:$0xff]   ;;  %v5000_v59 = vld [vmem:[%s7503_s1 + $0x7c0] ss:$16 sps:$4 sm:$0xff]  }
  0x36   :  { %v5005_v61 = vld [vmem:[%s7503_s1 + $0x5a4] ss:$16 sps:$4 sm:$0xff]   ;;  %v5003_v63 = vld [vmem:[%s7503_s1 + $0x5a0] ss:$16 sps:$4 sm:$0xff]  }
  0x37   :  { %3261 = vmatpush2.bf16.msra.mxu0 %v4929_v2  ;;  %v5008_v62 = vld [vmem:[%s7503_s1 + $0x7a4] ss:$16 sps:$4 sm:$0xff]   ;;  %v5006_v1 = vld [vmem:[%s7503_s1 + $0x7a0] ss:$16 sps:$4 sm:$0xff]  }
  0x38   :  { %3302 = vmatpush2.bf16.msra.mxu1 %v4930_v3  ;;  %3262 = vmatprep.subr.bf16.mxu0 %v4931_v4  ;;  %v5011_v2 = vld [vmem:[%s7503_s1 + $0x584] ss:$16 sps:$4 sm:$0xff]   ;;  %v5009_v4 = vld [vmem:[%s7503_s1 + $0x580] ss:$16 sps:$4 sm:$0xff]  }
  0x39   :  { %3303 = vmatprep.subr.bf16.mxu1 %v4933_v5  ;;  %v5014_v3 = vld [vmem:[%s7503_s1 + $0x784] ss:$16 sps:$4 sm:$0xff]   ;;  %v5012_v5 = vld [vmem:[%s7503_s1 + $0x780] ss:$16 sps:$4 sm:$0xff]  }
  0x3a   :  { %v5023_v11 = vld [vmem:[%s7503_s1 + $0x544] ss:$16 sps:$4 sm:$0xff]  }
  0x3b   :  { %3263 = vmatpush2.bf16.msra.mxu0 %v4935_v7  ;;  %v5017_v7 = vld [vmem:[%s7503_s1 + $0x564] ss:$16 sps:$4 sm:$0xff]  }
  0x3c   :  { %3304 = vmatpush2.bf16.msra.mxu1 %v4936_v8  ;;  %3264 = vmatprep.subr.bf16.mxu0 %v4937_v9  ;;  %v5020_v8 = vld [vmem:[%s7503_s1 + $0x764] ss:$16 sps:$4 sm:$0xff]   ;;  %v5015_v9 = vld [vmem:[%s7503_s1 + $0x560] ss:$16 sps:$4 sm:$0xff]  }
  0x3d   :  { %3305 = vmatprep.subr.bf16.mxu1 %v4939_v10  ;;  %v5018_v10 = vld [vmem:[%s7503_s1 + $0x760] ss:$16 sps:$4 sm:$0xff]  }
  0x3f   :  { %3265 = vmatpush2.bf16.msra.mxu0 %v4941_v12  ;;  %v5026_v12 = vld [vmem:[%s7503_s1 + $0x744] ss:$16 sps:$4 sm:$0xff]  }
  0x40   :  { %3306 = vmatpush2.bf16.msra.mxu1 %v4942_v14  ;;  %3316 = vmatprep.subr.bf16.mxu0 %v4945_v15  ;;  %v5021_v14 = vld [vmem:[%s7503_s1 + $0x540] ss:$16 sps:$4 sm:$0xff]  }
  0x41   :  { %3357 = vmatprep.subr.bf16.mxu1 %v4948_v16  ;;  %v5024_v15 = vld [vmem:[%s7503_s1 + $0x740] ss:$16 sps:$4 sm:$0xff]   ;;  %v5029_v16 = vld [vmem:[%s7503_s1 + $0x524] ss:$16 sps:$4 sm:$0xff]  }
  0x42   :  { %3267 = vmatmul.mubr.bf16.vlgmr.msra.gmra.mxu0 %v5917_v13 }
  0x43   :  { %3308 = vmatmul.mubr.bf16.vlgmr.msra.gmra.mxu1 %v5933_v18  ;;  %3317 = vmatpush1.bf16.msra.mxu0 %v4943_v19  ;;  %v5032_v19 = vld [vmem:[%s7503_s1 + $0x724] ss:$16 sps:$4 sm:$0xff]  }
  0x44   :  { %3358 = vmatpush1.bf16.msra.mxu1 %v4946_v20  ;;  %3318 = vmatprep.subr.bf16.mxu0 %v4951_v21  ;;  %v5027_v20 = vld [vmem:[%s7503_s1 + $0x520] ss:$16 sps:$4 sm:$0xff]  }
  0x45   :  { %3359 = vmatprep.subr.bf16.mxu1 %v4954_v22  ;;  %3348 = vmatprep.mubr.bf16.mxu0 %v5929_v17  ;;  %v5030_v21 = vld [vmem:[%s7503_s1 + $0x720] ss:$16 sps:$4 sm:$0xff]   ;;  %v5035_v22 = vld [vmem:[%s7503_s1 + $0x504] ss:$16 sps:$4 sm:$0xff]  }
  0x46   :  { %3389 = vmatprep.mubr.bf16.mxu1 %v5949_v23 }
  0x47   :  { %3319 = vmatpush1.bf16.msra.mxu0 %v4949_v24  ;;  %v5038_v24 = vld [vmem:[%s7503_s1 + $0x704] ss:$16 sps:$4 sm:$0xff]  }
  0x48   :  { %3360 = vmatpush1.bf16.msra.mxu1 %v4952_v25  ;;  %3320 = vmatprep.subr.bf16.mxu0 %v4957_v26  ;;  %v5033_v25 = vld [vmem:[%s7503_s1 + $0x500] ss:$16 sps:$4 sm:$0xff]   ;;  %v6128_v26 = vrot.slane %v5897_v6, %v5839_v49 }
  0x49   :  { %3361 = vmatprep.subr.bf16.mxu1 %v4960_v27  ;;  %v5036_v27 = vld [vmem:[%s7503_s1 + $0x700] ss:$16 sps:$4 sm:$0xff]  }
  0x4a   :  { %v6141_v6 = vcombine.high %v6128_v26, %v6128_v26 }
  0x4b   :  { %3321 = vmatpush1.bf16.msra.mxu0 %v4955_v28  ;;  %v5042_v28 = vld [vmem:[%s7503_s1 + $0x8e4] ss:$16 sps:$4 sm:$0xff]  }
  0x4c   :  { %3362 = vmatpush1.bf16.msra.mxu1 %v4958_v29  ;;  %3322 = vmatprep.subr.bf16.mxu0 %v4963_v30  ;;  %v5045_v29 = vld [vmem:[%s7503_s1 + $0xae4] ss:$16 sps:$4 sm:$0xff]   ;;  %v5040_v30 = vld [vmem:[%s7503_s1 + $0x8e0] ss:$16 sps:$4 sm:$0xff]  }
  0x4d   :  { %3363 = vmatprep.subr.bf16.mxu1 %v4966_v31  ;;  %v5043_v31 = vld [vmem:[%s7503_s1 + $0xae0] ss:$16 sps:$4 sm:$0xff]  }
  0x4f   :  { %3323 = vmatpush1.bf16.msra.mxu0 %v4961_v32  ;;  %v6152_v32 = vld [vmem:[%s7502_s0 + $0x8] sm:$0xff] }
  0x50   :  { %3364 = vmatpush1.bf16.msra.mxu1 %v4964_v33  ;;  %3324 = vmatprep.subr.bf16.mxu0 %v4969_v34  ;;  %v5048_v33 = vld [vmem:[%s7503_s1 + $0x8c4] ss:$16 sps:$4 sm:$0xff]  }
  0x51   :  { %3365 = vmatprep.subr.bf16.mxu1 %v4972_v35  ;;  %v5051_v34 = vld [vmem:[%s7503_s1 + $0xac4] ss:$16 sps:$4 sm:$0xff]   ;;  %v6162_v35 = vrot.slane %v6152_v32, %v5839_v49 }
  0x53   :  { %3325 = vmatpush1.bf16.msra.mxu0 %v4967_v36  ;;  %v624_v36 = vcombine.high %v6162_v35, %v6162_v35 }
  0x54   :  { %3366 = vmatpush1.bf16.msra.mxu1 %v4970_v37  ;;  %3326 = vmatprep.subr.bf16.mxu0 %v4975_v38  ;;  %v5046_v37 = vld [vmem:[%s7503_s1 + $0x8c0] ss:$16 sps:$4 sm:$0xff]  }
  0x55   :  { %3367 = vmatprep.subr.bf16.mxu1 %v4978_v39  ;;  %v5049_v38 = vld [vmem:[%s7503_s1 + $0xac0] ss:$16 sps:$4 sm:$0xff]   ;;  %v5054_v39 = vld [vmem:[%s7503_s1 + $0x8a4] ss:$16 sps:$4 sm:$0xff]  }
  0x57   :  { %3327 = vmatpush1.bf16.msra.mxu0 %v4973_v40  ;;  %v5057_v40 = vld [vmem:[%s7503_s1 + $0xaa4] ss:$16 sps:$4 sm:$0xff]  }
  0x58   :  { %3368 = vmatpush1.bf16.msra.mxu1 %v4976_v41  ;;  %3328 = vmatprep.subr.bf16.mxu0 %v4981_v43  ;;  %v6181_v41 = vrot.slane %v624_v36, %v5839_v49  ;;  %v5118_v36 = vld [vmem:[%s7503_s1 + $0x940] ss:$16 sps:$4 sm:$0xff]  }
  0x59   :  { %3369 = vmatprep.subr.bf16.mxu1 %v4984_v44  ;;  %v5052_v44 = vld [vmem:[%s7503_s1 + $0x8a0] ss:$16 sps:$4 sm:$0xff]  }
  0x5a   :  { %v6186_v43 = vcombine.high %v6181_v41, %v6181_v41 }
  0x5b   :  { %3329 = vmatpush1.bf16.msra.mxu0 %v4979_v45  ;;  %v5055_v45 = vld [vmem:[%s7503_s1 + $0xaa0] ss:$16 sps:$4 sm:$0xff]  }
  0x5c   :  { %3370 = vmatpush1.bf16.msra.mxu1 %v4982_v46  ;;  %3330 = vmatprep.subr.bf16.mxu0 %v4987_v47  ;;  %v5060_v46 = vld [vmem:[%s7503_s1 + $0x884] ss:$16 sps:$4 sm:$0xff]  }
  0x5d   :  { %3371 = vmatprep.subr.bf16.mxu1 %v4990_v48  ;;  %v5063_v47 = vld [vmem:[%s7503_s1 + $0xa84] ss:$16 sps:$4 sm:$0xff]   ;;  %v5058_v48 = vld [vmem:[%s7503_s1 + $0x880] ss:$16 sps:$4 sm:$0xff]  }
  0x5f   :  { %3331 = vmatpush1.bf16.msra.mxu0 %v4985_v50  ;;  %v5061_v50 = vld [vmem:[%s7503_s1 + $0xa80] ss:$16 sps:$4 sm:$0xff]  }
  0x60   :  { %3372 = vmatpush1.bf16.msra.mxu1 %v4988_v51  ;;  %3332 = vmatprep.subr.bf16.mxu0 %v4993_v52  ;;  %v5066_v51 = vld [vmem:[%s7503_s1 + $0x864] ss:$16 sps:$4 sm:$0xff]  }
  0x61   :  { %3373 = vmatprep.subr.bf16.mxu1 %v4996_v53  ;;  %v5069_v52 = vld [vmem:[%s7503_s1 + $0xa64] ss:$16 sps:$4 sm:$0xff]   ;;  %v5064_v53 = vld [vmem:[%s7503_s1 + $0x860] ss:$16 sps:$4 sm:$0xff]  }
  0x63   :  { %3333 = vmatpush2.bf16.msra.mxu0 %v4991_v54  ;;  %v5067_v54 = vld [vmem:[%s7503_s1 + $0xa60] ss:$16 sps:$4 sm:$0xff]  }
  0x64   :  { %3374 = vmatpush2.bf16.msra.mxu1 %v4994_v55  ;;  %3334 = vmatprep.subr.bf16.mxu0 %v4999_v56  ;;  %v5072_v55 = vld [vmem:[%s7503_s1 + $0x844] ss:$16 sps:$4 sm:$0xff]  }
  0x65   :  { %3375 = vmatprep.subr.bf16.mxu1 %v5002_v57  ;;  %v5075_v56 = vld [vmem:[%s7503_s1 + $0xa44] ss:$16 sps:$4 sm:$0xff]   ;;  %v5070_v57 = vld [vmem:[%s7503_s1 + $0x840] ss:$16 sps:$4 sm:$0xff]  }
  0x67   :  { %3335 = vmatpush2.bf16.msra.mxu0 %v4997_v58  ;;  %v5073_v58 = vld [vmem:[%s7503_s1 + $0xa40] ss:$16 sps:$4 sm:$0xff]  }
  0x68   :  { %3376 = vmatpush2.bf16.msra.mxu1 %v5000_v59  ;;  %3336 = vmatprep.subr.bf16.mxu0 %v5005_v61  ;;  %v5078_v59 = vld [vmem:[%s7503_s1 + $0x824] ss:$16 sps:$4 sm:$0xff]  }
  0x69   :  { %3377 = vmatprep.subr.bf16.mxu1 %v5008_v62  ;;  %v5081_v61 = vld [vmem:[%s7503_s1 + $0xa24] ss:$16 sps:$4 sm:$0xff]   ;;  %v5076_v62 = vld [vmem:[%s7503_s1 + $0x820] ss:$16 sps:$4 sm:$0xff]  }
  0x6b   :  { %3337 = vmatpush2.bf16.msra.mxu0 %v5003_v63  ;;  %v5079_v63 = vld [vmem:[%s7503_s1 + $0xa20] ss:$16 sps:$4 sm:$0xff]  }
  0x6c   :  { %3378 = vmatpush2.bf16.msra.mxu1 %v5006_v1  ;;  %3338 = vmatprep.subr.bf16.mxu0 %v5011_v2  ;;  %v5084_v1 = vld [vmem:[%s7503_s1 + $0x804] ss:$16 sps:$4 sm:$0xff]  }
  0x6d   :  { %3379 = vmatprep.subr.bf16.mxu1 %v5014_v3  ;;  %v5087_v2 = vld [vmem:[%s7503_s1 + $0xa04] ss:$16 sps:$4 sm:$0xff]   ;;  %v5082_v3 = vld [vmem:[%s7503_s1 + $0x800] ss:$16 sps:$4 sm:$0xff]  }
  0x6f   :  { %3339 = vmatpush2.bf16.msra.mxu0 %v5009_v4  ;;  %v5085_v4 = vld [vmem:[%s7503_s1 + $0xa00] ss:$16 sps:$4 sm:$0xff]  }
  0x70   :  { %3380 = vmatpush2.bf16.msra.mxu1 %v5012_v5  ;;  %3340 = vmatprep.subr.bf16.mxu0 %v5017_v7  ;;  %v5090_v5 = vld [vmem:[%s7503_s1 + $0x9e4] ss:$16 sps:$4 sm:$0xff]  }
  0x71   :  { %3381 = vmatprep.subr.bf16.mxu1 %v5020_v8  ;;  %v5093_v7 = vld [vmem:[%s7503_s1 + $0xbe4] ss:$16 sps:$4 sm:$0xff]   ;;  %v5088_v8 = vld [vmem:[%s7503_s1 + $0x9e0] ss:$16 sps:$4 sm:$0xff]  }
  0x73   :  { %3341 = vmatpush2.bf16.msra.mxu0 %v5015_v9  ;;  %v5091_v9 = vld [vmem:[%s7503_s1 + $0xbe0] ss:$16 sps:$4 sm:$0xff]  }
  0x74   :  { %3382 = vmatpush2.bf16.msra.mxu1 %v5018_v10  ;;  %3342 = vmatprep.subr.bf16.mxu0 %v5023_v11  ;;  %v5096_v10 = vld [vmem:[%s7503_s1 + $0x9c4] ss:$16 sps:$4 sm:$0xff]  }
  0x75   :  { %3383 = vmatprep.subr.bf16.mxu1 %v5026_v12  ;;  %v5099_v11 = vld [vmem:[%s7503_s1 + $0xbc4] ss:$16 sps:$4 sm:$0xff]   ;;  %v5094_v12 = vld [vmem:[%s7503_s1 + $0x9c0] ss:$16 sps:$4 sm:$0xff]  }
  0x77   :  { %3343 = vmatpush2.bf16.msra.mxu0 %v5021_v14  ;;  %v5097_v14 = vld [vmem:[%s7503_s1 + $0xbc0] ss:$16 sps:$4 sm:$0xff]  }
  0x78   :  { %3384 = vmatpush2.bf16.msra.mxu1 %v5024_v15  ;;  %3344 = vmatprep.subr.bf16.mxu0 %v5029_v16  ;;  %v5102_v15 = vld [vmem:[%s7503_s1 + $0x9a4] ss:$16 sps:$4 sm:$0xff]  }
  0x79   :  { %3385 = vmatprep.subr.bf16.mxu1 %v5032_v19  ;;  %v5105_v16 = vld [vmem:[%s7503_s1 + $0xba4] ss:$16 sps:$4 sm:$0xff]   ;;  %v5100_v19 = vld [vmem:[%s7503_s1 + $0x9a0] ss:$16 sps:$4 sm:$0xff]  }
  0x7b   :  { %3345 = vmatpush2.bf16.msra.mxu0 %v5027_v20  ;;  %v5103_v20 = vld [vmem:[%s7503_s1 + $0xba0] ss:$16 sps:$4 sm:$0xff]  }
  0x7c   :  { %3386 = vmatpush2.bf16.msra.mxu1 %v5030_v21  ;;  %3346 = vmatprep.subr.bf16.mxu0 %v5035_v22  ;;  %v5108_v21 = vld [vmem:[%s7503_s1 + $0x984] ss:$16 sps:$4 sm:$0xff]  }
  0x7d   :  { %3387 = vmatprep.subr.bf16.mxu1 %v5038_v24  ;;  %v5111_v22 = vld [vmem:[%s7503_s1 + $0xb84] ss:$16 sps:$4 sm:$0xff]   ;;  %v5106_v24 = vld [vmem:[%s7503_s1 + $0x980] ss:$16 sps:$4 sm:$0xff]  }
  0x7f   :  { %3347 = vmatpush2.bf16.msra.mxu0 %v5033_v25  ;;  %v5109_v25 = vld [vmem:[%s7503_s1 + $0xb80] ss:$16 sps:$4 sm:$0xff]  }
  0x80   :  { %3388 = vmatpush2.bf16.msra.mxu1 %v5036_v27  ;;  %3398 = vmatprep.subr.bf16.mxu0 %v5042_v28  ;;  %v5114_v27 = vld [vmem:[%s7503_s1 + $0x964] ss:$16 sps:$4 sm:$0xff]  }
  0x81   :  { %3439 = vmatprep.subr.bf16.mxu1 %v5045_v29  ;;  %v5117_v28 = vld [vmem:[%s7503_s1 + $0xb64] ss:$16 sps:$4 sm:$0xff]   ;;  %v5112_v29 = vld [vmem:[%s7503_s1 + $0x960] ss:$16 sps:$4 sm:$0xff]  }
  0x82   :  { %3349 = vmatmul.mubr.bf16.vlgmr.msra.gmra.mxu0 %v6128_v26 }
  0x83   :  { %3390 = vmatmul.mubr.bf16.vlgmr.msra.gmra.mxu1 %v6141_v6  ;;  %3399 = vmatpush1.bf16.msra.mxu0 %v5040_v30  ;;  %v5115_v30 = vld [vmem:[%s7503_s1 + $0xb60] ss:$16 sps:$4 sm:$0xff]  }
  0x84   :  { %3440 = vmatpush1.bf16.msra.mxu1 %v5043_v31  ;;  %3400 = vmatprep.subr.bf16.mxu0 %v5048_v33  ;;  %v5120_v31 = vld [vmem:[%s7503_s1 + $0x944] ss:$16 sps:$4 sm:$0xff]  }
  0x85   :  { %3441 = vmatprep.subr.bf16.mxu1 %v5051_v34  ;;  %3430 = vmatprep.mubr.bf16.mxu0 %v6181_v41  ;;  %v5123_v33 = vld [vmem:[%s7503_s1 + $0xb44] ss:$16 sps:$4 sm:$0xff]   ;;  %v609_v34 = vcombine.high %v6152_v32, %v6152_v32 }
  0x86   :  { %3471 = vmatprep.mubr.bf16.mxu1 %v6186_v43  ;;  %v5129_v32 = vld [vmem:[%s7503_s1 + $0xb24] ss:$16 sps:$4 sm:$0xff]  }
  0x87   :  { %3401 = vmatpush1.bf16.msra.mxu0 %v5046_v37  ;;  %v5121_v37 = vld [vmem:[%s7503_s1 + $0xb40] ss:$16 sps:$4 sm:$0xff]  }
  0x88   :  { %3442 = vmatpush1.bf16.msra.mxu1 %v5049_v38  ;;  %3402 = vmatprep.subr.bf16.mxu0 %v5054_v39  ;;  %v5126_v38 = vld [vmem:[%s7503_s1 + $0x924] ss:$16 sps:$4 sm:$0xff]   ;;  %v6336_v39 = vrot.slane %v609_v34, %v5839_v49  ;;  %v5187_v34 = vld [vmem:[%s7503_s1 + $0xfe0] ss:$16 sps:$4 sm:$0xff]  }
  0x89   :  { %3443 = vmatprep.subr.bf16.mxu1 %v5057_v40  ;;  %v5124_v40 = vld [vmem:[%s7503_s1 + $0x920] ss:$16 sps:$4 sm:$0xff]  }
  0x8b   :  { %3403 = vmatpush1.bf16.msra.mxu0 %v5052_v44  ;;  %v5127_v44 = vld [vmem:[%s7503_s1 + $0xb20] ss:$16 sps:$4 sm:$0xff]  }
  0x8c   :  { %3444 = vmatpush1.bf16.msra.mxu1 %v5055_v45  ;;  %3404 = vmatprep.subr.bf16.mxu0 %v5060_v46  ;;  %v5132_v45 = vld [vmem:[%s7503_s1 + $0x904] ss:$16 sps:$4 sm:$0xff]  }
  0x8d   :  { %3445 = vmatprep.subr.bf16.mxu1 %v5063_v47  ;;  %v5135_v46 = vld [vmem:[%s7503_s1 + $0xb04] ss:$16 sps:$4 sm:$0xff]   ;;  %v625_v47 = vcombine.high %v6336_v39, %v6336_v39 }
  0x8f   :  { %3405 = vmatpush1.bf16.msra.mxu0 %v5058_v48  ;;  %v5130_v48 = vld [vmem:[%s7503_s1 + $0x900] ss:$16 sps:$4 sm:$0xff]  }
  0x90   :  { %3446 = vmatpush1.bf16.msra.mxu1 %v5061_v50  ;;  %3406 = vmatprep.subr.bf16.mxu0 %v5066_v51  ;;  %v6357_v50 = vrot.slane %v6162_v35, %v5839_v49  ;;  %v5133_v51 = vld [vmem:[%s7503_s1 + $0xb00] ss:$16 sps:$4 sm:$0xff]  }
  0x91   :  { %3447 = vmatprep.subr.bf16.mxu1 %v5069_v52  ;;  %v5138_v52 = vld [vmem:[%s7503_s1 + $0xce4] ss:$16 sps:$4 sm:$0xff]  }
  0x92   :  { %v6373_v35 = vcombine.high %v6357_v50, %v6357_v50 }
  0x93   :  { %3407 = vmatpush1.bf16.msra.mxu0 %v5064_v53  ;;  %v5141_v53 = vld [vmem:[%s7503_s1 + $0xee4] ss:$16 sps:$4 sm:$0xff]  }
  0x94   :  { %3448 = vmatpush1.bf16.msra.mxu1 %v5067_v54  ;;  %3408 = vmatprep.subr.bf16.mxu0 %v5072_v55  ;;  %v6369_v54 = vrot.slane %v625_v47, %v5839_v49  ;;  %v5136_v55 = vld [vmem:[%s7503_s1 + $0xce0] ss:$16 sps:$4 sm:$0xff]   ;;  %v5204_v47 = vld [vmem:[%s7503_s1 + $0xd84] ss:$16 sps:$4 sm:$0xff]  }
  0x95   :  { %3449 = vmatprep.subr.bf16.mxu1 %v5075_v56  ;;  %v5139_v56 = vld [vmem:[%s7503_s1 + $0xee0] ss:$16 sps:$4 sm:$0xff]  }
  0x97   :  { %3409 = vmatpush1.bf16.msra.mxu0 %v5070_v57  ;;  %v5144_v57 = vld [vmem:[%s7503_s1 + $0xcc4] ss:$16 sps:$4 sm:$0xff]  }
  0x98   :  { %3450 = vmatpush1.bf16.msra.mxu1 %v5073_v58  ;;  %3410 = vmatprep.subr.bf16.mxu0 %v5078_v59  ;;  %v5147_v58 = vld [vmem:[%s7503_s1 + $0xec4] ss:$16 sps:$4 sm:$0xff]   ;;  %v6389_v59 = vcombine.high %v6369_v54, %v6369_v54 }
  0x99   :  { %3451 = vmatprep.subr.bf16.mxu1 %v5081_v61  ;;  %v5142_v61 = vld [vmem:[%s7503_s1 + $0xcc0] ss:$16 sps:$4 sm:$0xff]  }
  0x9b   :  { %3411 = vmatpush1.bf16.msra.mxu0 %v5076_v62  ;;  %v5145_v62 = vld [vmem:[%s7503_s1 + $0xec0] ss:$16 sps:$4 sm:$0xff]  }
  0x9c   :  { %3452 = vmatpush1.bf16.msra.mxu1 %v5079_v63  ;;  %3412 = vmatprep.subr.bf16.mxu0 %v5084_v1  ;;  %v5150_v63 = vld [vmem:[%s7503_s1 + $0xca4] ss:$16 sps:$4 sm:$0xff]  }
  0x9d   :  { %3453 = vmatprep.subr.bf16.mxu1 %v5087_v2  ;;  %v5153_v1 = vld [vmem:[%s7503_s1 + $0xea4] ss:$16 sps:$4 sm:$0xff]   ;;  %v5148_v2 = vld [vmem:[%s7503_s1 + $0xca0] ss:$16 sps:$4 sm:$0xff]  }
  0x9f   :  { %3413 = vmatpush1.bf16.msra.mxu0 %v5082_v3  ;;  %v5151_v3 = vld [vmem:[%s7503_s1 + $0xea0] ss:$16 sps:$4 sm:$0xff]  }
  0xa0   :  { %3454 = vmatpush1.bf16.msra.mxu1 %v5085_v4  ;;  %3414 = vmatprep.subr.bf16.mxu0 %v5090_v5  ;;  %v5156_v4 = vld [vmem:[%s7503_s1 + $0xc84] ss:$16 sps:$4 sm:$0xff]  }
  0xa1   :  { %3455 = vmatprep.subr.bf16.mxu1 %v5093_v7  ;;  %v5159_v5 = vld [vmem:[%s7503_s1 + $0xe84] ss:$16 sps:$4 sm:$0xff]   ;;  %v5154_v7 = vld [vmem:[%s7503_s1 + $0xc80] ss:$16 sps:$4 sm:$0xff]  }
  0xa3   :  { %3415 = vmatpush2.bf16.msra.mxu0 %v5088_v8  ;;  %v5157_v8 = vld [vmem:[%s7503_s1 + $0xe80] ss:$16 sps:$4 sm:$0xff]  }
  0xa4   :  { %3456 = vmatpush2.bf16.msra.mxu1 %v5091_v9  ;;  %3416 = vmatprep.subr.bf16.mxu0 %v5096_v10  ;;  %v5162_v9 = vld [vmem:[%s7503_s1 + $0xc64] ss:$16 sps:$4 sm:$0xff]  }
  0xa5   :  { %3457 = vmatprep.subr.bf16.mxu1 %v5099_v11  ;;  %v5165_v10 = vld [vmem:[%s7503_s1 + $0xe64] ss:$16 sps:$4 sm:$0xff]   ;;  %v5160_v11 = vld [vmem:[%s7503_s1 + $0xc60] ss:$16 sps:$4 sm:$0xff]  }
  0xa7   :  { %3417 = vmatpush2.bf16.msra.mxu0 %v5094_v12  ;;  %v5163_v12 = vld [vmem:[%s7503_s1 + $0xe60] ss:$16 sps:$4 sm:$0xff]  }
  0xa8   :  { %3458 = vmatpush2.bf16.msra.mxu1 %v5097_v14  ;;  %3418 = vmatprep.subr.bf16.mxu0 %v5102_v15  ;;  %v5168_v14 = vld [vmem:[%s7503_s1 + $0xc44] ss:$16 sps:$4 sm:$0xff]  }
  0xa9   :  { %3459 = vmatprep.subr.bf16.mxu1 %v5105_v16  ;;  %v5171_v15 = vld [vmem:[%s7503_s1 + $0xe44] ss:$16 sps:$4 sm:$0xff]   ;;  %v5166_v16 = vld [vmem:[%s7503_s1 + $0xc40] ss:$16 sps:$4 sm:$0xff]  }
  0xab   :  { %3419 = vmatpush2.bf16.msra.mxu0 %v5100_v19  ;;  %v5169_v19 = vld [vmem:[%s7503_s1 + $0xe40] ss:$16 sps:$4 sm:$0xff]  }
  0xac   :  { %3460 = vmatpush2.bf16.msra.mxu1 %v5103_v20  ;;  %3420 = vmatprep.subr.bf16.mxu0 %v5108_v21  ;;  %v5174_v20 = vld [vmem:[%s7503_s1 + $0xc24] ss:$16 sps:$4 sm:$0xff]  }
  0xad   :  { %3461 = vmatprep.subr.bf16.mxu1 %v5111_v22  ;;  %v5177_v21 = vld [vmem:[%s7503_s1 + $0xe24] ss:$16 sps:$4 sm:$0xff]   ;;  %v5172_v22 = vld [vmem:[%s7503_s1 + $0xc20] ss:$16 sps:$4 sm:$0xff]  }
  0xaf   :  { %3421 = vmatpush2.bf16.msra.mxu0 %v5106_v24  ;;  %v5175_v24 = vld [vmem:[%s7503_s1 + $0xe20] ss:$16 sps:$4 sm:$0xff]  }
  0xb0   :  { %3462 = vmatpush2.bf16.msra.mxu1 %v5109_v25  ;;  %3422 = vmatprep.subr.bf16.mxu0 %v5114_v27  ;;  %v5180_v25 = vld [vmem:[%s7503_s1 + $0xc04] ss:$16 sps:$4 sm:$0xff]  }
  0xb1   :  { %3463 = vmatprep.subr.bf16.mxu1 %v5117_v28  ;;  %v5183_v27 = vld [vmem:[%s7503_s1 + $0xe04] ss:$16 sps:$4 sm:$0xff]   ;;  %v5178_v28 = vld [vmem:[%s7503_s1 + $0xc00] ss:$16 sps:$4 sm:$0xff]  }
  0xb3   :  { %3423 = vmatpush2.bf16.msra.mxu0 %v5112_v29  ;;  %v5181_v29 = vld [vmem:[%s7503_s1 + $0xe00] ss:$16 sps:$4 sm:$0xff]  }
  0xb4   :  { %3464 = vmatpush2.bf16.msra.mxu1 %v5115_v30  ;;  %3424 = vmatprep.subr.bf16.mxu0 %v5120_v31  ;;  %v5186_v30 = vld [vmem:[%s7503_s1 + $0xde4] ss:$16 sps:$4 sm:$0xff]  }
  0xb5   :  { %3465 = vmatprep.subr.bf16.mxu1 %v5123_v33  ;;  %v5189_v31 = vld [vmem:[%s7503_s1 + $0xfe4] ss:$16 sps:$4 sm:$0xff]   ;;  %v5184_v33 = vld [vmem:[%s7503_s1 + $0xde0] ss:$16 sps:$4 sm:$0xff]  }
  0xb7   :  { %3425 = vmatpush2.bf16.msra.mxu0 %v5118_v36  ;;  %v5192_v36 = vld [vmem:[%s7503_s1 + $0xdc4] ss:$16 sps:$4 sm:$0xff]  }
  0xb8   :  { %3466 = vmatpush2.bf16.msra.mxu1 %v5121_v37  ;;  %3426 = vmatprep.subr.bf16.mxu0 %v5126_v38  ;;  %v5195_v37 = vld [vmem:[%s7503_s1 + $0xfc4] ss:$16 sps:$4 sm:$0xff]   ;;  %v5190_v38 = vld [vmem:[%s7503_s1 + $0xdc0] ss:$16 sps:$4 sm:$0xff]  }
  0xb9   :  { %3467 = vmatprep.subr.bf16.mxu1 %v5129_v32  ;;  %v5193_v32 = vld [vmem:[%s7503_s1 + $0xfc0] ss:$16 sps:$4 sm:$0xff]  }
  0xbb   :  { %3427 = vmatpush2.bf16.msra.mxu0 %v5124_v40  ;;  %v5198_v40 = vld [vmem:[%s7503_s1 + $0xda4] ss:$16 sps:$4 sm:$0xff]  }
  0xbc   :  { %3468 = vmatpush2.bf16.msra.mxu1 %v5127_v44  ;;  %3428 = vmatprep.subr.bf16.mxu0 %v5132_v45  ;;  %v5201_v44 = vld [vmem:[%s7503_s1 + $0xfa4] ss:$16 sps:$4 sm:$0xff]   ;;  %v5196_v45 = vld [vmem:[%s7503_s1 + $0xda0] ss:$16 sps:$4 sm:$0xff]  }
  0xbd   :  { %3469 = vmatprep.subr.bf16.mxu1 %v5135_v46  ;;  %v5199_v46 = vld [vmem:[%s7503_s1 + $0xfa0] ss:$16 sps:$4 sm:$0xff]  }
  0xbf   :  { %3429 = vmatpush2.bf16.msra.mxu0 %v5130_v48  ;;  %v5207_v48 = vld [vmem:[%s7503_s1 + $0xf84] ss:$16 sps:$4 sm:$0xff]  }
  0xc0   :  { %3470 = vmatpush2.bf16.msra.mxu1 %v5133_v51  ;;  %3480 = vmatprep.subr.bf16.mxu0 %v5138_v52  ;;  %v5202_v51 = vld [vmem:[%s7503_s1 + $0xd80] ss:$16 sps:$4 sm:$0xff]  }
  0xc1   :  { %3521 = vmatprep.subr.bf16.mxu1 %v5141_v53  ;;  %v5205_v52 = vld [vmem:[%s7503_s1 + $0xf80] ss:$16 sps:$4 sm:$0xff]   ;;  %v5210_v53 = vld [vmem:[%s7503_s1 + $0xd64] ss:$16 sps:$4 sm:$0xff]  }
  0xc2   :  { %3431 = vmatmul.mubr.bf16.vlgmr.msra.gmra.mxu0 %v6357_v50 }
  0xc3   :  { %3472 = vmatmul.mubr.bf16.vlgmr.msra.gmra.mxu1 %v6373_v35  ;;  %3481 = vmatpush1.bf16.msra.mxu0 %v5136_v55  ;;  %v5213_v55 = vld [vmem:[%s7503_s1 + $0xf64] ss:$16 sps:$4 sm:$0xff]  }
  0xc4   :  { %3522 = vmatpush1.bf16.msra.mxu1 %v5139_v56  ;;  %3482 = vmatprep.subr.bf16.mxu0 %v5144_v57  ;;  %v5208_v56 = vld [vmem:[%s7503_s1 + $0xd60] ss:$16 sps:$4 sm:$0xff]  }
  0xc5   :  { %3523 = vmatprep.subr.bf16.mxu1 %v5147_v58  ;;  %3512 = vmatprep.mubr.bf16.mxu0 %v6369_v54  ;;  %v5211_v57 = vld [vmem:[%s7503_s1 + $0xf60] ss:$16 sps:$4 sm:$0xff]   ;;  %v5216_v58 = vld [vmem:[%s7503_s1 + $0xd44] ss:$16 sps:$4 sm:$0xff]  }
  0xc6   :  { %3553 = vmatprep.mubr.bf16.mxu1 %v6389_v59 }
  0xc7   :  { %3483 = vmatpush1.bf16.msra.mxu0 %v5142_v61  ;;  %v5219_v61 = vld [vmem:[%s7503_s1 + $0xf44] ss:$16 sps:$4 sm:$0xff]  }
  0xc8   :  { %3524 = vmatpush1.bf16.msra.mxu1 %v5145_v62  ;;  %3484 = vmatprep.subr.bf16.mxu0 %v5150_v63  ;;  %v5214_v62 = vld [vmem:[%s7503_s1 + $0xd40] ss:$16 sps:$4 sm:$0xff]  }
  0xc9   :  { %3525 = vmatprep.subr.bf16.mxu1 %v5153_v1  ;;  %v5217_v63 = vld [vmem:[%s7503_s1 + $0xf40] ss:$16 sps:$4 sm:$0xff]   ;;  %v5222_v1 = vld [vmem:[%s7503_s1 + $0xd24] ss:$16 sps:$4 sm:$0xff]  }
  0xcb   :  { %3485 = vmatpush1.bf16.msra.mxu0 %v5148_v2  ;;  %v5225_v2 = vld [vmem:[%s7503_s1 + $0xf24] ss:$16 sps:$4 sm:$0xff]  }
  0xcc   :  { %3526 = vmatpush1.bf16.msra.mxu1 %v5151_v3  ;;  %3486 = vmatprep.subr.bf16.mxu0 %v5156_v4  ;;  %v5220_v3 = vld [vmem:[%s7503_s1 + $0xd20] ss:$16 sps:$4 sm:$0xff]  }
  0xcd   :  { %3527 = vmatprep.subr.bf16.mxu1 %v5159_v5  ;;  %v5223_v4 = vld [vmem:[%s7503_s1 + $0xf20] ss:$16 sps:$4 sm:$0xff]   ;;  %v5228_v5 = vld [vmem:[%s7503_s1 + $0xd04] ss:$16 sps:$4 sm:$0xff]  }
  0xcf   :  { %3487 = vmatpush1.bf16.msra.mxu0 %v5154_v7  ;;  %v5231_v7 = vld [vmem:[%s7503_s1 + $0xf04] ss:$16 sps:$4 sm:$0xff]  }
  0xd0   :  { %3528 = vmatpush1.bf16.msra.mxu1 %v5157_v8  ;;  %3488 = vmatprep.subr.bf16.mxu0 %v5162_v9  ;;  %v5226_v8 = vld [vmem:[%s7503_s1 + $0xd00] ss:$16 sps:$4 sm:$0xff]  }
  0xd1   :  { %3529 = vmatprep.subr.bf16.mxu1 %v5165_v10  ;;  %v5229_v9 = vld [vmem:[%s7503_s1 + $0xf00] ss:$16 sps:$4 sm:$0xff]   ;;  %v6571_v10 = vrot.slane %v6336_v39, %v5839_v49  ;;  %v544_v49 = vsub.s32 1, %v5821_v42 }
  0xd3   :  { %3489 = vmatpush1.bf16.msra.mxu0 %v5160_v11  ;;  %v536_v11 = vld [vmem:[%s7504_s2] sm:$0xf]  ;;  %v6586_v39 = vcombine.high %v6571_v10, %v6571_v10 }
  0xd4   :  { %3530 = vmatpush1.bf16.msra.mxu1 %v5163_v12  ;;  %3490 = vmatprep.subr.bf16.mxu0 %v5168_v14  ;;  %v540_v12 = vsub.s32 0, %v5821_v42  ;;  %v5235_v14 = vld [vmem:[%s7503_s1 + $0xec] ss:$16 sps:$4 sm:$0xff]  }
  0xd5   :  { %3531 = vmatprep.subr.bf16.mxu1 %v5171_v15  ;;  %v5238_v15 = vld [vmem:[%s7503_s1 + $0x2ec] ss:$16 sps:$4 sm:$0xff]  }
  0xd7   :  { %3491 = vmatpush1.bf16.msra.mxu0 %v5166_v16  ;;  %v5233_v16 = vld [vmem:[%s7503_s1 + $0xe8] ss:$16 sps:$4 sm:$0xff]  }
  0xd8   :  { %3532 = vmatpush1.bf16.msra.mxu1 %v5169_v19  ;;  %3492 = vmatprep.subr.bf16.mxu0 %v5174_v20  ;;  %v541_v19 = vrot.slane %v536_v11, %v540_v12  ;;  %v5236_v20 = vld [vmem:[%s7503_s1 + $0x2e8] ss:$16 sps:$4 sm:$0xff]   ;;  %v5286_v12 = vld [vmem:[%s7503_s1 + $0x3ec] ss:$16 sps:$4 sm:$0xff]  }
  0xd9   :  { %3533 = vmatprep.subr.bf16.mxu1 %v5177_v21  ;;  %v5241_v21 = vld [vmem:[%s7503_s1 + $0xcc] ss:$16 sps:$4 sm:$0xff]  }
  0xdb   :  { %3493 = vmatpush1.bf16.msra.mxu0 %v5172_v22  ;;  %v5244_v22 = vld [vmem:[%s7503_s1 + $0x2cc] ss:$16 sps:$4 sm:$0xff]  }
  0xdc   :  { %3534 = vmatpush1.bf16.msra.mxu1 %v5175_v24  ;;  %3494 = vmatprep.subr.bf16.mxu0 %v5180_v25  ;;  %v545_v24 = vrot.slane %v536_v11, %v544_v49  ;;  %v5283_v11 = vld [vmem:[%s7503_s1 + $0x1ec] ss:$16 sps:$4 sm:$0xff]  }
  0xdd   :  { %3535 = vmatprep.subr.bf16.mxu1 %v5183_v27  ;;  %v5289_v49 = vld [vmem:[%s7503_s1 + $0x1cc] ss:$16 sps:$4 sm:$0xff]  }
  0xdf   :  { %3495 = vmatpush1.bf16.msra.mxu0 %v5178_v28  ;;  %v5239_v28 = vld [vmem:[%s7503_s1 + $0xc8] ss:$16 sps:$4 sm:$0xff]  }
  0xe0   :  { %3536 = vmatpush1.bf16.msra.mxu1 %v5181_v29  ;;  %3496 = vmatprep.subr.bf16.mxu0 %v5186_v30  ;;  %v5242_v29 = vld [vmem:[%s7503_s1 + $0x2c8] ss:$16 sps:$4 sm:$0xff]  }
  0xe1   :  { %3537 = vmatprep.subr.bf16.mxu1 %v5189_v31 }
  0xe3   :  { %3497 = vmatpush2.bf16.msra.mxu0 %v5184_v33 }
  0xe4   :  { %3538 = vmatpush2.bf16.msra.mxu1 %v5187_v34  ;;  %3498 = vmatprep.subr.bf16.mxu0 %v5192_v36  ;;  %v5247_v34 = vld [vmem:[%s7503_s1 + $0xac] ss:$16 sps:$4 sm:$0xff]  }
  0xe5   :  { %3539 = vmatprep.subr.bf16.mxu1 %v5195_v37  ;;  %v5250_v36 = vld [vmem:[%s7503_s1 + $0x2ac] ss:$16 sps:$4 sm:$0xff]  }
  0xe7   :  { %3499 = vmatpush2.bf16.msra.mxu0 %v5190_v38 }
  0xe8   :  { %3540 = vmatpush2.bf16.msra.mxu1 %v5193_v32  ;;  %3500 = vmatprep.subr.bf16.mxu0 %v5198_v40  ;;  %v5245_v32 = vld [vmem:[%s7503_s1 + $0xa8] ss:$16 sps:$4 sm:$0xff]  }
  0xe9   :  { %3541 = vmatprep.subr.bf16.mxu1 %v5201_v44  ;;  %v5248_v40 = vld [vmem:[%s7503_s1 + $0x2a8] ss:$16 sps:$4 sm:$0xff]  }
  0xeb   :  { %3501 = vmatpush2.bf16.msra.mxu0 %v5196_v45 }
  0xec   :  { %3542 = vmatpush2.bf16.msra.mxu1 %v5199_v46  ;;  %3502 = vmatprep.subr.bf16.mxu0 %v5204_v47 }
  0xed   :  { %3543 = vmatprep.subr.bf16.mxu1 %v5207_v48 }
  0xef   :  { %3503 = vmatpush2.bf16.msra.mxu0 %v5202_v51  ;;  %v5253_v51 = vld [vmem:[%s7503_s1 + $0x8c] ss:$16 sps:$4 sm:$0xff]  }
  0xf0   :  { %3544 = vmatpush2.bf16.msra.mxu1 %v5205_v52  ;;  %3504 = vmatprep.subr.bf16.mxu0 %v5210_v53  ;;  %v5254_v52 = vld [vmem:[%s7503_s1 + $0x288] ss:$16 sps:$4 sm:$0xff]   ;;  %v5259_v53 = vld [vmem:[%s7503_s1 + $0x6c] ss:$16 sps:$4 sm:$0xff]  }
  0xf1   :  { %3545 = vmatprep.subr.bf16.mxu1 %v5213_v55  ;;  %v5262_v55 = vld [vmem:[%s7503_s1 + $0x26c] ss:$16 sps:$4 sm:$0xff]  }
  0xf3   :  { %3505 = vmatpush2.bf16.msra.mxu0 %v5208_v56  ;;  %v5257_v56 = vld [vmem:[%s7503_s1 + $0x68] ss:$16 sps:$4 sm:$0xff]  }
  0xf4   :  { %3546 = vmatpush2.bf16.msra.mxu1 %v5211_v57  ;;  %3506 = vmatprep.subr.bf16.mxu0 %v5216_v58  ;;  %v5260_v57 = vld [vmem:[%s7503_s1 + $0x268] ss:$16 sps:$4 sm:$0xff]   ;;  %v5265_v58 = vld [vmem:[%s7503_s1 + $0x4c] ss:$16 sps:$4 sm:$0xff]  }
  0xf5   :  { %3547 = vmatprep.subr.bf16.mxu1 %v5219_v61  ;;  %v5268_v61 = vld [vmem:[%s7503_s1 + $0x24c] ss:$16 sps:$4 sm:$0xff]  }
  0xf7   :  { %3507 = vmatpush2.bf16.msra.mxu0 %v5214_v62  ;;  %v5263_v62 = vld [vmem:[%s7503_s1 + $0x48] ss:$16 sps:$4 sm:$0xff]  }
  0xf8   :  { %3548 = vmatpush2.bf16.msra.mxu1 %v5217_v63  ;;  %3508 = vmatprep.subr.bf16.mxu0 %v5222_v1  ;;  %v5266_v63 = vld [vmem:[%s7503_s1 + $0x248] ss:$16 sps:$4 sm:$0xff]   ;;  %v5271_v1 = vld [vmem:[%s7503_s1 + $0x2c] ss:$16 sps:$4 sm:$0xff]  }
  0xf9   :  { %3549 = vmatprep.subr.bf16.mxu1 %v5225_v2  ;;  %v5274_v2 = vld [vmem:[%s7503_s1 + $0x22c] ss:$16 sps:$4 sm:$0xff]  }
  0xfb   :  { %3509 = vmatpush2.bf16.msra.mxu0 %v5220_v3  ;;  %v5269_v3 = vld [vmem:[%s7503_s1 + $0x28] ss:$16 sps:$4 sm:$0xff]  }
  0xfc   :  { %3550 = vmatpush2.bf16.msra.mxu1 %v5223_v4  ;;  %3510 = vmatprep.subr.bf16.mxu0 %v5228_v5  ;;  %v5272_v4 = vld [vmem:[%s7503_s1 + $0x228] ss:$16 sps:$4 sm:$0xff]   ;;  %v5277_v5 = vld [vmem:[%s7503_s1 + $0xc] ss:$16 sps:$4 sm:$0xff]  }
  0xfd   :  { %3551 = vmatprep.subr.bf16.mxu1 %v5231_v7  ;;  %v5280_v7 = vld [vmem:[%s7503_s1 + $0x20c] ss:$16 sps:$4 sm:$0xff]  }
  0xff   :  { %3511 = vmatpush2.bf16.msra.mxu0 %v5226_v8  ;;  %v5275_v8 = vld [vmem:[%s7503_s1 + $0x8] ss:$16 sps:$4 sm:$0xff]  }
 0x100   :  { %3552 = vmatpush2.bf16.msra.mxu1 %v5229_v9  ;;  %3562 = vmatprep.subr.bf16.mxu0 %v5235_v14  ;;  %v5278_v9 = vld [vmem:[%s7503_s1 + $0x208] ss:$16 sps:$4 sm:$0xff]  }
 0x101   :  { %3603 = vmatprep.subr.bf16.mxu1 %v5238_v15  ;;  %v5281_v14 = vld [vmem:[%s7503_s1 + $0x1e8] ss:$16 sps:$4 sm:$0xff]  }
 0x102   :  { %v3268_v25 = vpop.f32.mrf.mxu0  ;;  %3513 = vmatmul.mubr.bf16.vlgmr.msra.gmra.mxu0 %v6571_v10  ;;  %v5284_v15 = vld [vmem:[%s7503_s1 + $0x3e8] ss:$16 sps:$4 sm:$0xff]  }
 0x103   :  { %v3309_v27 = vpop.f32.mrf.mxu1  ;;  %3554 = vmatmul.mubr.bf16.vlgmr.msra.gmra.mxu1 %v6586_v39  ;;  %v3269_v30 = vadd.f32 %v3268_v25, %v541_v19  ;;  %3563 = vmatpush1.bf16.msra.mxu0 %v5233_v16  ;;  %v5292_v16 = vld [vmem:[%s7503_s1 + $0x3cc] ss:$16 sps:$4 sm:$0xff]   ;;  %v5287_v19 = vld [vmem:[%s7503_s1 + $0x1c8] ss:$16 sps:$4 sm:$0xff]  }
 0x104   :  { %3604 = vmatpush1.bf16.msra.mxu1 %v5236_v20  ;;  %v3270_v31 = vpop.f32.mrf.mxu0  ;;  %3564 = vmatprep.subr.bf16.mxu0 %v5241_v21  ;;  %v5290_v20 = vld [vmem:[%s7503_s1 + $0x3c8] ss:$16 sps:$4 sm:$0xff]   ;;  %v5295_v21 = vld [vmem:[%s7503_s1 + $0x1ac] ss:$16 sps:$4 sm:$0xff]  }
 0x105   :  { %v3311_v33 = vpop.f32.mrf.mxu1  ;;  %3605 = vmatprep.subr.bf16.mxu1 %v5244_v22  ;;  %v6614_v37 = vadd.f32 %v3309_v27, %v3269_v30  ;;  %v3271_v38 = vadd.f32 %v3270_v31, %v545_v24  ;;  %3594 = vmatprep.mubr.bf16.mxu0 %v5867_v60  ;;  %v5256_v60 = vld [vmem:[%s7503_s1 + $0x28c] ss:$16 sps:$4 sm:$0xff]   ;;  %v5293_v24 = vld [vmem:[%s7503_s1 + $0x1a8] ss:$16 sps:$4 sm:$0xff]  }
 0x106   :  { %3635 = vmatprep.mubr.bf16.mxu1 %v5880_v0  ;;  %v3272_v44 = vpop.f32.mrf.mxu0  ;;  %v5251_v0 = vld [vmem:[%s7503_s1 + $0x88] ss:$16 sps:$4 sm:$0xff]   ;;  %v5298_v22 = vld [vmem:[%s7503_s1 + $0x3ac] ss:$16 sps:$4 sm:$0xff]  }
 0x107   :  { %v3313_v45 = vpop.f32.mrf.mxu1  ;;  %v6624_v46 = vadd.f32 %v3311_v33, %v3271_v38  ;;  %3565 = vmatpush1.bf16.msra.mxu0 %v5239_v28  ;;  %v5296_v25 = vld [vmem:[%s7503_s1 + $0x3a8] ss:$16 sps:$4 sm:$0xff]   ;;  %v5301_v27 = vld [vmem:[%s7503_s1 + $0x18c] ss:$16 sps:$4 sm:$0xff]  }
 0x108   :  { %3606 = vmatpush1.bf16.msra.mxu1 %v5242_v29  ;;  %v3273_v47 = vpop.f32.mrf.mxu0  ;;  %3566 = vmatprep.subr.bf16.mxu0 %v5247_v34  ;;  %v5304_v28 = vld [vmem:[%s7503_s1 + $0x38c] ss:$16 sps:$4 sm:$0xff]   ;;  %v5299_v29 = vld [vmem:[%s7503_s1 + $0x188] ss:$16 sps:$4 sm:$0xff]  }
 0x109   :  { %v3314_v48 = vpop.f32.mrf.mxu1  ;;  %3607 = vmatprep.subr.bf16.mxu1 %v5250_v36  ;;  %v5302_v30 = vld [vmem:[%s7503_s1 + $0x388] ss:$16 sps:$4 sm:$0xff]   ;;  %v5307_v31 = vld [vmem:[%s7503_s1 + $0x16c] ss:$16 sps:$4 sm:$0xff]  }
 0x10a   :  { %v5310_v33 = vld [vmem:[%s7503_s1 + $0x36c] ss:$16 sps:$4 sm:$0xff]   ;;  %v5305_v34 = vld [vmem:[%s7503_s1 + $0x168] ss:$16 sps:$4 sm:$0xff]  }
 0x10b   :  { %3567 = vmatpush1.bf16.msra.mxu0 %v5245_v32  ;;  %v5308_v36 = vld [vmem:[%s7503_s1 + $0x368] ss:$16 sps:$4 sm:$0xff]   ;;  %v5313_v38 = vld [vmem:[%s7503_s1 + $0x14c] ss:$16 sps:$4 sm:$0xff]  }
 0x10c   :  { %3608 = vmatpush1.bf16.msra.mxu1 %v5248_v40  ;;  %3568 = vmatprep.subr.bf16.mxu0 %v5253_v51  ;;  %v5316_v32 = vld [vmem:[%s7503_s1 + $0x34c] ss:$16 sps:$4 sm:$0xff]   ;;  %v5311_v40 = vld [vmem:[%s7503_s1 + $0x148] ss:$16 sps:$4 sm:$0xff]  }
 0x10d   :  { %3609 = vmatprep.subr.bf16.mxu1 %v5256_v60  ;;  %v5314_v44 = vld [vmem:[%s7503_s1 + $0x348] ss:$16 sps:$4 sm:$0xff]   ;;  %v5319_v45 = vld [vmem:[%s7503_s1 + $0x12c] ss:$16 sps:$4 sm:$0xff]  }
 0x10e   :  { %v5322_v47 = vld [vmem:[%s7503_s1 + $0x32c] ss:$16 sps:$4 sm:$0xff]   ;;  %v5317_v48 = vld [vmem:[%s7503_s1 + $0x128] ss:$16 sps:$4 sm:$0xff]  }
 0x10f   :  { %3569 = vmatpush1.bf16.msra.mxu0 %v5251_v0  ;;  %v5320_v51 = vld [vmem:[%s7503_s1 + $0x328] ss:$16 sps:$4 sm:$0xff]   ;;  %v5325_v60 = vld [vmem:[%s7503_s1 + $0x10c] ss:$16 sps:$4 sm:$0xff]  }
 0x110   :  { %3610 = vmatpush1.bf16.msra.mxu1 %v5254_v52  ;;  %3570 = vmatprep.subr.bf16.mxu0 %v5259_v53  ;;  %v5328_v0 = vld [vmem:[%s7503_s1 + $0x30c] ss:$16 sps:$4 sm:$0xff]   ;;  %v5323_v52 = vld [vmem:[%s7503_s1 + $0x108] ss:$16 sps:$4 sm:$0xff]  }
 0x111   :  { %3611 = vmatprep.subr.bf16.mxu1 %v5262_v55  ;;  %v5326_v53 = vld [vmem:[%s7503_s1 + $0x308] ss:$16 sps:$4 sm:$0xff]   ;;  %v5331_v55 = vld [vmem:[%s7503_s1 + $0x4ec] ss:$16 sps:$4 sm:$0xff]  }
 0x113   :  { %3571 = vmatpush1.bf16.msra.mxu0 %v5257_v56  ;;  %v5334_v56 = vld [vmem:[%s7503_s1 + $0x6ec] ss:$16 sps:$4 sm:$0xff]  }
 0x114   :  { %3612 = vmatpush1.bf16.msra.mxu1 %v5260_v57  ;;  %3572 = vmatprep.subr.bf16.mxu0 %v5265_v58  ;;  %v5329_v57 = vld [vmem:[%s7503_s1 + $0x4e8] ss:$16 sps:$4 sm:$0xff]  }
 0x115   :  { %3613 = vmatprep.subr.bf16.mxu1 %v5268_v61  ;;  %v5332_v58 = vld [vmem:[%s7503_s1 + $0x6e8] ss:$16 sps:$4 sm:$0xff]   ;;  %v5337_v61 = vld [vmem:[%s7503_s1 + $0x4cc] ss:$16 sps:$4 sm:$0xff]  }
 0x117   :  { %3573 = vmatpush1.bf16.msra.mxu0 %v5263_v62  ;;  %v5340_v62 = vld [vmem:[%s7503_s1 + $0x6cc] ss:$16 sps:$4 sm:$0xff]  }
 0x118   :  { %3614 = vmatpush1.bf16.msra.mxu1 %v5266_v63  ;;  %3574 = vmatprep.subr.bf16.mxu0 %v5271_v1  ;;  %v5335_v63 = vld [vmem:[%s7503_s1 + $0x4c8] ss:$16 sps:$4 sm:$0xff]  }
 0x119   :  { %3615 = vmatprep.subr.bf16.mxu1 %v5274_v2  ;;  %v5338_v1 = vld [vmem:[%s7503_s1 + $0x6c8] ss:$16 sps:$4 sm:$0xff]  }
 0x11b   :  { %3575 = vmatpush1.bf16.msra.mxu0 %v5269_v3 }
 0x11c   :  { %3616 = vmatpush1.bf16.msra.mxu1 %v5272_v4  ;;  %3576 = vmatprep.subr.bf16.mxu0 %v5277_v5 }
 0x11d   :  { %3617 = vmatprep.subr.bf16.mxu1 %v5280_v7 }
 0x11f   :  { %3577 = vmatpush1.bf16.msra.mxu0 %v5275_v8  ;;  %v5343_v8 = vld [vmem:[%s7503_s1 + $0x4ac] ss:$16 sps:$4 sm:$0xff]  }
 0x120   :  { %3618 = vmatpush1.bf16.msra.mxu1 %v5278_v9  ;;  %3578 = vmatprep.subr.bf16.mxu0 %v5283_v11  ;;  %v5346_v9 = vld [vmem:[%s7503_s1 + $0x6ac] ss:$16 sps:$4 sm:$0xff]  }
 0x121   :  { %3619 = vmatprep.subr.bf16.mxu1 %v5286_v12 }
 0x123   :  { %3579 = vmatpush2.bf16.msra.mxu0 %v5281_v14 }
 0x124   :  { %3620 = vmatpush2.bf16.msra.mxu1 %v5284_v15  ;;  %3580 = vmatprep.subr.bf16.mxu0 %v5289_v49 }
 0x125   :  { %3621 = vmatprep.subr.bf16.mxu1 %v5292_v16  ;;  %v5349_v16 = vld [vmem:[%s7503_s1 + $0x48c] ss:$16 sps:$4 sm:$0xff]  }
 0x127   :  { %3581 = vmatpush2.bf16.msra.mxu0 %v5287_v19  ;;  %v5350_v19 = vld [vmem:[%s7503_s1 + $0x688] ss:$16 sps:$4 sm:$0xff]  }
 0x128   :  { %3622 = vmatpush2.bf16.msra.mxu1 %v5290_v20  ;;  %3582 = vmatprep.subr.bf16.mxu0 %v5295_v21  ;;  %v5355_v20 = vld [vmem:[%s7503_s1 + $0x46c] ss:$16 sps:$4 sm:$0xff]  }
 0x129   :  { %3623 = vmatprep.subr.bf16.mxu1 %v5298_v22  ;;  %v5358_v21 = vld [vmem:[%s7503_s1 + $0x66c] ss:$16 sps:$4 sm:$0xff]   ;;  %v5353_v22 = vld [vmem:[%s7503_s1 + $0x468] ss:$16 sps:$4 sm:$0xff]  }
 0x12b   :  { %3583 = vmatpush2.bf16.msra.mxu0 %v5293_v24  ;;  %v5356_v24 = vld [vmem:[%s7503_s1 + $0x668] ss:$16 sps:$4 sm:$0xff]  }
 0x12c   :  { %3624 = vmatpush2.bf16.msra.mxu1 %v5296_v25  ;;  %3584 = vmatprep.subr.bf16.mxu0 %v5301_v27  ;;  %v5361_v25 = vld [vmem:[%s7503_s1 + $0x44c] ss:$16 sps:$4 sm:$0xff]  }
 0x12d   :  { %3625 = vmatprep.subr.bf16.mxu1 %v5304_v28  ;;  %v5364_v27 = vld [vmem:[%s7503_s1 + $0x64c] ss:$16 sps:$4 sm:$0xff]   ;;  %v5359_v28 = vld [vmem:[%s7503_s1 + $0x448] ss:$16 sps:$4 sm:$0xff]  }
 0x12f   :  { %3585 = vmatpush2.bf16.msra.mxu0 %v5299_v29  ;;  %v5362_v29 = vld [vmem:[%s7503_s1 + $0x648] ss:$16 sps:$4 sm:$0xff]  }
 0x130   :  { %3626 = vmatpush2.bf16.msra.mxu1 %v5302_v30  ;;  %3586 = vmatprep.subr.bf16.mxu0 %v5307_v31  ;;  %v5367_v30 = vld [vmem:[%s7503_s1 + $0x42c] ss:$16 sps:$4 sm:$0xff]  }
 0x131   :  { %3627 = vmatprep.subr.bf16.mxu1 %v5310_v33  ;;  %v5370_v31 = vld [vmem:[%s7503_s1 + $0x62c] ss:$16 sps:$4 sm:$0xff]   ;;  %v5365_v33 = vld [vmem:[%s7503_s1 + $0x428] ss:$16 sps:$4 sm:$0xff]  }
 0x133   :  { %3587 = vmatpush2.bf16.msra.mxu0 %v5305_v34  ;;  %v5368_v34 = vld [vmem:[%s7503_s1 + $0x628] ss:$16 sps:$4 sm:$0xff]  }
 0x134   :  { %3628 = vmatpush2.bf16.msra.mxu1 %v5308_v36  ;;  %3588 = vmatprep.subr.bf16.mxu0 %v5313_v38  ;;  %v5373_v36 = vld [vmem:[%s7503_s1 + $0x40c] ss:$16 sps:$4 sm:$0xff]  }
 0x135   :  { %3629 = vmatprep.subr.bf16.mxu1 %v5316_v32  ;;  %v5376_v38 = vld [vmem:[%s7503_s1 + $0x60c] ss:$16 sps:$4 sm:$0xff]   ;;  %v5371_v32 = vld [vmem:[%s7503_s1 + $0x408] ss:$16 sps:$4 sm:$0xff]  }
 0x137   :  { %3589 = vmatpush2.bf16.msra.mxu0 %v5311_v40  ;;  %v5374_v40 = vld [vmem:[%s7503_s1 + $0x608] ss:$16 sps:$4 sm:$0xff]  }
 0x138   :  { %3630 = vmatpush2.bf16.msra.mxu1 %v5314_v44  ;;  %3590 = vmatprep.subr.bf16.mxu0 %v5319_v45  ;;  %v5379_v44 = vld [vmem:[%s7503_s1 + $0x5ec] ss:$16 sps:$4 sm:$0xff]  }
 0x139   :  { %3631 = vmatprep.subr.bf16.mxu1 %v5322_v47  ;;  %v5382_v45 = vld [vmem:[%s7503_s1 + $0x7ec] ss:$16 sps:$4 sm:$0xff]   ;;  %v5377_v47 = vld [vmem:[%s7503_s1 + $0x5e8] ss:$16 sps:$4 sm:$0xff]  }
 0x13b   :  { %3591 = vmatpush2.bf16.msra.mxu0 %v5317_v48  ;;  %v5380_v48 = vld [vmem:[%s7503_s1 + $0x7e8] ss:$16 sps:$4 sm:$0xff]  }
 0x13c   :  { %3632 = vmatpush2.bf16.msra.mxu1 %v5320_v51  ;;  %3592 = vmatprep.subr.bf16.mxu0 %v5325_v60  ;;  %v5385_v51 = vld [vmem:[%s7503_s1 + $0x5cc] ss:$16 sps:$4 sm:$0xff]  }
 0x13d   :  { %3633 = vmatprep.subr.bf16.mxu1 %v5328_v0  ;;  %v5388_v60 = vld [vmem:[%s7503_s1 + $0x7cc] ss:$16 sps:$4 sm:$0xff]  }
 0x13f   :  { %3593 = vmatpush2.bf16.msra.mxu0 %v5323_v52 }
 0x140   :  { %3634 = vmatpush2.bf16.msra.mxu1 %v5326_v53  ;;  %3644 = vmatprep.subr.bf16.mxu0 %v5331_v55 }
 0x141   :  { %3685 = vmatprep.subr.bf16.mxu1 %v5334_v56 }
 0x142   :  { %v3350_v2 = vpop.f32.mrf.mxu0  ;;  %3595 = vmatmul.mubr.bf16.vlgmr.msra.gmra.mxu0 %v5917_v13 }
 0x143   :  { %v3391_v3 = vpop.f32.mrf.mxu1  ;;  %3636 = vmatmul.mubr.bf16.vlgmr.msra.gmra.mxu1 %v5933_v18  ;;  %v3351_v4 = vadd.f32 %v3350_v2, %v6614_v37  ;;  %3645 = vmatpush1.bf16.msra.mxu0 %v5329_v57  ;;  %v5341_v18 = vld [vmem:[%s7503_s1 + $0x4a8] ss:$16 sps:$4 sm:$0xff]  }
 0x144   :  { %3686 = vmatpush1.bf16.msra.mxu1 %v5332_v58  ;;  %v3352_v5 = vpop.f32.mrf.mxu0  ;;  %3646 = vmatprep.subr.bf16.mxu0 %v5337_v61  ;;  %v5344_v37 = vld [vmem:[%s7503_s1 + $0x6a8] ss:$16 sps:$4 sm:$0xff]  }
 0x145   :  { %v3393_v7 = vpop.f32.mrf.mxu1  ;;  %3687 = vmatprep.subr.bf16.mxu1 %v5340_v62  ;;  %v6815_v11 = vadd.f32 %v3391_v3, %v3351_v4  ;;  %v3353_v13 = vadd.f32 %v3352_v5, %v6624_v46  ;;  %3676 = vmatprep.mubr.bf16.mxu0 %v5929_v17  ;;  %v5352_v17 = vld [vmem:[%s7503_s1 + $0x68c] ss:$16 sps:$4 sm:$0xff]  }
 0x146   :  { %3717 = vmatprep.mubr.bf16.mxu1 %v5949_v23  ;;  %v3354_v12 = vpop.f32.mrf.mxu0  ;;  %v5347_v23 = vld [vmem:[%s7503_s1 + $0x488] ss:$16 sps:$4 sm:$0xff]  }
 0x147   :  { %v3395_v14 = vpop.f32.mrf.mxu1  ;;  %v6826_v15 = vadd.f32 %v3393_v7, %v3353_v13  ;;  %3647 = vmatpush1.bf16.msra.mxu0 %v5335_v63 }
 0x148   :  { %3688 = vmatpush1.bf16.msra.mxu1 %v5338_v1  ;;  %v3355_v49 = vpop.f32.mrf.mxu0  ;;  %3648 = vmatprep.subr.bf16.mxu0 %v5343_v8 }
 0x149   :  { %v3396_v46 = vpop.f32.mrf.mxu1  ;;  %3689 = vmatprep.subr.bf16.mxu1 %v5346_v9 }
 0x14b   :  { %3649 = vmatpush1.bf16.msra.mxu0 %v5341_v18 }
 0x14c   :  { %3690 = vmatpush1.bf16.msra.mxu1 %v5344_v37  ;;  %3650 = vmatprep.subr.bf16.mxu0 %v5349_v16 }
 0x14d   :  { %3691 = vmatprep.subr.bf16.mxu1 %v5352_v17 }
 0x14f   :  { %3651 = vmatpush1.bf16.msra.mxu0 %v5347_v23 }
 0x150   :  { %3692 = vmatpush1.bf16.msra.mxu1 %v5350_v19  ;;  %3652 = vmatprep.subr.bf16.mxu0 %v5355_v20 }
 0x151   :  { %3693 = vmatprep.subr.bf16.mxu1 %v5358_v21 }
 0x153   :  { %3653 = vmatpush1.bf16.msra.mxu0 %v5353_v22 }
 0x154   :  { %3694 = vmatpush1.bf16.msra.mxu1 %v5356_v24  ;;  %3654 = vmatprep.subr.bf16.mxu0 %v5361_v25 }
 0x155   :  { %3695 = vmatprep.subr.bf16.mxu1 %v5364_v27 }
 0x157   :  { %3655 = vmatpush1.bf16.msra.mxu0 %v5359_v28 }
 0x158   :  { %3696 = vmatpush1.bf16.msra.mxu1 %v5362_v29  ;;  %3656 = vmatprep.subr.bf16.mxu0 %v5367_v30 }
 0x159   :  { %3697 = vmatprep.subr.bf16.mxu1 %v5370_v31 }
 0x15b   :  { %3657 = vmatpush1.bf16.msra.mxu0 %v5365_v33 }
 0x15c   :  { %3698 = vmatpush1.bf16.msra.mxu1 %v5368_v34  ;;  %3658 = vmatprep.subr.bf16.mxu0 %v5373_v36 }
 0x15d   :  { %3699 = vmatprep.subr.bf16.mxu1 %v5376_v38 }
 0x15f   :  { %3659 = vmatpush1.bf16.msra.mxu0 %v5371_v32 }
 0x160   :  { %3700 = vmatpush1.bf16.msra.mxu1 %v5374_v40  ;;  %3660 = vmatprep.subr.bf16.mxu0 %v5379_v44 }
 0x161   :  { %3701 = vmatprep.subr.bf16.mxu1 %v5382_v45 }
 0x162   :  { %10 = vsyncpa [#allocation3], 0  ;;  %v5383_v0 = vld [vmem:[%s7503_s1 + $0x5c8] ss:$16 sps:$4 sm:$0xff]   ;;  %v5391_v53 = vld [vmem:[%s7503_s1 + $0x5ac] ss:$16 sps:$4 sm:$0xff]  }
 0x163   :  { %3661 = vmatpush2.bf16.msra.mxu0 %v5377_v47  ;;  %v5386_v52 = vld [vmem:[%s7503_s1 + $0x7c8] ss:$16 sps:$4 sm:$0xff]   ;;  %v5394_v55 = vld [vmem:[%s7503_s1 + $0x7ac] ss:$16 sps:$4 sm:$0xff]   ;;  %s5673_s27 = smov [#allocation2]  }
 0x164   :  { %3702 = vmatpush2.bf16.msra.mxu1 %v5380_v48  ;;  %3662 = vmatprep.subr.bf16.mxu0 %v5385_v51  ;;  %v5389_v56 = vld [vmem:[%s7503_s1 + $0x5a8] ss:$16 sps:$4 sm:$0xff]   ;;  %v5397_v58 = vld [vmem:[%s7503_s1 + $0x58c] ss:$16 sps:$4 sm:$0xff]   ;;  %s4248_s28 = sshll.u32 %s5673_s27, 4  ;;  %s4249_s28 = int_to_ptr.vmem [resolvable:$true] %s4248_s28 }
 0x165   :  { %3703 = vmatprep.subr.bf16.mxu1 %v5388_v60  ;;  %v5392_v57 = vld [vmem:[%s7503_s1 + $0x7a8] ss:$16 sps:$4 sm:$0xff]   ;;  %v5400_v61 = vld [vmem:[%s7503_s1 + $0x78c] ss:$16 sps:$4 sm:$0xff]   ;;  %s5650_s29 = scalar_lea.vmem %s4249_s28, 32  ;;  %p5655_p1 = scmp.lt.s32.totalorder %s4249_s28, %s4249_s28 }
 0x166   :  { %v5395_v62 = vld [vmem:[%s7503_s1 + $0x588] ss:$16 sps:$4 sm:$0xff]   ;;  %v5403_v1 = vld [vmem:[%s7503_s1 + $0x56c] ss:$16 sps:$4 sm:$0xff]   ;;  %p5651_p0 = scmp.ne.s32.totalorder %s4249_s28, %s5650_s29  ;;  %p5656_p2 = scmp.lt.s32.totalorder %s5650_s29, %s5650_s29 }
 0x167   :  { %3663 = vmatpush2.bf16.msra.mxu0 %v5383_v0  ;;  %v5398_v63 = vld [vmem:[%s7503_s1 + $0x788] ss:$16 sps:$4 sm:$0xff]   ;;  %v5406_v2 = vld [vmem:[%s7503_s1 + $0x76c] ss:$16 sps:$4 sm:$0xff]  }
 0x168   :  { %3704 = vmatpush2.bf16.msra.mxu1 %v5386_v52  ;;  %3664 = vmatprep.subr.bf16.mxu0 %v5391_v53  ;;  %v5401_v3 = vld [vmem:[%s7503_s1 + $0x568] ss:$16 sps:$4 sm:$0xff]   ;;  %v5409_v5 = vld [vmem:[%s7503_s1 + $0x54c] ss:$16 sps:$4 sm:$0xff]   ;;  %p5657_p3 = por %p5656_p2, %p5655_p1 }
 0x169   :  { %3705 = vmatprep.subr.bf16.mxu1 %v5394_v55  ;;  %v5404_v4 = vld [vmem:[%s7503_s1 + $0x768] ss:$16 sps:$4 sm:$0xff]   ;;  %v5412_v7 = vld [vmem:[%s7503_s1 + $0x74c] ss:$16 sps:$4 sm:$0xff]  }
 0x16a   :  { %v5407_v8 = vld [vmem:[%s7503_s1 + $0x548] ss:$16 sps:$4 sm:$0xff]   ;;  %v5415_v13 = vld [vmem:[%s7503_s1 + $0x52c] ss:$16 sps:$4 sm:$0xff]   ;;  %p5658_p4 = pnand %p5657_p3, %p5651_p0 }
 0x16b   :  { %3665 = vmatpush2.bf16.msra.mxu0 %v5389_v56  ;;  %v5410_v9 = vld [vmem:[%s7503_s1 + $0x748] ss:$16 sps:$4 sm:$0xff]   ;;  %v5418_v18 = vld [vmem:[%s7503_s1 + $0x72c] ss:$16 sps:$4 sm:$0xff]  }
 0x16c   :  { %3706 = vmatpush2.bf16.msra.mxu1 %v5392_v57  ;;  %3666 = vmatprep.subr.bf16.mxu0 %v5397_v58  ;;  %v5413_v37 = vld [vmem:[%s7503_s1 + $0x528] ss:$16 sps:$4 sm:$0xff]   ;;  %v5421_v14 = vld [vmem:[%s7503_s1 + $0x50c] ss:$16 sps:$4 sm:$0xff]  }
 0x16d   :  { %3707 = vmatprep.subr.bf16.mxu1 %v5400_v61  ;;  %v5416_v12 = vld [vmem:[%s7503_s1 + $0x728] ss:$16 sps:$4 sm:$0xff]   ;;  %v5424_v49 = vld [vmem:[%s7503_s1 + $0x70c] ss:$16 sps:$4 sm:$0xff]  }
 0x16e   :  { %v5419_v46 = vld [vmem:[%s7503_s1 + $0x508] ss:$16 sps:$4 sm:$0xff]   ;;  %v5427_v17 = vld [vmem:[%s7503_s1 + $0x8ec] ss:$16 sps:$4 sm:$0xff]  }
 0x16f   :  { %3667 = vmatpush2.bf16.msra.mxu0 %v5395_v62  ;;  %v5422_v16 = vld [vmem:[%s7503_s1 + $0x708] ss:$16 sps:$4 sm:$0xff]   ;;  %v5430_v23 = vld [vmem:[%s7503_s1 + $0xaec] ss:$16 sps:$4 sm:$0xff]  }
 0x170   :  { %3708 = vmatpush2.bf16.msra.mxu1 %v5398_v63  ;;  %3668 = vmatprep.subr.bf16.mxu0 %v5403_v1  ;;  %v5425_v19 = vld [vmem:[%s7503_s1 + $0x8e8] ss:$16 sps:$4 sm:$0xff]   ;;  %v5433_v21 = vld [vmem:[%s7503_s1 + $0x8cc] ss:$16 sps:$4 sm:$0xff]  }
 0x171   :  { %3709 = vmatprep.subr.bf16.mxu1 %v5406_v2  ;;  %v5428_v20 = vld [vmem:[%s7503_s1 + $0xae8] ss:$16 sps:$4 sm:$0xff]   ;;  %v5436_v22 = vld [vmem:[%s7503_s1 + $0xacc] ss:$16 sps:$4 sm:$0xff]  }
 0x172   :  { %v5431_v28 = vld [vmem:[%s7503_s1 + $0x8c8] ss:$16 sps:$4 sm:$0xff]   ;;  %v5451_v48 = vld [vmem:[%s7503_s1 + $0x86c] ss:$16 sps:$4 sm:$0xff]  }
 0x173   :  { %3669 = vmatpush2.bf16.msra.mxu0 %v5401_v3  ;;  %v5434_v29 = vld [vmem:[%s7503_s1 + $0xac8] ss:$16 sps:$4 sm:$0xff]   ;;  %v5454_v51 = vld [vmem:[%s7503_s1 + $0xa6c] ss:$16 sps:$4 sm:$0xff]  }
 0x174   :  { %3710 = vmatpush2.bf16.msra.mxu1 %v5404_v4  ;;  %3670 = vmatprep.subr.bf16.mxu0 %v5409_v5  ;;  %v5437_v32 = vld [vmem:[%s7503_s1 + $0x8a8] ss:$16 sps:$4 sm:$0xff]   ;;  %v5457_v52 = vld [vmem:[%s7503_s1 + $0x84c] ss:$16 sps:$4 sm:$0xff]  }
 0x175   :  { %3711 = vmatprep.subr.bf16.mxu1 %v5412_v7  ;;  %v5440_v40 = vld [vmem:[%s7503_s1 + $0xaa8] ss:$16 sps:$4 sm:$0xff]   ;;  %v5460_v53 = vld [vmem:[%s7503_s1 + $0xa4c] ss:$16 sps:$4 sm:$0xff]  }
 0x176   :  { %v5443_v45 = vld [vmem:[%s7503_s1 + $0x888] ss:$16 sps:$4 sm:$0xff]   ;;  %v5463_v57 = vld [vmem:[%s7503_s1 + $0x82c] ss:$16 sps:$4 sm:$0xff]  }
 0x177   :  { %3671 = vmatpush2.bf16.msra.mxu0 %v5407_v8  ;;  %v5446_v47 = vld [vmem:[%s7503_s1 + $0xa88] ss:$16 sps:$4 sm:$0xff]   ;;  %v5466_v58 = vld [vmem:[%s7503_s1 + $0xa2c] ss:$16 sps:$4 sm:$0xff]  }
 0x178   :  { %3712 = vmatpush2.bf16.msra.mxu1 %v5410_v9  ;;  %3672 = vmatprep.subr.bf16.mxu0 %v5415_v13  ;;  %v5449_v60 = vld [vmem:[%s7503_s1 + $0x868] ss:$16 sps:$4 sm:$0xff]   ;;  %v5469_v63 = vld [vmem:[%s7503_s1 + $0x80c] ss:$16 sps:$4 sm:$0xff]  }
 0x179   :  { %3713 = vmatprep.subr.bf16.mxu1 %v5418_v18  ;;  %v5452_v0 = vld [vmem:[%s7503_s1 + $0xa68] ss:$16 sps:$4 sm:$0xff]   ;;  %v5472_v1 = vld [vmem:[%s7503_s1 + $0xa0c] ss:$16 sps:$4 sm:$0xff]  }
 0x17a   :  { %v5455_v55 = vld [vmem:[%s7503_s1 + $0x848] ss:$16 sps:$4 sm:$0xff]   ;;  %v5475_v4 = vld [vmem:[%s7503_s1 + $0x9ec] ss:$16 sps:$4 sm:$0xff]  }
 0x17b   :  { %3673 = vmatpush2.bf16.msra.mxu0 %v5413_v37  ;;  %v5458_v56 = vld [vmem:[%s7503_s1 + $0xa48] ss:$16 sps:$4 sm:$0xff]   ;;  %v5478_v5 = vld [vmem:[%s7503_s1 + $0xbec] ss:$16 sps:$4 sm:$0xff]  }
 0x17c   :  { %3714 = vmatpush2.bf16.msra.mxu1 %v5416_v12  ;;  %3674 = vmatprep.subr.bf16.mxu0 %v5421_v14  ;;  %v5461_v61 = vld [vmem:[%s7503_s1 + $0x828] ss:$16 sps:$4 sm:$0xff]   ;;  %v5481_v9 = vld [vmem:[%s7503_s1 + $0x9cc] ss:$16 sps:$4 sm:$0xff]  }
 0x17d   :  { %3715 = vmatprep.subr.bf16.mxu1 %v5424_v49  ;;  %v5464_v62 = vld [vmem:[%s7503_s1 + $0xa28] ss:$16 sps:$4 sm:$0xff]   ;;  %v5484_v13 = vld [vmem:[%s7503_s1 + $0xbcc] ss:$16 sps:$4 sm:$0xff]  }
 0x17e   :  { %v5467_v2 = vld [vmem:[%s7503_s1 + $0x808] ss:$16 sps:$4 sm:$0xff]   ;;  %v5487_v12 = vld [vmem:[%s7503_s1 + $0x9ac] ss:$16 sps:$4 sm:$0xff]  }
 0x17f   :  { %3675 = vmatpush2.bf16.msra.mxu0 %v5419_v46  ;;  %v5470_v3 = vld [vmem:[%s7503_s1 + $0xa08] ss:$16 sps:$4 sm:$0xff]   ;;  %v5490_v14 = vld [vmem:[%s7503_s1 + $0xbac] ss:$16 sps:$4 sm:$0xff]  }
 0x180   :  { %3716 = vmatpush2.bf16.msra.mxu1 %v5422_v16  ;;  %3726 = vmatprep.subr.bf16.mxu0 %v5427_v17  ;;  %v5473_v7 = vld [vmem:[%s7503_s1 + $0x9e8] ss:$16 sps:$4 sm:$0xff]   ;;  %v5493_v16 = vld [vmem:[%s7503_s1 + $0x98c] ss:$16 sps:$4 sm:$0xff]  }
 0x181   :  { %3767 = vmatprep.subr.bf16.mxu1 %v5430_v23  ;;  %v5476_v8 = vld [vmem:[%s7503_s1 + $0xbe8] ss:$16 sps:$4 sm:$0xff]   ;;  %v5496_v17 = vld [vmem:[%s7503_s1 + $0xb8c] ss:$16 sps:$4 sm:$0xff]  }
 0x182   :  { %v3432_v24 = vpop.f32.mrf.mxu0  ;;  %3677 = vmatmul.mubr.bf16.vlgmr.msra.gmra.mxu0 %v6128_v26  ;;  %v5439_v26 = vld [vmem:[%s7503_s1 + $0x8ac] ss:$16 sps:$4 sm:$0xff]   ;;  %v5479_v18 = vld [vmem:[%s7503_s1 + $0x9c8] ss:$16 sps:$4 sm:$0xff]  }
 0x183   :  { %v3473_v25 = vpop.f32.mrf.mxu1  ;;  %3718 = vmatmul.mubr.bf16.vlgmr.msra.gmra.mxu1 %v6141_v6  ;;  %v3433_v27 = vadd.f32 %v3432_v24, %v6815_v11  ;;  %3727 = vmatpush1.bf16.msra.mxu0 %v5425_v19  ;;  %v5442_v6 = vld [vmem:[%s7503_s1 + $0xaac] ss:$16 sps:$4 sm:$0xff]   ;;  %v5482_v37 = vld [vmem:[%s7503_s1 + $0xbc8] ss:$16 sps:$4 sm:$0xff]  }
 0x184   :  { %3768 = vmatpush1.bf16.msra.mxu1 %v5428_v20  ;;  %v3434_v30 = vpop.f32.mrf.mxu0  ;;  %3728 = vmatprep.subr.bf16.mxu0 %v5433_v21  ;;  %v5485_v49 = vld [vmem:[%s7503_s1 + $0x9a8] ss:$16 sps:$4 sm:$0xff]   ;;  %v5499_v20 = vld [vmem:[%s7503_s1 + $0x96c] ss:$16 sps:$4 sm:$0xff]  }
 0x185   :  { %v3475_v31 = vpop.f32.mrf.mxu1  ;;  %3769 = vmatprep.subr.bf16.mxu1 %v5436_v22  ;;  %v7017_v11 = vadd.f32 %v3473_v25, %v3433_v27  ;;  %v3435_v33 = vadd.f32 %v3434_v30, %v6826_v15  ;;  %3758 = vmatprep.mubr.bf16.mxu0 %v6181_v41  ;;  %v5445_v41 = vld [vmem:[%s7503_s1 + $0x88c] ss:$16 sps:$4 sm:$0xff]   ;;  %v5488_v46 = vld [vmem:[%s7503_s1 + $0xba8] ss:$16 sps:$4 sm:$0xff]  }
 0x186   :  { %3799 = vmatprep.mubr.bf16.mxu1 %v6186_v43  ;;  %v3436_v34 = vpop.f32.mrf.mxu0  ;;  %v5448_v43 = vld [vmem:[%s7503_s1 + $0xa8c] ss:$16 sps:$4 sm:$0xff]   ;;  %v5491_v23 = vld [vmem:[%s7503_s1 + $0x988] ss:$16 sps:$4 sm:$0xff]  }
 0x187   :  { %v3477_v36 = vpop.f32.mrf.mxu1  ;;  %v7022_v38 = vadd.f32 %v3475_v31, %v3435_v33  ;;  %3729 = vmatpush1.bf16.msra.mxu0 %v5431_v28  ;;  %v5494_v19 = vld [vmem:[%s7503_s1 + $0xb88] ss:$16 sps:$4 sm:$0xff]   ;;  %v5502_v21 = vld [vmem:[%s7503_s1 + $0xb6c] ss:$16 sps:$4 sm:$0xff]  }
 0x188   :  { %3770 = vmatpush1.bf16.msra.mxu1 %v5434_v29  ;;  %v3437_v44 = vpop.f32.mrf.mxu0  ;;  %3730 = vmatprep.subr.bf16.mxu0 %v5439_v26  ;;  %v5497_v22 = vld [vmem:[%s7503_s1 + $0x968] ss:$16 sps:$4 sm:$0xff]   ;;  %v5505_v25 = vld [vmem:[%s7503_s1 + $0x94c] ss:$16 sps:$4 sm:$0xff]  }
 0x189   :  { %v3478_v15 = vpop.f32.mrf.mxu1  ;;  %3771 = vmatprep.subr.bf16.mxu1 %v5442_v6  ;;  %v5500_v24 = vld [vmem:[%s7503_s1 + $0xb68] ss:$16 sps:$4 sm:$0xff]   ;;  %v5508_v27 = vld [vmem:[%s7503_s1 + $0xb4c] ss:$16 sps:$4 sm:$0xff]  }
 0x18a   :  { %v5503_v28 = vld [vmem:[%s7503_s1 + $0x948] ss:$16 sps:$4 sm:$0xff]   ;;  %v5511_v30 = vld [vmem:[%s7503_s1 + $0x92c] ss:$16 sps:$4 sm:$0xff]  }
 0x18b   :  { %3731 = vmatpush1.bf16.msra.mxu0 %v5437_v32  ;;  %v5506_v29 = vld [vmem:[%s7503_s1 + $0xb48] ss:$16 sps:$4 sm:$0xff]   ;;  %v5514_v31 = vld [vmem:[%s7503_s1 + $0xb2c] ss:$16 sps:$4 sm:$0xff]  }
 0x18c   :  { %3772 = vmatpush1.bf16.msra.mxu1 %v5440_v40  ;;  %3732 = vmatprep.subr.bf16.mxu0 %v5445_v41  ;;  %v5509_v26 = vld [vmem:[%s7503_s1 + $0x928] ss:$16 sps:$4 sm:$0xff]   ;;  %v5517_v33 = vld [vmem:[%s7503_s1 + $0x90c] ss:$16 sps:$4 sm:$0xff]  }
 0x18d   :  { %3773 = vmatprep.subr.bf16.mxu1 %v5448_v43  ;;  %v5512_v6 = vld [vmem:[%s7503_s1 + $0xb28] ss:$16 sps:$4 sm:$0xff]   ;;  %v5520_v34 = vld [vmem:[%s7503_s1 + $0xb0c] ss:$16 sps:$4 sm:$0xff]  }
 0x18e   :  { %v5515_v36 = vld [vmem:[%s7503_s1 + $0x908] ss:$16 sps:$4 sm:$0xff]   ;;  %v5523_v40 = vld [vmem:[%s7503_s1 + $0xcec] ss:$16 sps:$4 sm:$0xff]  }
 0x18f   :  { %3733 = vmatpush1.bf16.msra.mxu0 %v5443_v45  ;;  %v5518_v32 = vld [vmem:[%s7503_s1 + $0xb08] ss:$16 sps:$4 sm:$0xff]   ;;  %v5526_v44 = vld [vmem:[%s7503_s1 + $0xeec] ss:$16 sps:$4 sm:$0xff]  }
 0x190   :  { %3774 = vmatpush1.bf16.msra.mxu1 %v5446_v47  ;;  %3734 = vmatprep.subr.bf16.mxu0 %v5451_v48  ;;  %v5521_v15 = vld [vmem:[%s7503_s1 + $0xce8] ss:$16 sps:$4 sm:$0xff]   ;;  %v5529_v43 = vld [vmem:[%s7503_s1 + $0xccc] ss:$16 sps:$4 sm:$0xff]  }
 0x191   :  { %3775 = vmatprep.subr.bf16.mxu1 %v5454_v51  ;;  %v5524_v41 = vld [vmem:[%s7503_s1 + $0xee8] ss:$16 sps:$4 sm:$0xff]   ;;  %v5532_v45 = vld [vmem:[%s7503_s1 + $0xecc] ss:$16 sps:$4 sm:$0xff]  }
 0x193   :  { %3735 = vmatpush1.bf16.msra.mxu0 %v5449_v60  ;;  %v5527_v60 = vld [vmem:[%s7503_s1 + $0xcc8] ss:$16 sps:$4 sm:$0xff]  }
 0x194   :  { %3776 = vmatpush1.bf16.msra.mxu1 %v5452_v0  ;;  %3736 = vmatprep.subr.bf16.mxu0 %v5457_v52  ;;  %v5530_v0 = vld [vmem:[%s7503_s1 + $0xec8] ss:$16 sps:$4 sm:$0xff]  }
 0x195   :  { %3777 = vmatprep.subr.bf16.mxu1 %v5460_v53 }
 0x197   :  { %3737 = vmatpush1.bf16.msra.mxu0 %v5455_v55 }
 0x198   :  { %3778 = vmatpush1.bf16.msra.mxu1 %v5458_v56  ;;  %3738 = vmatprep.subr.bf16.mxu0 %v5463_v57  ;;  %v5533_v57 = vld [vmem:[%s7503_s1 + $0xca8] ss:$16 sps:$4 sm:$0xff]  }
 0x199   :  { %3779 = vmatprep.subr.bf16.mxu1 %v5466_v58  ;;  %v5536_v58 = vld [vmem:[%s7503_s1 + $0xea8] ss:$16 sps:$4 sm:$0xff]  }
 0x19b   :  { %3739 = vmatpush1.bf16.msra.mxu0 %v5461_v61 }
 0x19c   :  { %3780 = vmatpush1.bf16.msra.mxu1 %v5464_v62  ;;  %3740 = vmatprep.subr.bf16.mxu0 %v5469_v63  ;;  %v5539_v63 = vld [vmem:[%s7503_s1 + $0xc88] ss:$16 sps:$4 sm:$0xff]  }
 0x19d   :  { %3781 = vmatprep.subr.bf16.mxu1 %v5472_v1  ;;  %v5542_v1 = vld [vmem:[%s7503_s1 + $0xe88] ss:$16 sps:$4 sm:$0xff]  }
 0x19f   :  { %3741 = vmatpush1.bf16.msra.mxu0 %v5467_v2  ;;  %v5547_v2 = vld [vmem:[%s7503_s1 + $0xc6c] ss:$16 sps:$4 sm:$0xff]  }
 0x1a0   :  { %3782 = vmatpush1.bf16.msra.mxu1 %v5470_v3  ;;  %3742 = vmatprep.subr.bf16.mxu0 %v5475_v4  ;;  %v5550_v3 = vld [vmem:[%s7503_s1 + $0xe6c] ss:$16 sps:$4 sm:$0xff]   ;;  %v5545_v4 = vld [vmem:[%s7503_s1 + $0xc68] ss:$16 sps:$4 sm:$0xff]  }
 0x1a1   :  { %3783 = vmatprep.subr.bf16.mxu1 %v5478_v5  ;;  %v5548_v5 = vld [vmem:[%s7503_s1 + $0xe68] ss:$16 sps:$4 sm:$0xff]  }
 0x1a3   :  { %3743 = vmatpush2.bf16.msra.mxu0 %v5473_v7  ;;  %v5553_v7 = vld [vmem:[%s7503_s1 + $0xc4c] ss:$16 sps:$4 sm:$0xff]  }
 0x1a4   :  { %3784 = vmatpush2.bf16.msra.mxu1 %v5476_v8  ;;  %3744 = vmatprep.subr.bf16.mxu0 %v5481_v9  ;;  %v5556_v8 = vld [vmem:[%s7503_s1 + $0xe4c] ss:$16 sps:$4 sm:$0xff]   ;;  %v5551_v9 = vld [vmem:[%s7503_s1 + $0xc48] ss:$16 sps:$4 sm:$0xff]  }
 0x1a5   :  { %3785 = vmatprep.subr.bf16.mxu1 %v5484_v13  ;;  %v5554_v13 = vld [vmem:[%s7503_s1 + $0xe48] ss:$16 sps:$4 sm:$0xff]  }
 0x1a7   :  { %3745 = vmatpush2.bf16.msra.mxu0 %v5479_v18  ;;  %v5559_v18 = vld [vmem:[%s7503_s1 + $0xc2c] ss:$16 sps:$4 sm:$0xff]  }
 0x1a8   :  { %3786 = vmatpush2.bf16.msra.mxu1 %v5482_v37  ;;  %3746 = vmatprep.subr.bf16.mxu0 %v5487_v12  ;;  %v5562_v37 = vld [vmem:[%s7503_s1 + $0xe2c] ss:$16 sps:$4 sm:$0xff]   ;;  %v5557_v12 = vld [vmem:[%s7503_s1 + $0xc28] ss:$16 sps:$4 sm:$0xff]  }
 0x1a9   :  { %3787 = vmatprep.subr.bf16.mxu1 %v5490_v14  ;;  %v5560_v14 = vld [vmem:[%s7503_s1 + $0xe28] ss:$16 sps:$4 sm:$0xff]  }
 0x1ab   :  { %3747 = vmatpush2.bf16.msra.mxu0 %v5485_v49  ;;  %v5565_v49 = vld [vmem:[%s7503_s1 + $0xc0c] ss:$16 sps:$4 sm:$0xff]  }
 0x1ac   :  { %3788 = vmatpush2.bf16.msra.mxu1 %v5488_v46  ;;  %3748 = vmatprep.subr.bf16.mxu0 %v5493_v16  ;;  %v5568_v46 = vld [vmem:[%s7503_s1 + $0xe0c] ss:$16 sps:$4 sm:$0xff]   ;;  %v5563_v16 = vld [vmem:[%s7503_s1 + $0xc08] ss:$16 sps:$4 sm:$0xff]  }
 0x1ad   :  { %3789 = vmatprep.subr.bf16.mxu1 %v5496_v17  ;;  %v5566_v17 = vld [vmem:[%s7503_s1 + $0xe08] ss:$16 sps:$4 sm:$0xff]  }
 0x1af   :  { %3749 = vmatpush2.bf16.msra.mxu0 %v5491_v23  ;;  %v5571_v23 = vld [vmem:[%s7503_s1 + $0xdec] ss:$16 sps:$4 sm:$0xff]  }
 0x1b0   :  { %3790 = vmatpush2.bf16.msra.mxu1 %v5494_v19  ;;  %3750 = vmatprep.subr.bf16.mxu0 %v5499_v20  ;;  %v5574_v19 = vld [vmem:[%s7503_s1 + $0xfec] ss:$16 sps:$4 sm:$0xff]   ;;  %v5569_v20 = vld [vmem:[%s7503_s1 + $0xde8] ss:$16 sps:$4 sm:$0xff]  }
 0x1b1   :  { %3791 = vmatprep.subr.bf16.mxu1 %v5502_v21  ;;  %v5572_v21 = vld [vmem:[%s7503_s1 + $0xfe8] ss:$16 sps:$4 sm:$0xff]  }
 0x1b3   :  { %3751 = vmatpush2.bf16.msra.mxu0 %v5497_v22  ;;  %v5577_v22 = vld [vmem:[%s7503_s1 + $0xdcc] ss:$16 sps:$4 sm:$0xff]  }
 0x1b4   :  { %3792 = vmatpush2.bf16.msra.mxu1 %v5500_v24  ;;  %3752 = vmatprep.subr.bf16.mxu0 %v5505_v25  ;;  %v5580_v24 = vld [vmem:[%s7503_s1 + $0xfcc] ss:$16 sps:$4 sm:$0xff]   ;;  %v5575_v25 = vld [vmem:[%s7503_s1 + $0xdc8] ss:$16 sps:$4 sm:$0xff]  }
 0x1b5   :  { %3793 = vmatprep.subr.bf16.mxu1 %v5508_v27  ;;  %v5578_v27 = vld [vmem:[%s7503_s1 + $0xfc8] ss:$16 sps:$4 sm:$0xff]  }
 0x1b7   :  { %3753 = vmatpush2.bf16.msra.mxu0 %v5503_v28  ;;  %v5583_v28 = vld [vmem:[%s7503_s1 + $0xdac] ss:$16 sps:$4 sm:$0xff]  }
 0x1b8   :  { %3794 = vmatpush2.bf16.msra.mxu1 %v5506_v29  ;;  %3754 = vmatprep.subr.bf16.mxu0 %v5511_v30  ;;  %v5586_v29 = vld [vmem:[%s7503_s1 + $0xfac] ss:$16 sps:$4 sm:$0xff]   ;;  %v5581_v30 = vld [vmem:[%s7503_s1 + $0xda8] ss:$16 sps:$4 sm:$0xff]  }
 0x1b9   :  { %3795 = vmatprep.subr.bf16.mxu1 %v5514_v31  ;;  %v5584_v31 = vld [vmem:[%s7503_s1 + $0xfa8] ss:$16 sps:$4 sm:$0xff]  }
 0x1bb   :  { %3755 = vmatpush2.bf16.msra.mxu0 %v5509_v26  ;;  %v5589_v26 = vld [vmem:[%s7503_s1 + $0xd8c] ss:$16 sps:$4 sm:$0xff]  }
 0x1bc   :  { %3796 = vmatpush2.bf16.msra.mxu1 %v5512_v6  ;;  %3756 = vmatprep.subr.bf16.mxu0 %v5517_v33  ;;  %v5592_v6 = vld [vmem:[%s7503_s1 + $0xf8c] ss:$16 sps:$4 sm:$0xff]   ;;  %v5587_v33 = vld [vmem:[%s7503_s1 + $0xd88] ss:$16 sps:$4 sm:$0xff]  }
 0x1bd   :  { %3797 = vmatprep.subr.bf16.mxu1 %v5520_v34  ;;  %v5590_v34 = vld [vmem:[%s7503_s1 + $0xf88] ss:$16 sps:$4 sm:$0xff]  }
 0x1bf   :  { %3757 = vmatpush2.bf16.msra.mxu0 %v5515_v36  ;;  %v5595_v36 = vld [vmem:[%s7503_s1 + $0xd6c] ss:$16 sps:$4 sm:$0xff]  }
 0x1c0   :  { %3798 = vmatpush2.bf16.msra.mxu1 %v5518_v32  ;;  %3808 = vmatprep.subr.bf16.mxu0 %v5523_v40  ;;  %v5598_v32 = vld [vmem:[%s7503_s1 + $0xf6c] ss:$16 sps:$4 sm:$0xff]   ;;  %v5593_v40 = vld [vmem:[%s7503_s1 + $0xd68] ss:$16 sps:$4 sm:$0xff]  }
 0x1c1   :  { %3849 = vmatprep.subr.bf16.mxu1 %v5526_v44  ;;  %v5596_v44 = vld [vmem:[%s7503_s1 + $0xf68] ss:$16 sps:$4 sm:$0xff]  }
 0x1c2   :  { %v3514_v47 = vpop.f32.mrf.mxu0  ;;  %3759 = vmatmul.mubr.bf16.vlgmr.msra.gmra.mxu0 %v6357_v50  ;;  %v5535_v50 = vld [vmem:[%s7503_s1 + $0xcac] ss:$16 sps:$4 sm:$0xff]  }
 0x1c3   :  { %v3555_v48 = vpop.f32.mrf.mxu1  ;;  %3800 = vmatmul.mubr.bf16.vlgmr.msra.gmra.mxu1 %v6373_v35  ;;  %v3515_v51 = vadd.f32 %v3514_v47, %v7017_v11  ;;  %3809 = vmatpush1.bf16.msra.mxu0 %v5521_v15  ;;  %v5538_v35 = vld [vmem:[%s7503_s1 + $0xeac] ss:$16 sps:$4 sm:$0xff]  }
 0x1c4   :  { %3850 = vmatpush1.bf16.msra.mxu1 %v5524_v41  ;;  %v7213_v52 = vpop.f32.mrf.mxu0  ;;  %3810 = vmatprep.subr.bf16.mxu0 %v5529_v43  ;;  %v5601_v15 = vld [vmem:[%s7503_s1 + $0xd4c] ss:$16 sps:$4 sm:$0xff]   ;;  %v5599_v43 = vld [vmem:[%s7503_s1 + $0xd48] ss:$16 sps:$4 sm:$0xff]  }
 0x1c5   :  { %v7215_v53 = vpop.f32.mrf.mxu1  ;;  %3851 = vmatprep.subr.bf16.mxu1 %v5532_v45  ;;  %v7223_v11 = vadd.f32 %v3555_v48, %v3515_v51  ;;  %3840 = vmatprep.mubr.bf16.mxu0 %v6369_v54  ;;  %v5541_v54 = vld [vmem:[%s7503_s1 + $0xc8c] ss:$16 sps:$4 sm:$0xff]   ;;  %v5602_v45 = vld [vmem:[%s7503_s1 + $0xf48] ss:$16 sps:$4 sm:$0xff]   ;;  %v3517_v51 = vadd.f32 %v7213_v52, %v7022_v38 }
 0x1c6   :  { %3881 = vmatprep.mubr.bf16.mxu1 %v6389_v59  ;;  %v3518_v55 = vpop.f32.mrf.mxu0  ;;  %v5544_v59 = vld [vmem:[%s7503_s1 + $0xe8c] ss:$16 sps:$4 sm:$0xff]  }
 0x1c7   :  { %v3559_v56 = vpop.f32.mrf.mxu1  ;;  %3811 = vmatpush1.bf16.msra.mxu0 %v5527_v60  ;;  %v5604_v41 = vld [vmem:[%s7503_s1 + $0xf4c] ss:$16 sps:$4 sm:$0xff]   ;;  %v5605_v60 = vld [vmem:[%s7503_s1 + $0xd28] ss:$16 sps:$4 sm:$0xff]   ;;  %v3558_v52 = vadd.f32 %v7215_v53, %v3517_v51  ;;  %v552_v53 = vsub.s32 3, %v5821_v42 }
 0x1c8   :  { %3852 = vmatpush1.bf16.msra.mxu1 %v5530_v0  ;;  %v3519_v61 = vpop.f32.mrf.mxu0  ;;  %3812 = vmatprep.subr.bf16.mxu0 %v5535_v50  ;;  %v5607_v47 = vld [vmem:[%s7503_s1 + $0xd2c] ss:$16 sps:$4 sm:$0xff]   ;;  %v5608_v0 = vld [vmem:[%s7503_s1 + $0xf28] ss:$16 sps:$4 sm:$0xff]   ;;  %v548_v56 = vsub.s32 2, %v5821_v42 }
 0x1c9   :  { %v3560_v62 = vpop.f32.mrf.mxu1  ;;  %3853 = vmatprep.subr.bf16.mxu1 %v5538_v35  ;;  %v5610_v48 = vld [vmem:[%s7503_s1 + $0xf2c] ss:$16 sps:$4 sm:$0xff]   ;;  %v5611_v35 = vld [vmem:[%s7503_s1 + $0xd08] ss:$16 sps:$4 sm:$0xff]   ;;  %v5649_v61 = vld [vmem:[%s7504_s2] sm:$0xf] }
 0x1ca   :  { %v5613_v50 = vld [vmem:[%s7503_s1 + $0xd0c] ss:$16 sps:$4 sm:$0xff]   ;;  %v5614_v55 = vld [vmem:[%s7503_s1 + $0xf08] ss:$16 sps:$4 sm:$0xff]   ;;  %v549_v62 = vrot.slane %v5649_v61, %v548_v56  ;;  %v5648_v56 = vld [vmem:[%s7505_s3 + $0x80] sm:$0xff]  }
 0x1cb   :  { %3813 = vmatpush1.bf16.msra.mxu0 %v5533_v57  ;;  %v5616_v38 = vld [vmem:[%s7503_s1 + $0xf0c] ss:$16 sps:$4 sm:$0xff]  }
 0x1cc   :  { %3854 = vmatpush1.bf16.msra.mxu1 %v5536_v58  ;;  %3814 = vmatprep.subr.bf16.mxu0 %v5541_v54  ;;  %v5617_v57 = vld [vmem:[%s7505_s3 + $0x78] sm:$0xff]   ;;  %v3891_v58 = vmax.f32 %v3558_v52, 0.0 }
 0x1cd   :  { %3855 = vmatprep.subr.bf16.mxu1 %v5544_v59  ;;  %v5618_v54 = vld [vmem:[%s7505_s3 + $0x38] sm:$0xff]   ;;  %v5619_v59 = vld [vmem:[%s7505_s3 + $0x70] sm:$0xff]  }
 0x1cf   :  { %3815 = vmatpush1.bf16.msra.mxu0 %v5539_v63  ;;  %v3895_v63 = vpack.c.bf16 %v3891_v58, %v3891_v58 }
 0x1d0   :  { %3856 = vmatpush1.bf16.msra.mxu1 %v5542_v1  ;;  %3816 = vmatprep.subr.bf16.mxu0 %v5547_v2  ;;  %v553_v1 = vrot.slane %v5649_v61, %v552_v53 }
 0x1d1   :  { %3857 = vmatprep.subr.bf16.mxu1 %v5550_v3 }
 0x1d3   :  { %3817 = vmatpush1.bf16.msra.mxu0 %v5545_v4  ;;  %v5620_v4 = vld [vmem:[%s7505_s3 + $0x30] sm:$0xff]  }
 0x1d4   :  { %3858 = vmatpush1.bf16.msra.mxu1 %v5548_v5  ;;  %3818 = vmatprep.subr.bf16.mxu0 %v5553_v7 }
 0x1d5   :  { %3859 = vmatprep.subr.bf16.mxu1 %v5556_v8  ;;  %v5621_v8 = vld [vmem:[%s7505_s3 + $0x68] sm:$0xff]  }
 0x1d7   :  { %3819 = vmatpush1.bf16.msra.mxu0 %v5551_v9 }
 0x1d8   :  { %3860 = vmatpush1.bf16.msra.mxu1 %v5554_v13  ;;  %3820 = vmatprep.subr.bf16.mxu0 %v5559_v18 }
 0x1d9   :  { %3861 = vmatprep.subr.bf16.mxu1 %v5562_v37 }
 0x1db   :  { %3821 = vmatpush1.bf16.msra.mxu0 %v5557_v12  ;;  %v5623_v12 = vld [vmem:[%s7505_s3 + $0x60] sm:$0xff]  }
 0x1dc   :  { %3862 = vmatpush1.bf16.msra.mxu1 %v5560_v14  ;;  %3822 = vmatprep.subr.bf16.mxu0 %v5565_v49 }
 0x1dd   :  { %3863 = vmatprep.subr.bf16.mxu1 %v5568_v46  ;;  %v5633_v46 = vld [vmem:[%s7505_s3 + $0xf8] sm:$0xff]  }
 0x1df   :  { %3823 = vmatpush1.bf16.msra.mxu0 %v5563_v16  ;;  %v5634_v16 = vld [vmem:[%s7505_s3 + $0xb8] sm:$0xff]  }
 0x1e0   :  { %3864 = vmatpush1.bf16.msra.mxu1 %v5566_v17  ;;  %3824 = vmatprep.subr.bf16.mxu0 %v5571_v23  ;;  %v5635_v17 = vld [vmem:[%s7505_s3 + $0xf0] sm:$0xff]   ;;  %v5624_v23 = vld [vmem:[%s7505_s3 + $0x20] sm:$0xff]  }
 0x1e1   :  { %3865 = vmatprep.subr.bf16.mxu1 %v5574_v19  ;;  %v5636_v19 = vld [vmem:[%s7505_s3 + $0xb0] sm:$0xff]  }
 0x1e3   :  { %3825 = vmatpush2.bf16.msra.mxu0 %v5569_v20  ;;  %v5625_v20 = vld [vmem:[%s7505_s3 + $0x58] sm:$0xff]  }
 0x1e4   :  { %3866 = vmatpush2.bf16.msra.mxu1 %v5572_v21  ;;  %3826 = vmatprep.subr.bf16.mxu0 %v5577_v22  ;;  %v5637_v21 = vld [vmem:[%s7505_s3 + $0xe8] sm:$0xff]   ;;  %v5626_v22 = vld [vmem:[%s7505_s3 + $0x18] sm:$0xff]  }
 0x1e5   :  { %3867 = vmatprep.subr.bf16.mxu1 %v5580_v24  ;;  %v5638_v24 = vld [vmem:[%s7505_s3 + $0xa8] sm:$0xff]  }
 0x1e7   :  { %3827 = vmatpush2.bf16.msra.mxu0 %v5575_v25  ;;  %v5627_v25 = vld [vmem:[%s7505_s3 + $0x50] sm:$0xff]  }
 0x1e8   :  { %3868 = vmatpush2.bf16.msra.mxu1 %v5578_v27  ;;  %3828 = vmatprep.subr.bf16.mxu0 %v5583_v28  ;;  %v5639_v27 = vld [vmem:[%s7505_s3 + $0xe0] sm:$0xff]   ;;  %v5628_v28 = vld [vmem:[%s7505_s3 + $0x10] sm:$0xff]  }
 0x1e9   :  { %3869 = vmatprep.subr.bf16.mxu1 %v5586_v29  ;;  %v5640_v29 = vld [vmem:[%s7505_s3 + $0xa0] sm:$0xff]  }
 0x1eb   :  { %3829 = vmatpush2.bf16.msra.mxu0 %v5581_v30  ;;  %v5629_v30 = vld [vmem:[%s7505_s3 + $0x48] sm:$0xff]  }
 0x1ec   :  { %3870 = vmatpush2.bf16.msra.mxu1 %v5584_v31  ;;  %3830 = vmatprep.subr.bf16.mxu0 %v5589_v26  ;;  %v5641_v31 = vld [vmem:[%s7505_s3 + $0xd8] sm:$0xff]   ;;  %v5630_v26 = vld [vmem:[%s7505_s3 + $0x8] sm:$0xff]  }
 0x1ed   :  { %3871 = vmatprep.subr.bf16.mxu1 %v5592_v6  ;;  %v5642_v6 = vld [vmem:[%s7505_s3 + $0x98] sm:$0xff]  }
 0x1ef   :  { %3831 = vmatpush2.bf16.msra.mxu0 %v5587_v33  ;;  %v5631_v33 = vld [vmem:[%s7505_s3 + $0x40] sm:$0xff]  }
 0x1f0   :  { %3872 = vmatpush2.bf16.msra.mxu1 %v5590_v34  ;;  %3832 = vmatprep.subr.bf16.mxu0 %v5595_v36  ;;  %v5632_v34 = vld [vmem:[%s7505_s3] sm:$0xff]   ;;  %v3890_v36 = vmax.f32 %v7223_v11, 0.0  ;;  %v5645_v11 = vld [vmem:[%s7505_s3 + $0xc8] sm:$0xff]  }
 0x1f1   :  { %3873 = vmatprep.subr.bf16.mxu1 %v5598_v32 }
 0x1f2   :  { %v3894_v32 = vpack.c.bf16 %v3890_v36, %v3890_v36 }
 0x1f3   :  { %3833 = vmatpush2.bf16.msra.mxu0 %v5593_v40  ;;  %v5643_v40 = vld [vmem:[%s7505_s3 + $0xd0] sm:$0xff]  }
 0x1f4   :  { %3874 = vmatpush2.bf16.msra.mxu1 %v5596_v44  ;;  %3834 = vmatprep.subr.bf16.mxu0 %v5601_v15  ;;  %v5644_v44 = vld [vmem:[%s7505_s3 + $0x90] sm:$0xff]  }
 0x1f5   :  { %3875 = vmatprep.subr.bf16.mxu1 %v5604_v41 }
 0x1f7   :  { %3835 = vmatpush2.bf16.msra.mxu0 %v5599_v43 }
 0x1f8   :  { %3876 = vmatpush2.bf16.msra.mxu1 %v5602_v45  ;;  %3836 = vmatprep.subr.bf16.mxu0 %v5607_v47 }
 0x1f9   :  { %3877 = vmatprep.subr.bf16.mxu1 %v5610_v48 }
 0x1fb   :  { %3837 = vmatpush2.bf16.msra.mxu0 %v5605_v60  ;;  %v5646_v60 = vld [vmem:[%s7505_s3 + $0x88] sm:$0xff]  }
 0x1fc   :  { %3878 = vmatpush2.bf16.msra.mxu1 %v5608_v0  ;;  %3838 = vmatprep.subr.bf16.mxu0 %v5613_v50 }
 0x1fd   :  { %3879 = vmatprep.subr.bf16.mxu1 %v5616_v38 }
 0x1ff   :  { %3839 = vmatpush2.bf16.msra.mxu0 %v5611_v35 }
 0x200   :  { %3880 = vmatpush2.bf16.msra.mxu1 %v5614_v55  ;;  %4801 = vmatprep.subr.bf16.mxu0 %v5617_v57  ;;  %v5647_v55 = vld [vmem:[%s7505_s3 + $0xc0] sm:$0xff]  }
 0x201   :  { %4823 = vmatprep.subr.bf16.mxu1 %v5633_v46 }
 0x202   :  { %v3596_v2 = vpop.f32.mrf.mxu0  ;;  %3841 = vmatmul.mubr.bf16.vlgmr.msra.gmra.mxu0 %v6571_v10 }
 0x203   :  { %v3637_v42 = vpop.f32.mrf.mxu1  ;;  %3882 = vmatmul.mubr.bf16.vlgmr.msra.gmra.mxu1 %v6586_v39  ;;  %v3597_v3 = vadd.f32 %v3596_v2, %v549_v62  ;;  %4802 = vmatpush3.bf16.msra.mxu0 %v5618_v54  ;;  %v5622_v39 = vld [vmem:[%s7505_s3 + $0x28] sm:$0xff]  }
 0x204   :  { %4193 = vmatprep.mubr.bf16.mxu0 %v3895_v63  ;;  %v3598_v5 = vpop.f32.mrf.mxu0  ;;  %4803 = vmatprep.subr.bf16.mxu0 %v5619_v59 }
 0x205   :  { %v3639_v7 = vpop.f32.mrf.mxu1  ;;  %v3638_v9 = vadd.f32 %v3637_v42, %v3597_v3  ;;  %v3599_v13 = vadd.f32 %v3598_v5, %v553_v1  ;;  %4824 = vmatpush3.bf16.msra.mxu1 %v5634_v16 }
 0x206   :  { %v3600_v18 = vpop.f32.mrf.mxu0  ;;  %4825 = vmatprep.subr.bf16.mxu1 %v5635_v17 }
 0x207   :  { %v3641_v10 = vpop.f32.mrf.mxu1  ;;  %v3640_v37 = vadd.f32 %v3639_v7, %v3599_v13  ;;  %4804 = vmatpush3.bf16.msra.mxu0 %v5620_v4 }
 0x208   :  { %v3601_v14 = vpop.f32.mrf.mxu0  ;;  %4805 = vmatprep.subr.bf16.mxu0 %v5621_v8 }
 0x209   :  { %v3642_v49 = vpop.f32.mrf.mxu1  ;;  %4826 = vmatpush3.bf16.msra.mxu1 %v5636_v19 }
 0x20a   :  { %4827 = vmatprep.subr.bf16.mxu1 %v5637_v21 }
 0x20b   :  { %4806 = vmatpush3.bf16.msra.mxu0 %v5622_v39 }
 0x20c   :  { %4807 = vmatprep.subr.bf16.mxu0 %v5623_v12 }
 0x20d   :  { %4828 = vmatpush3.bf16.msra.mxu1 %v5638_v24  ;;  %v4768_v24 = vld [vmem:[%s7506_s4] ss:$0 sm:$0xff] }
 0x20e   :  { %4829 = vmatprep.subr.bf16.mxu1 %v5639_v27 }
 0x20f   :  { %4808 = vmatpush3.bf16.msra.mxu0 %v5624_v23 }
 0x210   :  { %4809 = vmatprep.subr.bf16.mxu0 %v5625_v20 }
 0x211   :  { %4830 = vmatpush3.bf16.msra.mxu1 %v5640_v29 }
 0x212   :  { %4831 = vmatprep.subr.bf16.mxu1 %v5641_v31 }
 0x213   :  { %4810 = vmatpush3.bf16.msra.mxu0 %v5626_v22 }
 0x214   :  { %4811 = vmatprep.subr.bf16.mxu0 %v5627_v25 }
 0x215   :  { %4832 = vmatpush3.bf16.msra.mxu1 %v5642_v6 }
 0x216   :  { %4833 = vmatprep.subr.bf16.mxu1 %v5643_v40 }
 0x217   :  { %4812 = vmatpush3.bf16.msra.mxu0 %v5628_v28 }
 0x218   :  { %4813 = vmatprep.subr.bf16.mxu0 %v5629_v30 }
 0x219   :  { %4834 = vmatpush3.bf16.msra.mxu1 %v5644_v44 }
 0x21a   :  { %4835 = vmatprep.subr.bf16.mxu1 %v5645_v11 }
 0x21b   :  { %4814 = vmatpush3.bf16.msra.mxu0 %v5630_v26 }
 0x21c   :  { %4815 = vmatprep.subr.bf16.mxu0 %v5631_v33 }
 0x21d   :  { %4836 = vmatpush3.bf16.msra.mxu1 %v5646_v60 }
 0x21e   :  { %4837 = vmatprep.subr.bf16.mxu1 %v5647_v55 }
 0x21f   :  { %4816 = vmatpush3.bf16.msra.mxu0 %v5632_v34 }
 0x221   :  { %4838 = vmatpush3.bf16.msra.mxu1 %v5648_v56 }
 0x222   :  { %4194 = vmatmul.mubr.bf16.vlgmr.msra.gmra.mxu0 %v3894_v32 }
 0x242   :  { %v3678_v15 = vpop.f32.mrf.mxu0 }
 0x243   :  { %v3719_v41 = vpop.f32.mrf.mxu1  ;;  %v3679_v43 = vadd.f32 %v3678_v15, %v3638_v9 }
 0x244   :  { %v3680_v45 = vpop.f32.mrf.mxu0 }
 0x245   :  { %v3721_v47 = vpop.f32.mrf.mxu1  ;;  %v3720_v48 = vadd.f32 %v3719_v41, %v3679_v43  ;;  %v3681_v51 = vadd.f32 %v3680_v45, %v3640_v37 }
 0x246   :  { %v3682_v0 = vpop.f32.mrf.mxu0 }
 0x247   :  { %v3723_v50 = vpop.f32.mrf.mxu1  ;;  %v3722_v38 = vadd.f32 %v3721_v47, %v3681_v51 }
 0x248   :  { %v3683_v52 = vpop.f32.mrf.mxu0 }
 0x249   :  { %v3724_v35 = vpop.f32.mrf.mxu1 }
 0x282   :  { %v3760_v57 = vpop.f32.mrf.mxu0 }
 0x283   :  { %v3801_v58 = vpop.f32.mrf.mxu1  ;;  %v3761_v53 = vadd.f32 %v3760_v57, %v3720_v48 }
 0x284   :  { %v3762_v61 = vpop.f32.mrf.mxu0 }
 0x285   :  { %v3803_v62 = vpop.f32.mrf.mxu1  ;;  %v3802_v54 = vadd.f32 %v3801_v58, %v3761_v53  ;;  %v3763_v42 = vadd.f32 %v3762_v61, %v3722_v38 }
 0x286   :  { %v3764_v59 = vpop.f32.mrf.mxu0 }
 0x287   :  { %v3805_v63 = vpop.f32.mrf.mxu1  ;;  %v3804_v5 = vadd.f32 %v3803_v62, %v3763_v42 }
 0x288   :  { %v3765_v1 = vpop.f32.mrf.mxu0 }
 0x289   :  { %v3806_v2 = vpop.f32.mrf.mxu1 }
 0x2c2   :  { %v3842_v3 = vpop.f32.mrf.mxu0 }
 0x2c3   :  { %v3883_v4 = vpop.f32.mrf.mxu1  ;;  %v3843_v7 = vadd.f32 %v3842_v3, %v3802_v54 }
 0x2c4   :  { %v3844_v8 = vpop.f32.mrf.mxu0 }
 0x2c5   :  { %v3885_v9 = vpop.f32.mrf.mxu1  ;;  %v3884_v13 = vadd.f32 %v3883_v4, %v3843_v7  ;;  %v3845_v18 = vadd.f32 %v3844_v8, %v3804_v5 }
 0x2c6   :  { %v3846_v10 = vpop.f32.mrf.mxu0 }
 0x2c7   :  { %v3887_v37 = vpop.f32.mrf.mxu1  ;;  %v3886_v39 = vadd.f32 %v3885_v9, %v3845_v18  ;;  %v3892_v12 = vmax.f32 %v3884_v13, 0.0 }
 0x2c8   :  { %v3847_v14 = vpop.f32.mrf.mxu0 }
 0x2c9   :  { %v3888_v49 = vpop.f32.mrf.mxu1  ;;  %v3893_v46 = vmax.f32 %v3886_v39, 0.0  ;;  %v3896_v17 = vpack.c.bf16 %v3892_v12, %v3892_v12 }
 0x2cb   :  { %v3897_v16 = vpack.c.bf16 %v3893_v46, %v3893_v46 }
 0x2cd   :  { %4233 = vmatprep.mubr.bf16.mxu1 %v3897_v16 }
 0x2ce   :  { %4234 = vmatmul.mubr.bf16.vlgmr.msra.gmra.mxu1 %v3896_v17 }
 0x2e2   :  { %v4817_v23 = vpop.f32.mrf.mxu0 }
 0x2e4   :  { %v4818_v19 = vpop.f32.mrf.mxu0 }
 0x2e5   :  { %v4819_v20 = vadd.f32 %v4818_v19, %v4817_v23 }
 0x2e6   :  { %v4820_v21 = vpop.f32.mrf.mxu0 }
 0x2e7   :  { %v4196_v28 = vadd.f32 %v4819_v20, %v4768_v24 }
 0x2e8   :  { %v4821_v22 = vpop.f32.mrf.mxu0 }
 0x38e   :  { %v4839_v25 = vpop.f32.mrf.mxu1 }
 0x390   :  { %v4840_v27 = vpop.f32.mrf.mxu1 }
 0x391   :  { %v4841_v29 = vadd.f32 %v4840_v27, %v4839_v25 }
 0x392   :  { %v4842_v30 = vpop.f32.mrf.mxu1 }
 0x393   :  { %v4236_v31 = vadd.f32 %v4841_v29, %v4196_v28 }
 0x394   :  { %v4843_v26 = vpop.f32.mrf.mxu1 }
 0x395   :  { %4241 = vst [vmem:[#allocation2] sm:$0x3] %v4236_v31 }
 0x396   :  { %5661 = shalt.err (!%p5658_p4)
}
 0x397   :  { %4251 = dma.vmem_to_hbm [thread:$0]  %s4249_s28, 32, %s7507_s5, [#allocation3]  }
 0x398   :  { %5670 = dma.done.wait [#allocation3], 32  }
 0x399   :  { %5671 = vsyncadd [#allocation3], 4294967264 }
 0x39a   :  { %4255 = vsyncpa [#allocation3], 1 }

</bundles_post_ra>
